<compile_context>
chip_gen: v7x
topology: tpu7x:2x2x1
jax: 0.10.0
libtpu: 0.0.40
codegen_flags: <defaults>
</compile_context>

<pallas_src>
import math

import jax
import jax.numpy as jnp
from jax.experimental import pallas as pl
from jax.experimental.pallas import tpu as pltpu

# -------------------- scaled-down model configuration ----------------------
BATCH = 2
MEL_SEQ = 8
CHORD_SEQ = 8
D_MODEL = 32            # embed_dim
NUM_HEADS = 2
D_KV = D_MODEL // NUM_HEADS
INNER = NUM_HEADS * D_KV
D_FF = 64               # feedforward_dim
NUM_LAYERS = 2
TOTAL_VOCAB = 256       # unified vocabulary (module default 4779, scaled down)
MELODY_VOCAB = 128
CHORD_VOCAB = 64
PAD_TOKEN_ID = 178
REL_BUCKETS = 32
REL_MAX_DIST = 128
LN_EPS = 1e-6
NEG_INF = -1e9

# -------------------- weight-slab layout (wrapper & kernel share) ----------
W3 = 3 * INNER                      # fused QKV width (96)
# encoder layer internal column offsets within its stride
ENC_QKV = 0
ENC_O = W3                          # 96
ENC_WI = ENC_O + D_MODEL            # 128
ENC_STRIDE = ENC_WI + D_FF          # 192
# decoder layer internal column offsets within its stride
DEC_SQKV = 0
DEC_SO = W3                         # 96
DEC_CQ = DEC_SO + D_MODEL           # 128
DEC_CKV = DEC_CQ + INNER            # 160
DEC_CO = DEC_CKV + 2 * INNER        # 224
DEC_WI = DEC_CO + D_MODEL           # 256
DEC_STRIDE = DEC_WI + D_FF          # 320
# global column offsets in the [D_MODEL, W32_COLS] slab
W_SHARED = 0                        # shared_T [D, V] at a 128-aligned offset
W_ENC_BASE = TOTAL_VOCAB            # 256
W_DEC_BASE = W_ENC_BASE + NUM_LAYERS * ENC_STRIDE   # 640
W32_COLS = W_DEC_BASE + NUM_LAYERS * DEC_STRIDE     # 1280
# LN slab row indices
ENC_FINAL_LN = 2 * NUM_LAYERS                        # 4
DEC_LN_BASE = ENC_FINAL_LN + 1                       # 5
DEC_FINAL_LN = DEC_LN_BASE + 3 * NUM_LAYERS          # 11
N_LN = DEC_FINAL_LN + 1                              # 12


# ----------------------- in-kernel helper functions -------------------------
def _rmsnorm(x, w):
    """T5 RMS LayerNorm (no mean subtraction, no bias). x: [R, D], w: [1, D]."""
    var = jnp.mean(x * x, axis=-1, keepdims=True)
    return x * jax.lax.rsqrt(var + LN_EPS) * w


def _softmax_last(s):
    m = jnp.max(s, axis=-1, keepdims=True)
    e = jnp.exp(s - m)
    return e / jnp.sum(e, axis=-1, keepdims=True)


def _attend(q2d, k2d, v2d, w_o, biases, nb, sq, sk):
    """Multi-head T5 attention core + single output projection.

    q2d: [nb*sq, INNER], k2d/v2d: [nb*sk, INNER], w_o: [INNER, D_MODEL].
    biases: list of NUM_HEADS arrays broadcastable to [nb, sq, sk] (already
    pre-combined: rel-pos + padding + causal).  T5: no 1/sqrt(d_kv) scaling.
    Returns [nb*sq, D_MODEL].
    """
    ctx_heads = []
    for h in range(NUM_HEADS):
        qh = q2d[:, h * D_KV:(h + 1) * D_KV].reshape(nb, sq, D_KV)
        kh = k2d[:, h * D_KV:(h + 1) * D_KV].reshape(nb, sk, D_KV)
        vh = v2d[:, h * D_KV:(h + 1) * D_KV].reshape(nb, sk, D_KV)
        s = jnp.einsum('bqd,bkd->bqk', qh, kh,
                       preferred_element_type=jnp.float32)         # [nb, sq, sk]
        p = _softmax_last(s + biases[h])
        ctx = jnp.einsum('bqk,bkd->bqd', p, vh,
                         preferred_element_type=jnp.float32)        # [nb, sq, D_KV]
        ctx_heads.append(ctx.reshape(nb * sq, D_KV))
    ctx2d = jnp.concatenate(ctx_heads, axis=-1)                     # [nb*sq, INNER]
    return jnp.dot(ctx2d, w_o, preferred_element_type=jnp.float32)


# ------------------------- the single fused kernel ---------------------------
def _t5_forward_kernel(emb_ref, enc_bias_ref, dec_bias_ref, cross_bias_ref,
                       ln_ref, w32_ref, wo_ref, out_ref):
    def ln_w(i):                     # static row slice: [1, D]
        return ln_ref[i:i + 1, :]

    n_mel = BATCH * MEL_SEQ
    n_chd = BATCH * CHORD_SEQ

    # Per-head pre-combined biases, loaded once and reused by every layer
    # (T5 shares the layer-0 relative-position bias across layers).
    enc_bias = [enc_bias_ref[h] for h in range(NUM_HEADS)]     # [B, Sm, Sm]
    dec_bias = [dec_bias_ref[h] for h in range(NUM_HEADS)]     # [B, Sc, Sc]
    cross_b = cross_bias_ref[...]                              # [B, 1, Sm]
    cross_bias = [cross_b] * NUM_HEADS

    # ------------------------------ encoder ----------------------------------
    x = emb_ref[0:n_mel, :]                                    # [B*Sm, D]
    for l in range(NUM_LAYERS):
        base = W_ENC_BASE + l * ENC_STRIDE
        w_qkv = w32_ref[:, base + ENC_QKV:base + ENC_QKV + W3]
        w_o = w32_ref[:, base + ENC_O:base + ENC_O + D_MODEL]
        w_i = w32_ref[:, base + ENC_WI:base + ENC_WI + D_FF]
        w_f = wo_ref[:, l * D_MODEL:(l + 1) * D_MODEL]

        normed = _rmsnorm(x, ln_w(2 * l))
        qkv = jnp.dot(normed, w_qkv, preferred_element_type=jnp.float32)
        x = x + _attend(qkv[:, :INNER], qkv[:, INNER:2 * INNER],
                        qkv[:, 2 * INNER:], w_o, enc_bias,
                        BATCH, MEL_SEQ, MEL_SEQ)

        normed = _rmsnorm(x, ln_w(2 * l + 1))
        hidden = jnp.maximum(
            jnp.dot(normed, w_i, preferred_element_type=jnp.float32), 0.0)
        x = x + jnp.dot(hidden, w_f, preferred_element_type=jnp.float32)

    enc_hidden = _rmsnorm(x, ln_w(ENC_FINAL_LN))               # [B*Sm, D]

    # ------------------------------ decoder ----------------------------------
    y = emb_ref[n_mel:n_mel + n_chd, :]                        # [B*Sc, D]
    for l in range(NUM_LAYERS):
        base = W_DEC_BASE + l * DEC_STRIDE
        s_qkv = w32_ref[:, base + DEC_SQKV:base + DEC_SQKV + W3]
        s_o = w32_ref[:, base + DEC_SO:base + DEC_SO + D_MODEL]
        c_q = w32_ref[:, base + DEC_CQ:base + DEC_CQ + INNER]
        c_kv = w32_ref[:, base + DEC_CKV:base + DEC_CKV + 2 * INNER]
        c_o = w32_ref[:, base + DEC_CO:base + DEC_CO + D_MODEL]
        w_i = w32_ref[:, base + DEC_WI:base + DEC_WI + D_FF]
        w_f = wo_ref[:, (NUM_LAYERS + l) * D_MODEL:(NUM_LAYERS + l + 1) * D_MODEL]

        # self attention (causal + key padding + relative position bias)
        normed = _rmsnorm(y, ln_w(DEC_LN_BASE + 3 * l))
        qkv = jnp.dot(normed, s_qkv, preferred_element_type=jnp.float32)
        y = y + _attend(qkv[:, :INNER], qkv[:, INNER:2 * INNER],
                        qkv[:, 2 * INNER:], s_o, dec_bias,
                        BATCH, CHORD_SEQ, CHORD_SEQ)

        # cross attention (encoder key padding mask only, no position bias)
        normed = _rmsnorm(y, ln_w(DEC_LN_BASE + 3 * l + 1))
        q2d = jnp.dot(normed, c_q, preferred_element_type=jnp.float32)
        kv = jnp.dot(enc_hidden, c_kv, preferred_element_type=jnp.float32)
        y = y + _attend(q2d, kv[:, :INNER], kv[:, INNER:], c_o, cross_bias,
                        BATCH, CHORD_SEQ, MEL_SEQ)

        # feed-forward
        normed = _rmsnorm(y, ln_w(DEC_LN_BASE + 3 * l + 2))
        hidden = jnp.maximum(
            jnp.dot(normed, w_i, preferred_element_type=jnp.float32), 0.0)
        y = y + jnp.dot(hidden, w_f, preferred_element_type=jnp.float32)

    # final norm + tied-embedding rescale + logits projection (shared_T, [D, V])
    dec_out = _rmsnorm(y, ln_w(DEC_FINAL_LN)) * (D_MODEL ** -0.5)     # [B*Sc, D]
    shared_t = w32_ref[:, W_SHARED:W_SHARED + TOTAL_VOCAB]            # [D, V]
    out_ref[...] = jnp.dot(dec_out, shared_t,
                           preferred_element_type=jnp.float32)        # [B*Sc, V]


# ------------------------- T5 glue (plain JAX) ------------------------------
def _relative_position_bucket(relative_position, bidirectional,
                              num_buckets=REL_BUCKETS, max_distance=REL_MAX_DIST):
    relative_buckets = jnp.zeros_like(relative_position)
    if bidirectional:
        num_buckets //= 2
        relative_buckets = relative_buckets + (relative_position > 0).astype(jnp.int32) * num_buckets
        relative_position = jnp.abs(relative_position)
    else:
        relative_position = -jnp.minimum(relative_position, 0)
    max_exact = num_buckets // 2
    is_small = relative_position < max_exact
    rp_f = jnp.maximum(relative_position, 1).astype(jnp.float32)
    rel_if_large = max_exact + (
        jnp.log(rp_f / max_exact) / math.log(max_distance / max_exact)
        * (num_buckets - max_exact)
    ).astype(jnp.int32)
    rel_if_large = jnp.minimum(rel_if_large, num_buckets - 1)
    return relative_buckets + jnp.where(is_small, relative_position, rel_if_large)


def compute_position_bias(rel_table, q_len, k_len, bidirectional):
    context = jnp.arange(q_len, dtype=jnp.int32)[:, None]
    memory = jnp.arange(k_len, dtype=jnp.int32)[None, :]
    buckets = _relative_position_bucket(memory - context, bidirectional)
    values = rel_table[buckets]                     # [q, k, H]
    return jnp.transpose(values, (2, 0, 1))         # [H, q, k]


def _full_spec(shape):
    rank = len(shape)

    def idx(i):
        return (0,) * rank

    return pl.BlockSpec(shape, idx)


def t5_offline_teacher_forward(params, melody_tokens, chord_tokens,
                               melody_mask=None, chord_mask=None):
    """Returns logits [batch, chord_seq_len, TOTAL_VOCAB] (eval mode, no dropout)."""
    if melody_mask is None:
        melody_mask = (melody_tokens != PAD_TOKEN_ID)
    if chord_mask is None:
        chord_mask = (chord_tokens != PAD_TOKEN_ID)
    melody_mask = melody_mask.astype(jnp.float32)
    chord_mask = chord_mask.astype(jnp.float32)

    B, Sm = melody_tokens.shape
    _, Sc = chord_tokens.shape
    shared = params['shared']                                        # [V, D]

    # TODO(synk): embedding gather could move in-kernel (scalar-prefetched ids +
    # VMEM table gather); kept as plain-JAX glue for lowering safety.
    mel_emb = shared[melody_tokens].reshape(B * Sm, D_MODEL)
    chd_emb = shared[chord_tokens].reshape(B * Sc, D_MODEL)
    emb_slab = jnp.concatenate([mel_emb, chd_emb], axis=0)           # [B*(Sm+Sc), D]

    # Relative-position bias tables (layer 0, shared across layers — T5 style).
    enc_pos = compute_position_bias(
        params['encoder']['layers'][0]['attn']['rel_bias'], Sm, Sm, bidirectional=True)
    dec_pos = compute_position_bias(
        params['decoder']['layers'][0]['self_attn']['rel_bias'], Sc, Sc, bidirectional=False)

    # Pre-combined additive biases (tiny: ~1 KiB each), assembled once here so
    # the kernel never re-broadcasts them per layer/head.
    enc_key_add = (1.0 - melody_mask) * NEG_INF                      # [B, Sm]
    dec_key_add = (1.0 - chord_mask) * NEG_INF                       # [B, Sc]
    r = jnp.arange(Sc, dtype=jnp.int32)
    causal_add = jnp.where(r[None, :] <= r[:, None], 0.0, NEG_INF)   # [Sc, Sc]

    enc_bias = enc_pos[:, None, :, :] + enc_key_add[None, :, None, :]            # [H,B,Sm,Sm]
    dec_bias = (dec_pos[:, None, :, :] + causal_add[None, None, :, :]
                + dec_key_add[None, :, None, :])                                 # [H,B,Sc,Sc]
    cross_bias = enc_key_add[:, None, :]                                         # [B,1,Sm]

    # ---- pack weights into a few lane-dense slabs ----
    ln_rows = []
    w32_cols = [jnp.transpose(shared)]                 # shared_T [D, V] at col 0
    wo_cols = []
    for layer in params['encoder']['layers']:
        a = layer['attn']
        ln_rows += [layer['ln1'], layer['ln2']]
        w32_cols += [jnp.concatenate([a['q'], a['k'], a['v']], axis=1),   # [D, 96]
                     a['o'], layer['ff']['wi']]
        wo_cols.append(layer['ff']['wo'])
    ln_rows.append(params['encoder']['final_ln'])
    for layer in params['decoder']['layers']:
        sa, ca = layer['self_attn'], layer['cross_attn']
        ln_rows += [layer['ln1'], layer['ln2'], layer['ln3']]
        w32_cols += [jnp.concatenate([sa['q'], sa['k'], sa['v']], axis=1),
                     sa['o'], ca['q'],
                     jnp.concatenate([ca['k'], ca['v']], axis=1),         # [D, 64]
                     ca['o'], layer['ff']['wi']]
        wo_cols.append(layer['ff']['wo'])
    ln_rows.append(params['decoder']['final_ln'])

    ln_slab = jnp.stack(ln_rows, axis=0)               # [N_LN, D]
    w32_slab = jnp.concatenate(w32_cols, axis=1)       # [D, W32_COLS] = [32, 1280]
    wo_slab = jnp.concatenate(wo_cols, axis=1)         # [D_FF, 2*NUM_LAYERS*D] = [64, 128]
    assert ln_slab.shape == (N_LN, D_MODEL)
    assert w32_slab.shape == (D_MODEL, W32_COLS)
    assert wo_slab.shape == (D_FF, 2 * NUM_LAYERS * D_MODEL)

    inputs = [emb_slab, enc_bias, dec_bias, cross_bias, ln_slab, w32_slab, wo_slab]

    logits2d = pl.pallas_call(
        _t5_forward_kernel,
        out_shape=jax.ShapeDtypeStruct((B * Sc, TOTAL_VOCAB), jnp.float32),
        grid_spec=pltpu.PrefetchScalarGridSpec(
            num_scalar_prefetch=0,
            grid=(1,),
            in_specs=[_full_spec(x.shape) for x in inputs],
            out_specs=pl.BlockSpec((B * Sc, TOTAL_VOCAB), lambda i: (0, 0)),
        ),
        compiler_params=pltpu.CompilerParams(
            dimension_semantics=("arbitrary",)),
    )(*inputs)
    return logits2d.reshape(B, Sc, TOTAL_VOCAB)


# --------------------------- parameter creation -----------------------------
def init_params(key):
    keys = iter(jax.random.split(key, 256))

    def dense(shape, scale):
        return jax.random.normal(next(keys), shape, jnp.float32) * scale

    def make_attn(with_rel_bias):
        p = {'q': dense((D_MODEL, INNER), (D_MODEL * D_KV) ** -0.5),
             'k': dense((D_MODEL, INNER), D_MODEL ** -0.5),
             'v': dense((D_MODEL, INNER), D_MODEL ** -0.5),
             'o': dense((INNER, D_MODEL), INNER ** -0.5)}
        if with_rel_bias:
            p['rel_bias'] = dense((REL_BUCKETS, NUM_HEADS), D_MODEL ** -0.5)
        return p

    def make_ff():
        return {'wi': dense((D_MODEL, D_FF), D_MODEL ** -0.5),
                'wo': dense((D_FF, D_MODEL), D_FF ** -0.5)}

    params = {'shared': dense((TOTAL_VOCAB, D_MODEL), 1.0)}
    enc_layers, dec_layers = [], []
    for i in range(NUM_LAYERS):
        enc_layers.append({'ln1': jnp.ones((D_MODEL,), jnp.float32),
                           'attn': make_attn(i == 0),
                           'ln2': jnp.ones((D_MODEL,), jnp.float32),
                           'ff': make_ff()})
        dec_layers.append({'ln1': jnp.ones((D_MODEL,), jnp.float32),
                           'self_attn': make_attn(i == 0),
                           'ln2': jnp.ones((D_MODEL,), jnp.float32),
                           'cross_attn': make_attn(False),
                           'ln3': jnp.ones((D_MODEL,), jnp.float32),
                           'ff': make_ff()})
    params['encoder'] = {'layers': enc_layers,
                         'final_ln': jnp.ones((D_MODEL,), jnp.float32)}
    params['decoder'] = {'layers': dec_layers,
                         'final_ln': jnp.ones((D_MODEL,), jnp.float32)}
    return params


# --------------------------------- main -------------------------------------
if __name__ == "__main__":
    key = jax.random.PRNGKey(0)
    pkey, mkey, ckey = jax.random.split(key, 3)
    params = init_params(pkey)

    melody_tokens = jax.random.randint(mkey, (BATCH, MEL_SEQ), 0, MELODY_VOCAB, dtype=jnp.int32)
    chord_tokens = jax.random.randint(ckey, (BATCH, CHORD_SEQ), 0, CHORD_VOCAB, dtype=jnp.int32)
    # Put a few pad tokens in to exercise the attention masking paths.
    melody_tokens = melody_tokens.at[:, -2:].set(PAD_TOKEN_ID)
    chord_tokens = chord_tokens.at[:, -1].set(PAD_TOKEN_ID)

    fwd = jax.jit(t5_offline_teacher_forward)
    logits = fwd(params, melody_tokens, chord_tokens)
    jax.block_until_ready(logits)

    assert logits.shape == (BATCH, CHORD_SEQ, TOTAL_VOCAB), logits.shape
    assert logits.dtype == jnp.float32
    assert bool(jnp.all(jnp.isfinite(logits)))
    print("KERNEL_OK")
</pallas_src>

<mosaic_0001>
module attributes {stable_mosaic.version = 11 : i64} {
  func.func @_t5_forward_kernel(%arg0: i32, %arg1: memref<32x32xf32, #tpu.memory_space<vmem>>, %arg2: memref<2x2x8x8xf32, #tpu.memory_space<vmem>>, %arg3: memref<2x2x8x8xf32, #tpu.memory_space<vmem>>, %arg4: memref<2x1x8xf32, #tpu.memory_space<vmem>>, %arg5: memref<12x32xf32, #tpu.memory_space<vmem>>, %arg6: memref<32x1280xf32, #tpu.memory_space<vmem>>, %arg7: memref<64x128xf32, #tpu.memory_space<vmem>>, %arg8: memref<16x256xf32, #tpu.memory_space<vmem>>) attributes {dimension_semantics = [#tpu.dimension_semantics<arbitrary>], iteration_bounds = array<i64: 1>, scalar_prefetch = 0 : i64, scratch_operands = 0 : i64, tpu.core_type = #tpu.core_type<tc>, window_params = [{pipeline_mode = #tpu.pipeline_mode<synchronous>, transform_indices = @transform_0, window_bounds = array<i64: 32, 32>}, {pipeline_mode = #tpu.pipeline_mode<synchronous>, transform_indices = @transform_1, window_bounds = array<i64: 2, 2, 8, 8>}, {pipeline_mode = #tpu.pipeline_mode<synchronous>, transform_indices = @transform_2, window_bounds = array<i64: 2, 2, 8, 8>}, {pipeline_mode = #tpu.pipeline_mode<synchronous>, transform_indices = @transform_3, window_bounds = array<i64: 2, 1, 8>}, {pipeline_mode = #tpu.pipeline_mode<synchronous>, transform_indices = @transform_4, window_bounds = array<i64: 12, 32>}, {pipeline_mode = #tpu.pipeline_mode<synchronous>, transform_indices = @transform_5, window_bounds = array<i64: 32, 1280>}, {pipeline_mode = #tpu.pipeline_mode<synchronous>, transform_indices = @transform_6, window_bounds = array<i64: 64, 128>}, {pipeline_mode = #tpu.pipeline_mode<synchronous>, transform_indices = @transform_7, window_bounds = array<i64: 16, 256>}]} {
    %c0 = arith.constant 0 : index
    %c0_0 = arith.constant 0 : index
    %c0_1 = arith.constant 0 : index
    %c0_2 = arith.constant 0 : index
    %0 = vector.load %arg2[%c0, %c0_0, %c0_1, %c0_2] : memref<2x2x8x8xf32, #tpu.memory_space<vmem>>, vector<1x2x8x8xf32>
    %1 = vector.shape_cast %0 : vector<1x2x8x8xf32> to vector<2x8x8xf32>
    %c1 = arith.constant 1 : index
    %c0_3 = arith.constant 0 : index
    %c0_4 = arith.constant 0 : index
    %c0_5 = arith.constant 0 : index
    %2 = vector.load %arg2[%c1, %c0_3, %c0_4, %c0_5] : memref<2x2x8x8xf32, #tpu.memory_space<vmem>>, vector<1x2x8x8xf32>
    %3 = vector.shape_cast %2 : vector<1x2x8x8xf32> to vector<2x8x8xf32>
    %c0_6 = arith.constant 0 : index
    %c0_7 = arith.constant 0 : index
    %c0_8 = arith.constant 0 : index
    %c0_9 = arith.constant 0 : index
    %4 = vector.load %arg3[%c0_6, %c0_7, %c0_8, %c0_9] : memref<2x2x8x8xf32, #tpu.memory_space<vmem>>, vector<1x2x8x8xf32>
    %5 = vector.shape_cast %4 : vector<1x2x8x8xf32> to vector<2x8x8xf32>
    %c1_10 = arith.constant 1 : index
    %c0_11 = arith.constant 0 : index
    %c0_12 = arith.constant 0 : index
    %c0_13 = arith.constant 0 : index
    %6 = vector.load %arg3[%c1_10, %c0_11, %c0_12, %c0_13] : memref<2x2x8x8xf32, #tpu.memory_space<vmem>>, vector<1x2x8x8xf32>
    %7 = vector.shape_cast %6 : vector<1x2x8x8xf32> to vector<2x8x8xf32>
    %c0_14 = arith.constant 0 : index
    %c0_15 = arith.constant 0 : index
    %c0_16 = arith.constant 0 : index
    %8 = vector.load %arg4[%c0_14, %c0_15, %c0_16] : memref<2x1x8xf32, #tpu.memory_space<vmem>>, vector<2x1x8xf32>
    %c0_17 = arith.constant 0 : index
    %c0_18 = arith.constant 0 : index
    %9 = vector.load %arg1[%c0_17, %c0_18] : memref<32x32xf32, #tpu.memory_space<vmem>>, vector<16x32xf32>
    %c0_19 = arith.constant 0 : index
    %c256 = arith.constant 256 : index
    %10 = vector.load %arg6[%c0_19, %c256] : memref<32x1280xf32, #tpu.memory_space<vmem>>, vector<32x96xf32>
    %c0_20 = arith.constant 0 : index
    %c352 = arith.constant 352 : index
    %11 = vector.load %arg6[%c0_20, %c352] : memref<32x1280xf32, #tpu.memory_space<vmem>>, vector<32x32xf32>
    %c0_21 = arith.constant 0 : index
    %c384 = arith.constant 384 : index
    %12 = vector.load %arg6[%c0_21, %c384] : memref<32x1280xf32, #tpu.memory_space<vmem>>, vector<32x64xf32>
    %c0_22 = arith.constant 0 : index
    %c0_23 = arith.constant 0 : index
    %13 = vector.load %arg7[%c0_22, %c0_23] : memref<64x128xf32, #tpu.memory_space<vmem>>, vector<64x32xf32>
    %c0_24 = arith.constant 0 : index
    %c0_25 = arith.constant 0 : index
    %14 = vector.load %arg5[%c0_24, %c0_25] : memref<12x32xf32, #tpu.memory_space<vmem>>, vector<1x32xf32>
    %15 = arith.mulf %9, %9 : vector<16x32xf32>
    %cst = arith.constant dense<0.000000e+00> : vector<16xf32>
    %16 = vector.multi_reduction <add>, %15, %cst [1] : vector<16x32xf32> to vector<16xf32>
    %17 = vector.shape_cast %16 : vector<16xf32> to vector<16x1xf32>
    %cst_26 = arith.constant 3.200000e+01 : f32
    %18 = vector.broadcast %cst_26 : f32 to vector<16x1xf32>
    %19 = arith.divf %17, %18 : vector<16x1xf32>
    %cst_27 = arith.constant 9.99999997E-7 : f32
    %20 = vector.broadcast %cst_27 : f32 to vector<16x1xf32>
    %21 = arith.addf %19, %20 : vector<16x1xf32>
    %22 = math.rsqrt %21 : vector<16x1xf32>
    %23 = vector.broadcast %22 : vector<16x1xf32> to vector<16x32xf32>
    %24 = arith.mulf %9, %23 : vector<16x32xf32>
    %25 = vector.broadcast %14 : vector<1x32xf32> to vector<16x32xf32>
    %26 = arith.mulf %24, %25 : vector<16x32xf32>
    %cst_28 = arith.constant dense<0.000000e+00> : vector<16x96xf32>
    %27 = tpu.matmul %26, %10, %cst_28 {dimension_numbers = #tpu.dot_dimension_numbers<[1], [0], [0], [1], [0, 0, 1, 1], [], []>} : vector<16x32xf32>, vector<32x96xf32>, vector<16x96xf32> -> vector<16x96xf32>
    %28 = vector.extract_strided_slice %27 {offsets = [0, 0], sizes = [16, 32], strides = [1, 1]} : vector<16x96xf32> to vector<16x32xf32>
    %29 = vector.extract_strided_slice %27 {offsets = [0, 32], sizes = [16, 32], strides = [1, 1]} : vector<16x96xf32> to vector<16x32xf32>
    %30 = vector.extract_strided_slice %27 {offsets = [0, 64], sizes = [16, 32], strides = [1, 1]} : vector<16x96xf32> to vector<16x32xf32>
    %31 = vector.extract_strided_slice %28 {offsets = [0, 0], sizes = [16, 16], strides = [1, 1]} : vector<16x32xf32> to vector<16x16xf32>
    %32 = vector.shape_cast %31 : vector<16x16xf32> to vector<2x8x16xf32>
    %33 = vector.extract_strided_slice %29 {offsets = [0, 0], sizes = [16, 16], strides = [1, 1]} : vector<16x32xf32> to vector<16x16xf32>
    %34 = vector.shape_cast %33 : vector<16x16xf32> to vector<2x8x16xf32>
    %35 = vector.extract_strided_slice %30 {offsets = [0, 0], sizes = [16, 16], strides = [1, 1]} : vector<16x32xf32> to vector<16x16xf32>
    %36 = vector.shape_cast %35 : vector<16x16xf32> to vector<2x8x16xf32>
    "tpu.trace_start"() <{level = 10 : i32, message = "bqd,bkd->bqk"}> : () -> ()
    %cst_29 = arith.constant dense<0.000000e+00> : vector<2x8x8xf32>
    %37 = tpu.matmul %32, %34, %cst_29 {dimension_numbers = #tpu.dot_dimension_numbers<[2], [2], [1], [1], [0, 0, 0, 1, 1, 1], [0], [0]>} : vector<2x8x16xf32>, vector<2x8x16xf32>, vector<2x8x8xf32> -> vector<2x8x8xf32>
    "tpu.trace_stop"() : () -> ()
    %38 = arith.addf %37, %1 : vector<2x8x8xf32>
    %cst_30 = arith.constant dense<0xFF800000> : vector<2x8xf32>
    %39 = vector.multi_reduction <maximumf>, %38, %cst_30 [2] : vector<2x8x8xf32> to vector<2x8xf32>
    %40 = vector.shape_cast %39 : vector<2x8xf32> to vector<2x8x1xf32>
    %41 = vector.broadcast %40 : vector<2x8x1xf32> to vector<2x8x8xf32>
    %42 = arith.subf %38, %41 : vector<2x8x8xf32>
    %43 = math.exp %42 : vector<2x8x8xf32>
    %cst_31 = arith.constant dense<0.000000e+00> : vector<2x8xf32>
    %44 = vector.multi_reduction <add>, %43, %cst_31 [2] : vector<2x8x8xf32> to vector<2x8xf32>
    %45 = vector.shape_cast %44 : vector<2x8xf32> to vector<2x8x1xf32>
    %46 = vector.broadcast %45 : vector<2x8x1xf32> to vector<2x8x8xf32>
    %47 = arith.divf %43, %46 : vector<2x8x8xf32>
    "tpu.trace_start"() <{level = 10 : i32, message = "bqk,bkd->bqd"}> : () -> ()
    %cst_32 = arith.constant dense<0.000000e+00> : vector<2x8x16xf32>
    %48 = tpu.matmul %47, %36, %cst_32 {dimension_numbers = #tpu.dot_dimension_numbers<[2], [1], [1], [2], [0, 0, 0, 1, 1, 2], [0], [0]>} : vector<2x8x8xf32>, vector<2x8x16xf32>, vector<2x8x16xf32> -> vector<2x8x16xf32>
    "tpu.trace_stop"() : () -> ()
    %49 = vector.shape_cast %48 : vector<2x8x16xf32> to vector<16x16xf32>
    %50 = vector.extract_strided_slice %28 {offsets = [0, 16], sizes = [16, 16], strides = [1, 1]} : vector<16x32xf32> to vector<16x16xf32>
    %51 = vector.shape_cast %50 : vector<16x16xf32> to vector<2x8x16xf32>
    %52 = vector.extract_strided_slice %29 {offsets = [0, 16], sizes = [16, 16], strides = [1, 1]} : vector<16x32xf32> to vector<16x16xf32>
    %53 = vector.shape_cast %52 : vector<16x16xf32> to vector<2x8x16xf32>
    %54 = vector.extract_strided_slice %30 {offsets = [0, 16], sizes = [16, 16], strides = [1, 1]} : vector<16x32xf32> to vector<16x16xf32>
    %55 = vector.shape_cast %54 : vector<16x16xf32> to vector<2x8x16xf32>
    "tpu.trace_start"() <{level = 10 : i32, message = "bqd,bkd->bqk"}> : () -> ()
    %cst_33 = arith.constant dense<0.000000e+00> : vector<2x8x8xf32>
    %56 = tpu.matmul %51, %53, %cst_33 {dimension_numbers = #tpu.dot_dimension_numbers<[2], [2], [1], [1], [0, 0, 0, 1, 1, 1], [0], [0]>} : vector<2x8x16xf32>, vector<2x8x16xf32>, vector<2x8x8xf32> -> vector<2x8x8xf32>
    "tpu.trace_stop"() : () -> ()
    %57 = arith.addf %56, %3 : vector<2x8x8xf32>
    %cst_34 = arith.constant dense<0xFF800000> : vector<2x8xf32>
    %58 = vector.multi_reduction <maximumf>, %57, %cst_34 [2] : vector<2x8x8xf32> to vector<2x8xf32>
    %59 = vector.shape_cast %58 : vector<2x8xf32> to vector<2x8x1xf32>
    %60 = vector.broadcast %59 : vector<2x8x1xf32> to vector<2x8x8xf32>
    %61 = arith.subf %57, %60 : vector<2x8x8xf32>
    %62 = math.exp %61 : vector<2x8x8xf32>
    %cst_35 = arith.constant dense<0.000000e+00> : vector<2x8xf32>
    %63 = vector.multi_reduction <add>, %62, %cst_35 [2] : vector<2x8x8xf32> to vector<2x8xf32>
    %64 = vector.shape_cast %63 : vector<2x8xf32> to vector<2x8x1xf32>
    %65 = vector.broadcast %64 : vector<2x8x1xf32> to vector<2x8x8xf32>
    %66 = arith.divf %62, %65 : vector<2x8x8xf32>
    "tpu.trace_start"() <{level = 10 : i32, message = "bqk,bkd->bqd"}> : () -> ()
    %cst_36 = arith.constant dense<0.000000e+00> : vector<2x8x16xf32>
    %67 = tpu.matmul %66, %55, %cst_36 {dimension_numbers = #tpu.dot_dimension_numbers<[2], [1], [1], [2], [0, 0, 0, 1, 1, 2], [0], [0]>} : vector<2x8x8xf32>, vector<2x8x16xf32>, vector<2x8x16xf32> -> vector<2x8x16xf32>
    "tpu.trace_stop"() : () -> ()
    %68 = vector.shape_cast %67 : vector<2x8x16xf32> to vector<16x16xf32>
    %69 = tpu.concatenate %49, %68 in 1 : vector<16x16xf32>, vector<16x16xf32> -> vector<16x32xf32>
    %cst_37 = arith.constant dense<0.000000e+00> : vector<16x32xf32>
    %70 = tpu.matmul %69, %11, %cst_37 {dimension_numbers = #tpu.dot_dimension_numbers<[1], [0], [0], [1], [0, 0, 1, 1], [], []>} : vector<16x32xf32>, vector<32x32xf32>, vector<16x32xf32> -> vector<16x32xf32>
    %71 = arith.addf %9, %70 : vector<16x32xf32>
    %c1_38 = arith.constant 1 : index
    %c0_39 = arith.constant 0 : index
    %72 = vector.load %arg5[%c1_38, %c0_39] : memref<12x32xf32, #tpu.memory_space<vmem>>, vector<1x32xf32>
    %73 = arith.mulf %71, %71 : vector<16x32xf32>
    %cst_40 = arith.constant dense<0.000000e+00> : vector<16xf32>
    %74 = vector.multi_reduction <add>, %73, %cst_40 [1] : vector<16x32xf32> to vector<16xf32>
    %75 = vector.shape_cast %74 : vector<16xf32> to vector<16x1xf32>
    %cst_41 = arith.constant 3.200000e+01 : f32
    %76 = vector.broadcast %cst_41 : f32 to vector<16x1xf32>
    %77 = arith.divf %75, %76 : vector<16x1xf32>
    %cst_42 = arith.constant 9.99999997E-7 : f32
    %78 = vector.broadcast %cst_42 : f32 to vector<16x1xf32>
    %79 = arith.addf %77, %78 : vector<16x1xf32>
    %80 = math.rsqrt %79 : vector<16x1xf32>
    %81 = vector.broadcast %80 : vector<16x1xf32> to vector<16x32xf32>
    %82 = arith.mulf %71, %81 : vector<16x32xf32>
    %83 = vector.broadcast %72 : vector<1x32xf32> to vector<16x32xf32>
    %84 = arith.mulf %82, %83 : vector<16x32xf32>
    %cst_43 = arith.constant dense<0.000000e+00> : vector<16x64xf32>
    %85 = tpu.matmul %84, %12, %cst_43 {dimension_numbers = #tpu.dot_dimension_numbers<[1], [0], [0], [1], [0, 0, 1, 1], [], []>} : vector<16x32xf32>, vector<32x64xf32>, vector<16x64xf32> -> vector<16x64xf32>
    %cst_44 = arith.constant 0.000000e+00 : f32
    %86 = vector.broadcast %cst_44 : f32 to vector<16x64xf32>
    %87 = arith.maximumf %85, %86 : vector<16x64xf32>
    %cst_45 = arith.constant dense<0.000000e+00> : vector<16x32xf32>
    %88 = tpu.matmul %87, %13, %cst_45 {dimension_numbers = #tpu.dot_dimension_numbers<[1], [0], [0], [1], [0, 0, 1, 1], [], []>} : vector<16x64xf32>, vector<64x32xf32>, vector<16x32xf32> -> vector<16x32xf32>
    %89 = arith.addf %71, %88 : vector<16x32xf32>
    %c0_46 = arith.constant 0 : index
    %c448 = arith.constant 448 : index
    %90 = vector.load %arg6[%c0_46, %c448] : memref<32x1280xf32, #tpu.memory_space<vmem>>, vector<32x96xf32>
    %c0_47 = arith.constant 0 : index
    %c544 = arith.constant 544 : index
    %91 = vector.load %arg6[%c0_47, %c544] : memref<32x1280xf32, #tpu.memory_space<vmem>>, vector<32x32xf32>
    %c0_48 = arith.constant 0 : index
    %c576 = arith.constant 576 : index
    %92 = vector.load %arg6[%c0_48, %c576] : memref<32x1280xf32, #tpu.memory_space<vmem>>, vector<32x64xf32>
    %c0_49 = arith.constant 0 : index
    %c32 = arith.constant 32 : index
    %93 = vector.load %arg7[%c0_49, %c32] : memref<64x128xf32, #tpu.memory_space<vmem>>, vector<64x32xf32>
    %c2 = arith.constant 2 : index
    %c0_50 = arith.constant 0 : index
    %94 = vector.load %arg5[%c2, %c0_50] : memref<12x32xf32, #tpu.memory_space<vmem>>, vector<1x32xf32>
    %95 = arith.mulf %89, %89 : vector<16x32xf32>
    %cst_51 = arith.constant dense<0.000000e+00> : vector<16xf32>
    %96 = vector.multi_reduction <add>, %95, %cst_51 [1] : vector<16x32xf32> to vector<16xf32>
    %97 = vector.shape_cast %96 : vector<16xf32> to vector<16x1xf32>
    %cst_52 = arith.constant 3.200000e+01 : f32
    %98 = vector.broadcast %cst_52 : f32 to vector<16x1xf32>
    %99 = arith.divf %97, %98 : vector<16x1xf32>
    %cst_53 = arith.constant 9.99999997E-7 : f32
    %100 = vector.broadcast %cst_53 : f32 to vector<16x1xf32>
    %101 = arith.addf %99, %100 : vector<16x1xf32>
    %102 = math.rsqrt %101 : vector<16x1xf32>
    %103 = vector.broadcast %102 : vector<16x1xf32> to vector<16x32xf32>
    %104 = arith.mulf %89, %103 : vector<16x32xf32>
    %105 = vector.broadcast %94 : vector<1x32xf32> to vector<16x32xf32>
    %106 = arith.mulf %104, %105 : vector<16x32xf32>
    %cst_54 = arith.constant dense<0.000000e+00> : vector<16x96xf32>
    %107 = tpu.matmul %106, %90, %cst_54 {dimension_numbers = #tpu.dot_dimension_numbers<[1], [0], [0], [1], [0, 0, 1, 1], [], []>} : vector<16x32xf32>, vector<32x96xf32>, vector<16x96xf32> -> vector<16x96xf32>
    %108 = vector.extract_strided_slice %107 {offsets = [0, 0], sizes = [16, 32], strides = [1, 1]} : vector<16x96xf32> to vector<16x32xf32>
    %109 = vector.extract_strided_slice %107 {offsets = [0, 32], sizes = [16, 32], strides = [1, 1]} : vector<16x96xf32> to vector<16x32xf32>
    %110 = vector.extract_strided_slice %107 {offsets = [0, 64], sizes = [16, 32], strides = [1, 1]} : vector<16x96xf32> to vector<16x32xf32>
    %111 = vector.extract_strided_slice %108 {offsets = [0, 0], sizes = [16, 16], strides = [1, 1]} : vector<16x32xf32> to vector<16x16xf32>
    %112 = vector.shape_cast %111 : vector<16x16xf32> to vector<2x8x16xf32>
    %113 = vector.extract_strided_slice %109 {offsets = [0, 0], sizes = [16, 16], strides = [1, 1]} : vector<16x32xf32> to vector<16x16xf32>
    %114 = vector.shape_cast %113 : vector<16x16xf32> to vector<2x8x16xf32>
    %115 = vector.extract_strided_slice %110 {offsets = [0, 0], sizes = [16, 16], strides = [1, 1]} : vector<16x32xf32> to vector<16x16xf32>
    %116 = vector.shape_cast %115 : vector<16x16xf32> to vector<2x8x16xf32>
    "tpu.trace_start"() <{level = 10 : i32, message = "bqd,bkd->bqk"}> : () -> ()
    %cst_55 = arith.constant dense<0.000000e+00> : vector<2x8x8xf32>
    %117 = tpu.matmul %112, %114, %cst_55 {dimension_numbers = #tpu.dot_dimension_numbers<[2], [2], [1], [1], [0, 0, 0, 1, 1, 1], [0], [0]>} : vector<2x8x16xf32>, vector<2x8x16xf32>, vector<2x8x8xf32> -> vector<2x8x8xf32>
    "tpu.trace_stop"() : () -> ()
    %118 = arith.addf %117, %1 : vector<2x8x8xf32>
    %cst_56 = arith.constant dense<0xFF800000> : vector<2x8xf32>
    %119 = vector.multi_reduction <maximumf>, %118, %cst_56 [2] : vector<2x8x8xf32> to vector<2x8xf32>
    %120 = vector.shape_cast %119 : vector<2x8xf32> to vector<2x8x1xf32>
    %121 = vector.broadcast %120 : vector<2x8x1xf32> to vector<2x8x8xf32>
    %122 = arith.subf %118, %121 : vector<2x8x8xf32>
    %123 = math.exp %122 : vector<2x8x8xf32>
    %cst_57 = arith.constant dense<0.000000e+00> : vector<2x8xf32>
    %124 = vector.multi_reduction <add>, %123, %cst_57 [2] : vector<2x8x8xf32> to vector<2x8xf32>
    %125 = vector.shape_cast %124 : vector<2x8xf32> to vector<2x8x1xf32>
    %126 = vector.broadcast %125 : vector<2x8x1xf32> to vector<2x8x8xf32>
    %127 = arith.divf %123, %126 : vector<2x8x8xf32>
    "tpu.trace_start"() <{level = 10 : i32, message = "bqk,bkd->bqd"}> : () -> ()
    %cst_58 = arith.constant dense<0.000000e+00> : vector<2x8x16xf32>
    %128 = tpu.matmul %127, %116, %cst_58 {dimension_numbers = #tpu.dot_dimension_numbers<[2], [1], [1], [2], [0, 0, 0, 1, 1, 2], [0], [0]>} : vector<2x8x8xf32>, vector<2x8x16xf32>, vector<2x8x16xf32> -> vector<2x8x16xf32>
    "tpu.trace_stop"() : () -> ()
    %129 = vector.shape_cast %128 : vector<2x8x16xf32> to vector<16x16xf32>
    %130 = vector.extract_strided_slice %108 {offsets = [0, 16], sizes = [16, 16], strides = [1, 1]} : vector<16x32xf32> to vector<16x16xf32>
    %131 = vector.shape_cast %130 : vector<16x16xf32> to vector<2x8x16xf32>
    %132 = vector.extract_strided_slice %109 {offsets = [0, 16], sizes = [16, 16], strides = [1, 1]} : vector<16x32xf32> to vector<16x16xf32>
    %133 = vector.shape_cast %132 : vector<16x16xf32> to vector<2x8x16xf32>
    %134 = vector.extract_strided_slice %110 {offsets = [0, 16], sizes = [16, 16], strides = [1, 1]} : vector<16x32xf32> to vector<16x16xf32>
    %135 = vector.shape_cast %134 : vector<16x16xf32> to vector<2x8x16xf32>
    "tpu.trace_start"() <{level = 10 : i32, message = "bqd,bkd->bqk"}> : () -> ()
    %cst_59 = arith.constant dense<0.000000e+00> : vector<2x8x8xf32>
    %136 = tpu.matmul %131, %133, %cst_59 {dimension_numbers = #tpu.dot_dimension_numbers<[2], [2], [1], [1], [0, 0, 0, 1, 1, 1], [0], [0]>} : vector<2x8x16xf32>, vector<2x8x16xf32>, vector<2x8x8xf32> -> vector<2x8x8xf32>
    "tpu.trace_stop"() : () -> ()
    %137 = arith.addf %136, %3 : vector<2x8x8xf32>
    %cst_60 = arith.constant dense<0xFF800000> : vector<2x8xf32>
    %138 = vector.multi_reduction <maximumf>, %137, %cst_60 [2] : vector<2x8x8xf32> to vector<2x8xf32>
    %139 = vector.shape_cast %138 : vector<2x8xf32> to vector<2x8x1xf32>
    %140 = vector.broadcast %139 : vector<2x8x1xf32> to vector<2x8x8xf32>
    %141 = arith.subf %137, %140 : vector<2x8x8xf32>
    %142 = math.exp %141 : vector<2x8x8xf32>
    %cst_61 = arith.constant dense<0.000000e+00> : vector<2x8xf32>
    %143 = vector.multi_reduction <add>, %142, %cst_61 [2] : vector<2x8x8xf32> to vector<2x8xf32>
    %144 = vector.shape_cast %143 : vector<2x8xf32> to vector<2x8x1xf32>
    %145 = vector.broadcast %144 : vector<2x8x1xf32> to vector<2x8x8xf32>
    %146 = arith.divf %142, %145 : vector<2x8x8xf32>
    "tpu.trace_start"() <{level = 10 : i32, message = "bqk,bkd->bqd"}> : () -> ()
    %cst_62 = arith.constant dense<0.000000e+00> : vector<2x8x16xf32>
    %147 = tpu.matmul %146, %135, %cst_62 {dimension_numbers = #tpu.dot_dimension_numbers<[2], [1], [1], [2], [0, 0, 0, 1, 1, 2], [0], [0]>} : vector<2x8x8xf32>, vector<2x8x16xf32>, vector<2x8x16xf32> -> vector<2x8x16xf32>
    "tpu.trace_stop"() : () -> ()
    %148 = vector.shape_cast %147 : vector<2x8x16xf32> to vector<16x16xf32>
    %149 = tpu.concatenate %129, %148 in 1 : vector<16x16xf32>, vector<16x16xf32> -> vector<16x32xf32>
    %cst_63 = arith.constant dense<0.000000e+00> : vector<16x32xf32>
    %150 = tpu.matmul %149, %91, %cst_63 {dimension_numbers = #tpu.dot_dimension_numbers<[1], [0], [0], [1], [0, 0, 1, 1], [], []>} : vector<16x32xf32>, vector<32x32xf32>, vector<16x32xf32> -> vector<16x32xf32>
    %151 = arith.addf %89, %150 : vector<16x32xf32>
    %c3 = arith.constant 3 : index
    %c0_64 = arith.constant 0 : index
    %152 = vector.load %arg5[%c3, %c0_64] : memref<12x32xf32, #tpu.memory_space<vmem>>, vector<1x32xf32>
    %153 = arith.mulf %151, %151 : vector<16x32xf32>
    %cst_65 = arith.constant dense<0.000000e+00> : vector<16xf32>
    %154 = vector.multi_reduction <add>, %153, %cst_65 [1] : vector<16x32xf32> to vector<16xf32>
    %155 = vector.shape_cast %154 : vector<16xf32> to vector<16x1xf32>
    %cst_66 = arith.constant 3.200000e+01 : f32
    %156 = vector.broadcast %cst_66 : f32 to vector<16x1xf32>
    %157 = arith.divf %155, %156 : vector<16x1xf32>
    %cst_67 = arith.constant 9.99999997E-7 : f32
    %158 = vector.broadcast %cst_67 : f32 to vector<16x1xf32>
    %159 = arith.addf %157, %158 : vector<16x1xf32>
    %160 = math.rsqrt %159 : vector<16x1xf32>
    %161 = vector.broadcast %160 : vector<16x1xf32> to vector<16x32xf32>
    %162 = arith.mulf %151, %161 : vector<16x32xf32>
    %163 = vector.broadcast %152 : vector<1x32xf32> to vector<16x32xf32>
    %164 = arith.mulf %162, %163 : vector<16x32xf32>
    %cst_68 = arith.constant dense<0.000000e+00> : vector<16x64xf32>
    %165 = tpu.matmul %164, %92, %cst_68 {dimension_numbers = #tpu.dot_dimension_numbers<[1], [0], [0], [1], [0, 0, 1, 1], [], []>} : vector<16x32xf32>, vector<32x64xf32>, vector<16x64xf32> -> vector<16x64xf32>
    %cst_69 = arith.constant 0.000000e+00 : f32
    %166 = vector.broadcast %cst_69 : f32 to vector<16x64xf32>
    %167 = arith.maximumf %165, %166 : vector<16x64xf32>
    %cst_70 = arith.constant dense<0.000000e+00> : vector<16x32xf32>
    %168 = tpu.matmul %167, %93, %cst_70 {dimension_numbers = #tpu.dot_dimension_numbers<[1], [0], [0], [1], [0, 0, 1, 1], [], []>} : vector<16x64xf32>, vector<64x32xf32>, vector<16x32xf32> -> vector<16x32xf32>
    %169 = arith.addf %151, %168 : vector<16x32xf32>
    %c4 = arith.constant 4 : index
    %c0_71 = arith.constant 0 : index
    %170 = vector.load %arg5[%c4, %c0_71] : memref<12x32xf32, #tpu.memory_space<vmem>>, vector<1x32xf32>
    %171 = arith.mulf %169, %169 : vector<16x32xf32>
    %cst_72 = arith.constant dense<0.000000e+00> : vector<16xf32>
    %172 = vector.multi_reduction <add>, %171, %cst_72 [1] : vector<16x32xf32> to vector<16xf32>
    %173 = vector.shape_cast %172 : vector<16xf32> to vector<16x1xf32>
    %cst_73 = arith.constant 3.200000e+01 : f32
    %174 = vector.broadcast %cst_73 : f32 to vector<16x1xf32>
    %175 = arith.divf %173, %174 : vector<16x1xf32>
    %cst_74 = arith.constant 9.99999997E-7 : f32
    %176 = vector.broadcast %cst_74 : f32 to vector<16x1xf32>
    %177 = arith.addf %175, %176 : vector<16x1xf32>
    %178 = math.rsqrt %177 : vector<16x1xf32>
    %179 = vector.broadcast %178 : vector<16x1xf32> to vector<16x32xf32>
    %180 = arith.mulf %169, %179 : vector<16x32xf32>
    %181 = vector.broadcast %170 : vector<1x32xf32> to vector<16x32xf32>
    %182 = arith.mulf %180, %181 : vector<16x32xf32>
    %c16 = arith.constant 16 : index
    %c0_75 = arith.constant 0 : index
    %183 = vector.load %arg1[%c16, %c0_75] : memref<32x32xf32, #tpu.memory_space<vmem>>, vector<16x32xf32>
    %c0_76 = arith.constant 0 : index
    %c640 = arith.constant 640 : index
    %184 = vector.load %arg6[%c0_76, %c640] : memref<32x1280xf32, #tpu.memory_space<vmem>>, vector<32x96xf32>
    %c0_77 = arith.constant 0 : index
    %c736 = arith.constant 736 : index
    %185 = vector.load %arg6[%c0_77, %c736] : memref<32x1280xf32, #tpu.memory_space<vmem>>, vector<32x32xf32>
    %c0_78 = arith.constant 0 : index
    %c768 = arith.constant 768 : index
    %186 = vector.load %arg6[%c0_78, %c768] : memref<32x1280xf32, #tpu.memory_space<vmem>>, vector<32x32xf32>
    %c0_79 = arith.constant 0 : index
    %c800 = arith.constant 800 : index
    %187 = vector.load %arg6[%c0_79, %c800] : memref<32x1280xf32, #tpu.memory_space<vmem>>, vector<32x64xf32>
    %c0_80 = arith.constant 0 : index
    %c864 = arith.constant 864 : index
    %188 = vector.load %arg6[%c0_80, %c864] : memref<32x1280xf32, #tpu.memory_space<vmem>>, vector<32x32xf32>
    %c0_81 = arith.constant 0 : index
    %c896 = arith.constant 896 : index
    %189 = vector.load %arg6[%c0_81, %c896] : memref<32x1280xf32, #tpu.memory_space<vmem>>, vector<32x64xf32>
    %c0_82 = arith.constant 0 : index
    %c64 = arith.constant 64 : index
    %190 = vector.load %arg7[%c0_82, %c64] : memref<64x128xf32, #tpu.memory_space<vmem>>, vector<64x32xf32>
    %c5 = arith.constant 5 : index
    %c0_83 = arith.constant 0 : index
    %191 = vector.load %arg5[%c5, %c0_83] : memref<12x32xf32, #tpu.memory_space<vmem>>, vector<1x32xf32>
    %192 = arith.mulf %183, %183 : vector<16x32xf32>
    %cst_84 = arith.constant dense<0.000000e+00> : vector<16xf32>
    %193 = vector.multi_reduction <add>, %192, %cst_84 [1] : vector<16x32xf32> to vector<16xf32>
    %194 = vector.shape_cast %193 : vector<16xf32> to vector<16x1xf32>
    %cst_85 = arith.constant 3.200000e+01 : f32
    %195 = vector.broadcast %cst_85 : f32 to vector<16x1xf32>
    %196 = arith.divf %194, %195 : vector<16x1xf32>
    %cst_86 = arith.constant 9.99999997E-7 : f32
    %197 = vector.broadcast %cst_86 : f32 to vector<16x1xf32>
    %198 = arith.addf %196, %197 : vector<16x1xf32>
    %199 = math.rsqrt %198 : vector<16x1xf32>
    %200 = vector.broadcast %199 : vector<16x1xf32> to vector<16x32xf32>
    %201 = arith.mulf %183, %200 : vector<16x32xf32>
    %202 = vector.broadcast %191 : vector<1x32xf32> to vector<16x32xf32>
    %203 = arith.mulf %201, %202 : vector<16x32xf32>
    %cst_87 = arith.constant dense<0.000000e+00> : vector<16x96xf32>
    %204 = tpu.matmul %203, %184, %cst_87 {dimension_numbers = #tpu.dot_dimension_numbers<[1], [0], [0], [1], [0, 0, 1, 1], [], []>} : vector<16x32xf32>, vector<32x96xf32>, vector<16x96xf32> -> vector<16x96xf32>
    %205 = vector.extract_strided_slice %204 {offsets = [0, 0], sizes = [16, 32], strides = [1, 1]} : vector<16x96xf32> to vector<16x32xf32>
    %206 = vector.extract_strided_slice %204 {offsets = [0, 32], sizes = [16, 32], strides = [1, 1]} : vector<16x96xf32> to vector<16x32xf32>
    %207 = vector.extract_strided_slice %204 {offsets = [0, 64], sizes = [16, 32], strides = [1, 1]} : vector<16x96xf32> to vector<16x32xf32>
    %208 = vector.extract_strided_slice %205 {offsets = [0, 0], sizes = [16, 16], strides = [1, 1]} : vector<16x32xf32> to vector<16x16xf32>
    %209 = vector.shape_cast %208 : vector<16x16xf32> to vector<2x8x16xf32>
    %210 = vector.extract_strided_slice %206 {offsets = [0, 0], sizes = [16, 16], strides = [1, 1]} : vector<16x32xf32> to vector<16x16xf32>
    %211 = vector.shape_cast %210 : vector<16x16xf32> to vector<2x8x16xf32>
    %212 = vector.extract_strided_slice %207 {offsets = [0, 0], sizes = [16, 16], strides = [1, 1]} : vector<16x32xf32> to vector<16x16xf32>
    %213 = vector.shape_cast %212 : vector<16x16xf32> to vector<2x8x16xf32>
    "tpu.trace_start"() <{level = 10 : i32, message = "bqd,bkd->bqk"}> : () -> ()
    %cst_88 = arith.constant dense<0.000000e+00> : vector<2x8x8xf32>
    %214 = tpu.matmul %209, %211, %cst_88 {dimension_numbers = #tpu.dot_dimension_numbers<[2], [2], [1], [1], [0, 0, 0, 1, 1, 1], [0], [0]>} : vector<2x8x16xf32>, vector<2x8x16xf32>, vector<2x8x8xf32> -> vector<2x8x8xf32>
    "tpu.trace_stop"() : () -> ()
    %215 = arith.addf %214, %5 : vector<2x8x8xf32>
    %cst_89 = arith.constant dense<0xFF800000> : vector<2x8xf32>
    %216 = vector.multi_reduction <maximumf>, %215, %cst_89 [2] : vector<2x8x8xf32> to vector<2x8xf32>
    %217 = vector.shape_cast %216 : vector<2x8xf32> to vector<2x8x1xf32>
    %218 = vector.broadcast %217 : vector<2x8x1xf32> to vector<2x8x8xf32>
    %219 = arith.subf %215, %218 : vector<2x8x8xf32>
    %220 = math.exp %219 : vector<2x8x8xf32>
    %cst_90 = arith.constant dense<0.000000e+00> : vector<2x8xf32>
    %221 = vector.multi_reduction <add>, %220, %cst_90 [2] : vector<2x8x8xf32> to vector<2x8xf32>
    %222 = vector.shape_cast %221 : vector<2x8xf32> to vector<2x8x1xf32>
    %223 = vector.broadcast %222 : vector<2x8x1xf32> to vector<2x8x8xf32>
    %224 = arith.divf %220, %223 : vector<2x8x8xf32>
    "tpu.trace_start"() <{level = 10 : i32, message = "bqk,bkd->bqd"}> : () -> ()
    %cst_91 = arith.constant dense<0.000000e+00> : vector<2x8x16xf32>
    %225 = tpu.matmul %224, %213, %cst_91 {dimension_numbers = #tpu.dot_dimension_numbers<[2], [1], [1], [2], [0, 0, 0, 1, 1, 2], [0], [0]>} : vector<2x8x8xf32>, vector<2x8x16xf32>, vector<2x8x16xf32> -> vector<2x8x16xf32>
    "tpu.trace_stop"() : () -> ()
    %226 = vector.shape_cast %225 : vector<2x8x16xf32> to vector<16x16xf32>
    %227 = vector.extract_strided_slice %205 {offsets = [0, 16], sizes = [16, 16], strides = [1, 1]} : vector<16x32xf32> to vector<16x16xf32>
    %228 = vector.shape_cast %227 : vector<16x16xf32> to vector<2x8x16xf32>
    %229 = vector.extract_strided_slice %206 {offsets = [0, 16], sizes = [16, 16], strides = [1, 1]} : vector<16x32xf32> to vector<16x16xf32>
    %230 = vector.shape_cast %229 : vector<16x16xf32> to vector<2x8x16xf32>
    %231 = vector.extract_strided_slice %207 {offsets = [0, 16], sizes = [16, 16], strides = [1, 1]} : vector<16x32xf32> to vector<16x16xf32>
    %232 = vector.shape_cast %231 : vector<16x16xf32> to vector<2x8x16xf32>
    "tpu.trace_start"() <{level = 10 : i32, message = "bqd,bkd->bqk"}> : () -> ()
    %cst_92 = arith.constant dense<0.000000e+00> : vector<2x8x8xf32>
    %233 = tpu.matmul %228, %230, %cst_92 {dimension_numbers = #tpu.dot_dimension_numbers<[2], [2], [1], [1], [0, 0, 0, 1, 1, 1], [0], [0]>} : vector<2x8x16xf32>, vector<2x8x16xf32>, vector<2x8x8xf32> -> vector<2x8x8xf32>
    "tpu.trace_stop"() : () -> ()
    %234 = arith.addf %233, %7 : vector<2x8x8xf32>
    %cst_93 = arith.constant dense<0xFF800000> : vector<2x8xf32>
    %235 = vector.multi_reduction <maximumf>, %234, %cst_93 [2] : vector<2x8x8xf32> to vector<2x8xf32>
    %236 = vector.shape_cast %235 : vector<2x8xf32> to vector<2x8x1xf32>
    %237 = vector.broadcast %236 : vector<2x8x1xf32> to vector<2x8x8xf32>
    %238 = arith.subf %234, %237 : vector<2x8x8xf32>
    %239 = math.exp %238 : vector<2x8x8xf32>
    %cst_94 = arith.constant dense<0.000000e+00> : vector<2x8xf32>
    %240 = vector.multi_reduction <add>, %239, %cst_94 [2] : vector<2x8x8xf32> to vector<2x8xf32>
    %241 = vector.shape_cast %240 : vector<2x8xf32> to vector<2x8x1xf32>
    %242 = vector.broadcast %241 : vector<2x8x1xf32> to vector<2x8x8xf32>
    %243 = arith.divf %239, %242 : vector<2x8x8xf32>
    "tpu.trace_start"() <{level = 10 : i32, message = "bqk,bkd->bqd"}> : () -> ()
    %cst_95 = arith.constant dense<0.000000e+00> : vector<2x8x16xf32>
    %244 = tpu.matmul %243, %232, %cst_95 {dimension_numbers = #tpu.dot_dimension_numbers<[2], [1], [1], [2], [0, 0, 0, 1, 1, 2], [0], [0]>} : vector<2x8x8xf32>, vector<2x8x16xf32>, vector<2x8x16xf32> -> vector<2x8x16xf32>
    "tpu.trace_stop"() : () -> ()
    %245 = vector.shape_cast %244 : vector<2x8x16xf32> to vector<16x16xf32>
    %246 = tpu.concatenate %226, %245 in 1 : vector<16x16xf32>, vector<16x16xf32> -> vector<16x32xf32>
    %cst_96 = arith.constant dense<0.000000e+00> : vector<16x32xf32>
    %247 = tpu.matmul %246, %185, %cst_96 {dimension_numbers = #tpu.dot_dimension_numbers<[1], [0], [0], [1], [0, 0, 1, 1], [], []>} : vector<16x32xf32>, vector<32x32xf32>, vector<16x32xf32> -> vector<16x32xf32>
    %248 = arith.addf %183, %247 : vector<16x32xf32>
    %c6 = arith.constant 6 : index
    %c0_97 = arith.constant 0 : index
    %249 = vector.load %arg5[%c6, %c0_97] : memref<12x32xf32, #tpu.memory_space<vmem>>, vector<1x32xf32>
    %250 = arith.mulf %248, %248 : vector<16x32xf32>
    %cst_98 = arith.constant dense<0.000000e+00> : vector<16xf32>
    %251 = vector.multi_reduction <add>, %250, %cst_98 [1] : vector<16x32xf32> to vector<16xf32>
    %252 = vector.shape_cast %251 : vector<16xf32> to vector<16x1xf32>
    %cst_99 = arith.constant 3.200000e+01 : f32
    %253 = vector.broadcast %cst_99 : f32 to vector<16x1xf32>
    %254 = arith.divf %252, %253 : vector<16x1xf32>
    %cst_100 = arith.constant 9.99999997E-7 : f32
    %255 = vector.broadcast %cst_100 : f32 to vector<16x1xf32>
    %256 = arith.addf %254, %255 : vector<16x1xf32>
    %257 = math.rsqrt %256 : vector<16x1xf32>
    %258 = vector.broadcast %257 : vector<16x1xf32> to vector<16x32xf32>
    %259 = arith.mulf %248, %258 : vector<16x32xf32>
    %260 = vector.broadcast %249 : vector<1x32xf32> to vector<16x32xf32>
    %261 = arith.mulf %259, %260 : vector<16x32xf32>
    %cst_101 = arith.constant dense<0.000000e+00> : vector<16x32xf32>
    %262 = tpu.matmul %261, %186, %cst_101 {dimension_numbers = #tpu.dot_dimension_numbers<[1], [0], [0], [1], [0, 0, 1, 1], [], []>} : vector<16x32xf32>, vector<32x32xf32>, vector<16x32xf32> -> vector<16x32xf32>
    %cst_102 = arith.constant dense<0.000000e+00> : vector<16x64xf32>
    %263 = tpu.matmul %182, %187, %cst_102 {dimension_numbers = #tpu.dot_dimension_numbers<[1], [0], [0], [1], [0, 0, 1, 1], [], []>} : vector<16x32xf32>, vector<32x64xf32>, vector<16x64xf32> -> vector<16x64xf32>
    %264 = vector.extract_strided_slice %263 {offsets = [0, 0], sizes = [16, 32], strides = [1, 1]} : vector<16x64xf32> to vector<16x32xf32>
    %265 = vector.extract_strided_slice %263 {offsets = [0, 32], sizes = [16, 32], strides = [1, 1]} : vector<16x64xf32> to vector<16x32xf32>
    %266 = vector.extract_strided_slice %262 {offsets = [0, 0], sizes = [16, 16], strides = [1, 1]} : vector<16x32xf32> to vector<16x16xf32>
    %267 = vector.shape_cast %266 : vector<16x16xf32> to vector<2x8x16xf32>
    %268 = vector.extract_strided_slice %264 {offsets = [0, 0], sizes = [16, 16], strides = [1, 1]} : vector<16x32xf32> to vector<16x16xf32>
    %269 = vector.shape_cast %268 : vector<16x16xf32> to vector<2x8x16xf32>
    %270 = vector.extract_strided_slice %265 {offsets = [0, 0], sizes = [16, 16], strides = [1, 1]} : vector<16x32xf32> to vector<16x16xf32>
    %271 = vector.shape_cast %270 : vector<16x16xf32> to vector<2x8x16xf32>
    "tpu.trace_start"() <{level = 10 : i32, message = "bqd,bkd->bqk"}> : () -> ()
    %cst_103 = arith.constant dense<0.000000e+00> : vector<2x8x8xf32>
    %272 = tpu.matmul %267, %269, %cst_103 {dimension_numbers = #tpu.dot_dimension_numbers<[2], [2], [1], [1], [0, 0, 0, 1, 1, 1], [0], [0]>} : vector<2x8x16xf32>, vector<2x8x16xf32>, vector<2x8x8xf32> -> vector<2x8x8xf32>
    "tpu.trace_stop"() : () -> ()
    %273 = vector.broadcast %8 : vector<2x1x8xf32> to vector<2x8x8xf32>
    %274 = arith.addf %272, %273 : vector<2x8x8xf32>
    %cst_104 = arith.constant dense<0xFF800000> : vector<2x8xf32>
    %275 = vector.multi_reduction <maximumf>, %274, %cst_104 [2] : vector<2x8x8xf32> to vector<2x8xf32>
    %276 = vector.shape_cast %275 : vector<2x8xf32> to vector<2x8x1xf32>
    %277 = vector.broadcast %276 : vector<2x8x1xf32> to vector<2x8x8xf32>
    %278 = arith.subf %274, %277 : vector<2x8x8xf32>
    %279 = math.exp %278 : vector<2x8x8xf32>
    %cst_105 = arith.constant dense<0.000000e+00> : vector<2x8xf32>
    %280 = vector.multi_reduction <add>, %279, %cst_105 [2] : vector<2x8x8xf32> to vector<2x8xf32>
    %281 = vector.shape_cast %280 : vector<2x8xf32> to vector<2x8x1xf32>
    %282 = vector.broadcast %281 : vector<2x8x1xf32> to vector<2x8x8xf32>
    %283 = arith.divf %279, %282 : vector<2x8x8xf32>
    "tpu.trace_start"() <{level = 10 : i32, message = "bqk,bkd->bqd"}> : () -> ()
    %cst_106 = arith.constant dense<0.000000e+00> : vector<2x8x16xf32>
    %284 = tpu.matmul %283, %271, %cst_106 {dimension_numbers = #tpu.dot_dimension_numbers<[2], [1], [1], [2], [0, 0, 0, 1, 1, 2], [0], [0]>} : vector<2x8x8xf32>, vector<2x8x16xf32>, vector<2x8x16xf32> -> vector<2x8x16xf32>
    "tpu.trace_stop"() : () -> ()
    %285 = vector.shape_cast %284 : vector<2x8x16xf32> to vector<16x16xf32>
    %286 = vector.extract_strided_slice %262 {offsets = [0, 16], sizes = [16, 16], strides = [1, 1]} : vector<16x32xf32> to vector<16x16xf32>
    %287 = vector.shape_cast %286 : vector<16x16xf32> to vector<2x8x16xf32>
    %288 = vector.extract_strided_slice %264 {offsets = [0, 16], sizes = [16, 16], strides = [1, 1]} : vector<16x32xf32> to vector<16x16xf32>
    %289 = vector.shape_cast %288 : vector<16x16xf32> to vector<2x8x16xf32>
    %290 = vector.extract_strided_slice %265 {offsets = [0, 16], sizes = [16, 16], strides = [1, 1]} : vector<16x32xf32> to vector<16x16xf32>
    %291 = vector.shape_cast %290 : vector<16x16xf32> to vector<2x8x16xf32>
    "tpu.trace_start"() <{level = 10 : i32, message = "bqd,bkd->bqk"}> : () -> ()
    %cst_107 = arith.constant dense<0.000000e+00> : vector<2x8x8xf32>
    %292 = tpu.matmul %287, %289, %cst_107 {dimension_numbers = #tpu.dot_dimension_numbers<[2], [2], [1], [1], [0, 0, 0, 1, 1, 1], [0], [0]>} : vector<2x8x16xf32>, vector<2x8x16xf32>, vector<2x8x8xf32> -> vector<2x8x8xf32>
    "tpu.trace_stop"() : () -> ()
    %293 = vector.broadcast %8 : vector<2x1x8xf32> to vector<2x8x8xf32>
    %294 = arith.addf %292, %293 : vector<2x8x8xf32>
    %cst_108 = arith.constant dense<0xFF800000> : vector<2x8xf32>
    %295 = vector.multi_reduction <maximumf>, %294, %cst_108 [2] : vector<2x8x8xf32> to vector<2x8xf32>
    %296 = vector.shape_cast %295 : vector<2x8xf32> to vector<2x8x1xf32>
    %297 = vector.broadcast %296 : vector<2x8x1xf32> to vector<2x8x8xf32>
    %298 = arith.subf %294, %297 : vector<2x8x8xf32>
    %299 = math.exp %298 : vector<2x8x8xf32>
    %cst_109 = arith.constant dense<0.000000e+00> : vector<2x8xf32>
    %300 = vector.multi_reduction <add>, %299, %cst_109 [2] : vector<2x8x8xf32> to vector<2x8xf32>
    %301 = vector.shape_cast %300 : vector<2x8xf32> to vector<2x8x1xf32>
    %302 = vector.broadcast %301 : vector<2x8x1xf32> to vector<2x8x8xf32>
    %303 = arith.divf %299, %302 : vector<2x8x8xf32>
    "tpu.trace_start"() <{level = 10 : i32, message = "bqk,bkd->bqd"}> : () -> ()
    %cst_110 = arith.constant dense<0.000000e+00> : vector<2x8x16xf32>
    %304 = tpu.matmul %303, %291, %cst_110 {dimension_numbers = #tpu.dot_dimension_numbers<[2], [1], [1], [2], [0, 0, 0, 1, 1, 2], [0], [0]>} : vector<2x8x8xf32>, vector<2x8x16xf32>, vector<2x8x16xf32> -> vector<2x8x16xf32>
    "tpu.trace_stop"() : () -> ()
    %305 = vector.shape_cast %304 : vector<2x8x16xf32> to vector<16x16xf32>
    %306 = tpu.concatenate %285, %305 in 1 : vector<16x16xf32>, vector<16x16xf32> -> vector<16x32xf32>
    %cst_111 = arith.constant dense<0.000000e+00> : vector<16x32xf32>
    %307 = tpu.matmul %306, %188, %cst_111 {dimension_numbers = #tpu.dot_dimension_numbers<[1], [0], [0], [1], [0, 0, 1, 1], [], []>} : vector<16x32xf32>, vector<32x32xf32>, vector<16x32xf32> -> vector<16x32xf32>
    %308 = arith.addf %248, %307 : vector<16x32xf32>
    %c7 = arith.constant 7 : index
    %c0_112 = arith.constant 0 : index
    %309 = vector.load %arg5[%c7, %c0_112] : memref<12x32xf32, #tpu.memory_space<vmem>>, vector<1x32xf32>
    %310 = arith.mulf %308, %308 : vector<16x32xf32>
    %cst_113 = arith.constant dense<0.000000e+00> : vector<16xf32>
    %311 = vector.multi_reduction <add>, %310, %cst_113 [1] : vector<16x32xf32> to vector<16xf32>
    %312 = vector.shape_cast %311 : vector<16xf32> to vector<16x1xf32>
    %cst_114 = arith.constant 3.200000e+01 : f32
    %313 = vector.broadcast %cst_114 : f32 to vector<16x1xf32>
    %314 = arith.divf %312, %313 : vector<16x1xf32>
    %cst_115 = arith.constant 9.99999997E-7 : f32
    %315 = vector.broadcast %cst_115 : f32 to vector<16x1xf32>
    %316 = arith.addf %314, %315 : vector<16x1xf32>
    %317 = math.rsqrt %316 : vector<16x1xf32>
    %318 = vector.broadcast %317 : vector<16x1xf32> to vector<16x32xf32>
    %319 = arith.mulf %308, %318 : vector<16x32xf32>
    %320 = vector.broadcast %309 : vector<1x32xf32> to vector<16x32xf32>
    %321 = arith.mulf %319, %320 : vector<16x32xf32>
    %cst_116 = arith.constant dense<0.000000e+00> : vector<16x64xf32>
    %322 = tpu.matmul %321, %189, %cst_116 {dimension_numbers = #tpu.dot_dimension_numbers<[1], [0], [0], [1], [0, 0, 1, 1], [], []>} : vector<16x32xf32>, vector<32x64xf32>, vector<16x64xf32> -> vector<16x64xf32>
    %cst_117 = arith.constant 0.000000e+00 : f32
    %323 = vector.broadcast %cst_117 : f32 to vector<16x64xf32>
    %324 = arith.maximumf %322, %323 : vector<16x64xf32>
    %cst_118 = arith.constant dense<0.000000e+00> : vector<16x32xf32>
    %325 = tpu.matmul %324, %190, %cst_118 {dimension_numbers = #tpu.dot_dimension_numbers<[1], [0], [0], [1], [0, 0, 1, 1], [], []>} : vector<16x64xf32>, vector<64x32xf32>, vector<16x32xf32> -> vector<16x32xf32>
    %326 = arith.addf %308, %325 : vector<16x32xf32>
    %c0_119 = arith.constant 0 : index
    %c960 = arith.constant 960 : index
    %327 = vector.load %arg6[%c0_119, %c960] : memref<32x1280xf32, #tpu.memory_space<vmem>>, vector<32x96xf32>
    %c0_120 = arith.constant 0 : index
    %c1056 = arith.constant 1056 : index
    %328 = vector.load %arg6[%c0_120, %c1056] : memref<32x1280xf32, #tpu.memory_space<vmem>>, vector<32x32xf32>
    %c0_121 = arith.constant 0 : index
    %c1088 = arith.constant 1088 : index
    %329 = vector.load %arg6[%c0_121, %c1088] : memref<32x1280xf32, #tpu.memory_space<vmem>>, vector<32x32xf32>
    %c0_122 = arith.constant 0 : index
    %c1120 = arith.constant 1120 : index
    %330 = vector.load %arg6[%c0_122, %c1120] : memref<32x1280xf32, #tpu.memory_space<vmem>>, vector<32x64xf32>
    %c0_123 = arith.constant 0 : index
    %c1184 = arith.constant 1184 : index
    %331 = vector.load %arg6[%c0_123, %c1184] : memref<32x1280xf32, #tpu.memory_space<vmem>>, vector<32x32xf32>
    %c0_124 = arith.constant 0 : index
    %c1216 = arith.constant 1216 : index
    %332 = vector.load %arg6[%c0_124, %c1216] : memref<32x1280xf32, #tpu.memory_space<vmem>>, vector<32x64xf32>
    %c0_125 = arith.constant 0 : index
    %c96 = arith.constant 96 : index
    %333 = vector.load %arg7[%c0_125, %c96] : memref<64x128xf32, #tpu.memory_space<vmem>>, vector<64x32xf32>
    %c8 = arith.constant 8 : index
    %c0_126 = arith.constant 0 : index
    %334 = vector.load %arg5[%c8, %c0_126] : memref<12x32xf32, #tpu.memory_space<vmem>>, vector<1x32xf32>
    %335 = arith.mulf %326, %326 : vector<16x32xf32>
    %cst_127 = arith.constant dense<0.000000e+00> : vector<16xf32>
    %336 = vector.multi_reduction <add>, %335, %cst_127 [1] : vector<16x32xf32> to vector<16xf32>
    %337 = vector.shape_cast %336 : vector<16xf32> to vector<16x1xf32>
    %cst_128 = arith.constant 3.200000e+01 : f32
    %338 = vector.broadcast %cst_128 : f32 to vector<16x1xf32>
    %339 = arith.divf %337, %338 : vector<16x1xf32>
    %cst_129 = arith.constant 9.99999997E-7 : f32
    %340 = vector.broadcast %cst_129 : f32 to vector<16x1xf32>
    %341 = arith.addf %339, %340 : vector<16x1xf32>
    %342 = math.rsqrt %341 : vector<16x1xf32>
    %343 = vector.broadcast %342 : vector<16x1xf32> to vector<16x32xf32>
    %344 = arith.mulf %326, %343 : vector<16x32xf32>
    %345 = vector.broadcast %334 : vector<1x32xf32> to vector<16x32xf32>
    %346 = arith.mulf %344, %345 : vector<16x32xf32>
    %cst_130 = arith.constant dense<0.000000e+00> : vector<16x96xf32>
    %347 = tpu.matmul %346, %327, %cst_130 {dimension_numbers = #tpu.dot_dimension_numbers<[1], [0], [0], [1], [0, 0, 1, 1], [], []>} : vector<16x32xf32>, vector<32x96xf32>, vector<16x96xf32> -> vector<16x96xf32>
    %348 = vector.extract_strided_slice %347 {offsets = [0, 0], sizes = [16, 32], strides = [1, 1]} : vector<16x96xf32> to vector<16x32xf32>
    %349 = vector.extract_strided_slice %347 {offsets = [0, 32], sizes = [16, 32], strides = [1, 1]} : vector<16x96xf32> to vector<16x32xf32>
    %350 = vector.extract_strided_slice %347 {offsets = [0, 64], sizes = [16, 32], strides = [1, 1]} : vector<16x96xf32> to vector<16x32xf32>
    %351 = vector.extract_strided_slice %348 {offsets = [0, 0], sizes = [16, 16], strides = [1, 1]} : vector<16x32xf32> to vector<16x16xf32>
    %352 = vector.shape_cast %351 : vector<16x16xf32> to vector<2x8x16xf32>
    %353 = vector.extract_strided_slice %349 {offsets = [0, 0], sizes = [16, 16], strides = [1, 1]} : vector<16x32xf32> to vector<16x16xf32>
    %354 = vector.shape_cast %353 : vector<16x16xf32> to vector<2x8x16xf32>
    %355 = vector.extract_strided_slice %350 {offsets = [0, 0], sizes = [16, 16], strides = [1, 1]} : vector<16x32xf32> to vector<16x16xf32>
    %356 = vector.shape_cast %355 : vector<16x16xf32> to vector<2x8x16xf32>
    "tpu.trace_start"() <{level = 10 : i32, message = "bqd,bkd->bqk"}> : () -> ()
    %cst_131 = arith.constant dense<0.000000e+00> : vector<2x8x8xf32>
    %357 = tpu.matmul %352, %354, %cst_131 {dimension_numbers = #tpu.dot_dimension_numbers<[2], [2], [1], [1], [0, 0, 0, 1, 1, 1], [0], [0]>} : vector<2x8x16xf32>, vector<2x8x16xf32>, vector<2x8x8xf32> -> vector<2x8x8xf32>
    "tpu.trace_stop"() : () -> ()
    %358 = arith.addf %357, %5 : vector<2x8x8xf32>
    %cst_132 = arith.constant dense<0xFF800000> : vector<2x8xf32>
    %359 = vector.multi_reduction <maximumf>, %358, %cst_132 [2] : vector<2x8x8xf32> to vector<2x8xf32>
    %360 = vector.shape_cast %359 : vector<2x8xf32> to vector<2x8x1xf32>
    %361 = vector.broadcast %360 : vector<2x8x1xf32> to vector<2x8x8xf32>
    %362 = arith.subf %358, %361 : vector<2x8x8xf32>
    %363 = math.exp %362 : vector<2x8x8xf32>
    %cst_133 = arith.constant dense<0.000000e+00> : vector<2x8xf32>
    %364 = vector.multi_reduction <add>, %363, %cst_133 [2] : vector<2x8x8xf32> to vector<2x8xf32>
    %365 = vector.shape_cast %364 : vector<2x8xf32> to vector<2x8x1xf32>
    %366 = vector.broadcast %365 : vector<2x8x1xf32> to vector<2x8x8xf32>
    %367 = arith.divf %363, %366 : vector<2x8x8xf32>
    "tpu.trace_start"() <{level = 10 : i32, message = "bqk,bkd->bqd"}> : () -> ()
    %cst_134 = arith.constant dense<0.000000e+00> : vector<2x8x16xf32>
    %368 = tpu.matmul %367, %356, %cst_134 {dimension_numbers = #tpu.dot_dimension_numbers<[2], [1], [1], [2], [0, 0, 0, 1, 1, 2], [0], [0]>} : vector<2x8x8xf32>, vector<2x8x16xf32>, vector<2x8x16xf32> -> vector<2x8x16xf32>
    "tpu.trace_stop"() : () -> ()
    %369 = vector.shape_cast %368 : vector<2x8x16xf32> to vector<16x16xf32>
    %370 = vector.extract_strided_slice %348 {offsets = [0, 16], sizes = [16, 16], strides = [1, 1]} : vector<16x32xf32> to vector<16x16xf32>
    %371 = vector.shape_cast %370 : vector<16x16xf32> to vector<2x8x16xf32>
    %372 = vector.extract_strided_slice %349 {offsets = [0, 16], sizes = [16, 16], strides = [1, 1]} : vector<16x32xf32> to vector<16x16xf32>
    %373 = vector.shape_cast %372 : vector<16x16xf32> to vector<2x8x16xf32>
    %374 = vector.extract_strided_slice %350 {offsets = [0, 16], sizes = [16, 16], strides = [1, 1]} : vector<16x32xf32> to vector<16x16xf32>
    %375 = vector.shape_cast %374 : vector<16x16xf32> to vector<2x8x16xf32>
    "tpu.trace_start"() <{level = 10 : i32, message = "bqd,bkd->bqk"}> : () -> ()
    %cst_135 = arith.constant dense<0.000000e+00> : vector<2x8x8xf32>
    %376 = tpu.matmul %371, %373, %cst_135 {dimension_numbers = #tpu.dot_dimension_numbers<[2], [2], [1], [1], [0, 0, 0, 1, 1, 1], [0], [0]>} : vector<2x8x16xf32>, vector<2x8x16xf32>, vector<2x8x8xf32> -> vector<2x8x8xf32>
    "tpu.trace_stop"() : () -> ()
    %377 = arith.addf %376, %7 : vector<2x8x8xf32>
    %cst_136 = arith.constant dense<0xFF800000> : vector<2x8xf32>
    %378 = vector.multi_reduction <maximumf>, %377, %cst_136 [2] : vector<2x8x8xf32> to vector<2x8xf32>
    %379 = vector.shape_cast %378 : vector<2x8xf32> to vector<2x8x1xf32>
    %380 = vector.broadcast %379 : vector<2x8x1xf32> to vector<2x8x8xf32>
    %381 = arith.subf %377, %380 : vector<2x8x8xf32>
    %382 = math.exp %381 : vector<2x8x8xf32>
    %cst_137 = arith.constant dense<0.000000e+00> : vector<2x8xf32>
    %383 = vector.multi_reduction <add>, %382, %cst_137 [2] : vector<2x8x8xf32> to vector<2x8xf32>
    %384 = vector.shape_cast %383 : vector<2x8xf32> to vector<2x8x1xf32>
    %385 = vector.broadcast %384 : vector<2x8x1xf32> to vector<2x8x8xf32>
    %386 = arith.divf %382, %385 : vector<2x8x8xf32>
    "tpu.trace_start"() <{level = 10 : i32, message = "bqk,bkd->bqd"}> : () -> ()
    %cst_138 = arith.constant dense<0.000000e+00> : vector<2x8x16xf32>
    %387 = tpu.matmul %386, %375, %cst_138 {dimension_numbers = #tpu.dot_dimension_numbers<[2], [1], [1], [2], [0, 0, 0, 1, 1, 2], [0], [0]>} : vector<2x8x8xf32>, vector<2x8x16xf32>, vector<2x8x16xf32> -> vector<2x8x16xf32>
    "tpu.trace_stop"() : () -> ()
    %388 = vector.shape_cast %387 : vector<2x8x16xf32> to vector<16x16xf32>
    %389 = tpu.concatenate %369, %388 in 1 : vector<16x16xf32>, vector<16x16xf32> -> vector<16x32xf32>
    %cst_139 = arith.constant dense<0.000000e+00> : vector<16x32xf32>
    %390 = tpu.matmul %389, %328, %cst_139 {dimension_numbers = #tpu.dot_dimension_numbers<[1], [0], [0], [1], [0, 0, 1, 1], [], []>} : vector<16x32xf32>, vector<32x32xf32>, vector<16x32xf32> -> vector<16x32xf32>
    %391 = arith.addf %326, %390 : vector<16x32xf32>
    %c9 = arith.constant 9 : index
    %c0_140 = arith.constant 0 : index
    %392 = vector.load %arg5[%c9, %c0_140] : memref<12x32xf32, #tpu.memory_space<vmem>>, vector<1x32xf32>
    %393 = arith.mulf %391, %391 : vector<16x32xf32>
    %cst_141 = arith.constant dense<0.000000e+00> : vector<16xf32>
    %394 = vector.multi_reduction <add>, %393, %cst_141 [1] : vector<16x32xf32> to vector<16xf32>
    %395 = vector.shape_cast %394 : vector<16xf32> to vector<16x1xf32>
    %cst_142 = arith.constant 3.200000e+01 : f32
    %396 = vector.broadcast %cst_142 : f32 to vector<16x1xf32>
    %397 = arith.divf %395, %396 : vector<16x1xf32>
    %cst_143 = arith.constant 9.99999997E-7 : f32
    %398 = vector.broadcast %cst_143 : f32 to vector<16x1xf32>
    %399 = arith.addf %397, %398 : vector<16x1xf32>
    %400 = math.rsqrt %399 : vector<16x1xf32>
    %401 = vector.broadcast %400 : vector<16x1xf32> to vector<16x32xf32>
    %402 = arith.mulf %391, %401 : vector<16x32xf32>
    %403 = vector.broadcast %392 : vector<1x32xf32> to vector<16x32xf32>
    %404 = arith.mulf %402, %403 : vector<16x32xf32>
    %cst_144 = arith.constant dense<0.000000e+00> : vector<16x32xf32>
    %405 = tpu.matmul %404, %329, %cst_144 {dimension_numbers = #tpu.dot_dimension_numbers<[1], [0], [0], [1], [0, 0, 1, 1], [], []>} : vector<16x32xf32>, vector<32x32xf32>, vector<16x32xf32> -> vector<16x32xf32>
    %cst_145 = arith.constant dense<0.000000e+00> : vector<16x64xf32>
    %406 = tpu.matmul %182, %330, %cst_145 {dimension_numbers = #tpu.dot_dimension_numbers<[1], [0], [0], [1], [0, 0, 1, 1], [], []>} : vector<16x32xf32>, vector<32x64xf32>, vector<16x64xf32> -> vector<16x64xf32>
    %407 = vector.extract_strided_slice %406 {offsets = [0, 0], sizes = [16, 32], strides = [1, 1]} : vector<16x64xf32> to vector<16x32xf32>
    %408 = vector.extract_strided_slice %406 {offsets = [0, 32], sizes = [16, 32], strides = [1, 1]} : vector<16x64xf32> to vector<16x32xf32>
    %409 = vector.extract_strided_slice %405 {offsets = [0, 0], sizes = [16, 16], strides = [1, 1]} : vector<16x32xf32> to vector<16x16xf32>
    %410 = vector.shape_cast %409 : vector<16x16xf32> to vector<2x8x16xf32>
    %411 = vector.extract_strided_slice %407 {offsets = [0, 0], sizes = [16, 16], strides = [1, 1]} : vector<16x32xf32> to vector<16x16xf32>
    %412 = vector.shape_cast %411 : vector<16x16xf32> to vector<2x8x16xf32>
    %413 = vector.extract_strided_slice %408 {offsets = [0, 0], sizes = [16, 16], strides = [1, 1]} : vector<16x32xf32> to vector<16x16xf32>
    %414 = vector.shape_cast %413 : vector<16x16xf32> to vector<2x8x16xf32>
    "tpu.trace_start"() <{level = 10 : i32, message = "bqd,bkd->bqk"}> : () -> ()
    %cst_146 = arith.constant dense<0.000000e+00> : vector<2x8x8xf32>
    %415 = tpu.matmul %410, %412, %cst_146 {dimension_numbers = #tpu.dot_dimension_numbers<[2], [2], [1], [1], [0, 0, 0, 1, 1, 1], [0], [0]>} : vector<2x8x16xf32>, vector<2x8x16xf32>, vector<2x8x8xf32> -> vector<2x8x8xf32>
    "tpu.trace_stop"() : () -> ()
    %416 = vector.broadcast %8 : vector<2x1x8xf32> to vector<2x8x8xf32>
    %417 = arith.addf %415, %416 : vector<2x8x8xf32>
    %cst_147 = arith.constant dense<0xFF800000> : vector<2x8xf32>
    %418 = vector.multi_reduction <maximumf>, %417, %cst_147 [2] : vector<2x8x8xf32> to vector<2x8xf32>
    %419 = vector.shape_cast %418 : vector<2x8xf32> to vector<2x8x1xf32>
    %420 = vector.broadcast %419 : vector<2x8x1xf32> to vector<2x8x8xf32>
    %421 = arith.subf %417, %420 : vector<2x8x8xf32>
    %422 = math.exp %421 : vector<2x8x8xf32>
    %cst_148 = arith.constant dense<0.000000e+00> : vector<2x8xf32>
    %423 = vector.multi_reduction <add>, %422, %cst_148 [2] : vector<2x8x8xf32> to vector<2x8xf32>
    %424 = vector.shape_cast %423 : vector<2x8xf32> to vector<2x8x1xf32>
    %425 = vector.broadcast %424 : vector<2x8x1xf32> to vector<2x8x8xf32>
    %426 = arith.divf %422, %425 : vector<2x8x8xf32>
    "tpu.trace_start"() <{level = 10 : i32, message = "bqk,bkd->bqd"}> : () -> ()
    %cst_149 = arith.constant dense<0.000000e+00> : vector<2x8x16xf32>
    %427 = tpu.matmul %426, %414, %cst_149 {dimension_numbers = #tpu.dot_dimension_numbers<[2], [1], [1], [2], [0, 0, 0, 1, 1, 2], [0], [0]>} : vector<2x8x8xf32>, vector<2x8x16xf32>, vector<2x8x16xf32> -> vector<2x8x16xf32>
    "tpu.trace_stop"() : () -> ()
    %428 = vector.shape_cast %427 : vector<2x8x16xf32> to vector<16x16xf32>
    %429 = vector.extract_strided_slice %405 {offsets = [0, 16], sizes = [16, 16], strides = [1, 1]} : vector<16x32xf32> to vector<16x16xf32>
    %430 = vector.shape_cast %429 : vector<16x16xf32> to vector<2x8x16xf32>
    %431 = vector.extract_strided_slice %407 {offsets = [0, 16], sizes = [16, 16], strides = [1, 1]} : vector<16x32xf32> to vector<16x16xf32>
    %432 = vector.shape_cast %431 : vector<16x16xf32> to vector<2x8x16xf32>
    %433 = vector.extract_strided_slice %408 {offsets = [0, 16], sizes = [16, 16], strides = [1, 1]} : vector<16x32xf32> to vector<16x16xf32>
    %434 = vector.shape_cast %433 : vector<16x16xf32> to vector<2x8x16xf32>
    "tpu.trace_start"() <{level = 10 : i32, message = "bqd,bkd->bqk"}> : () -> ()
    %cst_150 = arith.constant dense<0.000000e+00> : vector<2x8x8xf32>
    %435 = tpu.matmul %430, %432, %cst_150 {dimension_numbers = #tpu.dot_dimension_numbers<[2], [2], [1], [1], [0, 0, 0, 1, 1, 1], [0], [0]>} : vector<2x8x16xf32>, vector<2x8x16xf32>, vector<2x8x8xf32> -> vector<2x8x8xf32>
    "tpu.trace_stop"() : () -> ()
    %436 = vector.broadcast %8 : vector<2x1x8xf32> to vector<2x8x8xf32>
    %437 = arith.addf %435, %436 : vector<2x8x8xf32>
    %cst_151 = arith.constant dense<0xFF800000> : vector<2x8xf32>
    %438 = vector.multi_reduction <maximumf>, %437, %cst_151 [2] : vector<2x8x8xf32> to vector<2x8xf32>
    %439 = vector.shape_cast %438 : vector<2x8xf32> to vector<2x8x1xf32>
    %440 = vector.broadcast %439 : vector<2x8x1xf32> to vector<2x8x8xf32>
    %441 = arith.subf %437, %440 : vector<2x8x8xf32>
    %442 = math.exp %441 : vector<2x8x8xf32>
    %cst_152 = arith.constant dense<0.000000e+00> : vector<2x8xf32>
    %443 = vector.multi_reduction <add>, %442, %cst_152 [2] : vector<2x8x8xf32> to vector<2x8xf32>
    %444 = vector.shape_cast %443 : vector<2x8xf32> to vector<2x8x1xf32>
    %445 = vector.broadcast %444 : vector<2x8x1xf32> to vector<2x8x8xf32>
    %446 = arith.divf %442, %445 : vector<2x8x8xf32>
    "tpu.trace_start"() <{level = 10 : i32, message = "bqk,bkd->bqd"}> : () -> ()
    %cst_153 = arith.constant dense<0.000000e+00> : vector<2x8x16xf32>
    %447 = tpu.matmul %446, %434, %cst_153 {dimension_numbers = #tpu.dot_dimension_numbers<[2], [1], [1], [2], [0, 0, 0, 1, 1, 2], [0], [0]>} : vector<2x8x8xf32>, vector<2x8x16xf32>, vector<2x8x16xf32> -> vector<2x8x16xf32>
    "tpu.trace_stop"() : () -> ()
    %448 = vector.shape_cast %447 : vector<2x8x16xf32> to vector<16x16xf32>
    %449 = tpu.concatenate %428, %448 in 1 : vector<16x16xf32>, vector<16x16xf32> -> vector<16x32xf32>
    %cst_154 = arith.constant dense<0.000000e+00> : vector<16x32xf32>
    %450 = tpu.matmul %449, %331, %cst_154 {dimension_numbers = #tpu.dot_dimension_numbers<[1], [0], [0], [1], [0, 0, 1, 1], [], []>} : vector<16x32xf32>, vector<32x32xf32>, vector<16x32xf32> -> vector<16x32xf32>
    %451 = arith.addf %391, %450 : vector<16x32xf32>
    %c10 = arith.constant 10 : index
    %c0_155 = arith.constant 0 : index
    %452 = vector.load %arg5[%c10, %c0_155] : memref<12x32xf32, #tpu.memory_space<vmem>>, vector<1x32xf32>
    %453 = arith.mulf %451, %451 : vector<16x32xf32>
    %cst_156 = arith.constant dense<0.000000e+00> : vector<16xf32>
    %454 = vector.multi_reduction <add>, %453, %cst_156 [1] : vector<16x32xf32> to vector<16xf32>
    %455 = vector.shape_cast %454 : vector<16xf32> to vector<16x1xf32>
    %cst_157 = arith.constant 3.200000e+01 : f32
    %456 = vector.broadcast %cst_157 : f32 to vector<16x1xf32>
    %457 = arith.divf %455, %456 : vector<16x1xf32>
    %cst_158 = arith.constant 9.99999997E-7 : f32
    %458 = vector.broadcast %cst_158 : f32 to vector<16x1xf32>
    %459 = arith.addf %457, %458 : vector<16x1xf32>
    %460 = math.rsqrt %459 : vector<16x1xf32>
    %461 = vector.broadcast %460 : vector<16x1xf32> to vector<16x32xf32>
    %462 = arith.mulf %451, %461 : vector<16x32xf32>
    %463 = vector.broadcast %452 : vector<1x32xf32> to vector<16x32xf32>
    %464 = arith.mulf %462, %463 : vector<16x32xf32>
    %cst_159 = arith.constant dense<0.000000e+00> : vector<16x64xf32>
    %465 = tpu.matmul %464, %332, %cst_159 {dimension_numbers = #tpu.dot_dimension_numbers<[1], [0], [0], [1], [0, 0, 1, 1], [], []>} : vector<16x32xf32>, vector<32x64xf32>, vector<16x64xf32> -> vector<16x64xf32>
    %cst_160 = arith.constant 0.000000e+00 : f32
    %466 = vector.broadcast %cst_160 : f32 to vector<16x64xf32>
    %467 = arith.maximumf %465, %466 : vector<16x64xf32>
    %cst_161 = arith.constant dense<0.000000e+00> : vector<16x32xf32>
    %468 = tpu.matmul %467, %333, %cst_161 {dimension_numbers = #tpu.dot_dimension_numbers<[1], [0], [0], [1], [0, 0, 1, 1], [], []>} : vector<16x64xf32>, vector<64x32xf32>, vector<16x32xf32> -> vector<16x32xf32>
    %469 = arith.addf %451, %468 : vector<16x32xf32>
    %c11 = arith.constant 11 : index
    %c0_162 = arith.constant 0 : index
    %470 = vector.load %arg5[%c11, %c0_162] : memref<12x32xf32, #tpu.memory_space<vmem>>, vector<1x32xf32>
    %471 = arith.mulf %469, %469 : vector<16x32xf32>
    %cst_163 = arith.constant dense<0.000000e+00> : vector<16xf32>
    %472 = vector.multi_reduction <add>, %471, %cst_163 [1] : vector<16x32xf32> to vector<16xf32>
    %473 = vector.shape_cast %472 : vector<16xf32> to vector<16x1xf32>
    %cst_164 = arith.constant 3.200000e+01 : f32
    %474 = vector.broadcast %cst_164 : f32 to vector<16x1xf32>
    %475 = arith.divf %473, %474 : vector<16x1xf32>
    %cst_165 = arith.constant 9.99999997E-7 : f32
    %476 = vector.broadcast %cst_165 : f32 to vector<16x1xf32>
    %477 = arith.addf %475, %476 : vector<16x1xf32>
    %478 = math.rsqrt %477 : vector<16x1xf32>
    %479 = vector.broadcast %478 : vector<16x1xf32> to vector<16x32xf32>
    %480 = arith.mulf %469, %479 : vector<16x32xf32>
    %481 = vector.broadcast %470 : vector<1x32xf32> to vector<16x32xf32>
    %482 = arith.mulf %480, %481 : vector<16x32xf32>
    %cst_166 = arith.constant 0.176776692 : f32
    %483 = vector.broadcast %cst_166 : f32 to vector<16x32xf32>
    %484 = arith.mulf %482, %483 : vector<16x32xf32>
    %c0_167 = arith.constant 0 : index
    %c0_168 = arith.constant 0 : index
    %485 = vector.load %arg6[%c0_167, %c0_168] : memref<32x1280xf32, #tpu.memory_space<vmem>>, vector<32x256xf32>
    %cst_169 = arith.constant dense<0.000000e+00> : vector<16x256xf32>
    %486 = tpu.matmul %484, %485, %cst_169 {dimension_numbers = #tpu.dot_dimension_numbers<[1], [0], [0], [1], [0, 0, 1, 1], [], []>} : vector<16x32xf32>, vector<32x256xf32>, vector<16x256xf32> -> vector<16x256xf32>
    %c0_170 = arith.constant 0 : index
    %c0_171 = arith.constant 0 : index
    %487 = vector.load %arg8[%c0_170, %c0_171] : memref<16x256xf32, #tpu.memory_space<vmem>>, vector<16x256xf32>
    tpu.vector_store %arg8[%c0_170, %c0_171], %486 {strides = array<i32>} : memref<16x256xf32, #tpu.memory_space<vmem>>, vector<16x256xf32>,
    return
  }
  func.func @transform_0(%arg0: i32) -> (i32, i32) {
    %c0_i32 = arith.constant 0 : i32
    %c0_i32_0 = arith.constant 0 : i32
    %c0_i32_1 = arith.constant 0 : i32
    return %c0_i32, %c0_i32_0 : i32, i32
  }
  func.func @transform_1(%arg0: i32) -> (i32, i32, i32, i32) {
    %c0_i32 = arith.constant 0 : i32
    %c0_i32_0 = arith.constant 0 : i32
    %c0_i32_1 = arith.constant 0 : i32
    %c0_i32_2 = arith.constant 0 : i32
    %c0_i32_3 = arith.constant 0 : i32
    return %c0_i32, %c0_i32_0, %c0_i32_1, %c0_i32_2 : i32, i32, i32, i32
  }
  func.func @transform_2(%arg0: i32) -> (i32, i32, i32, i32) {
    %c0_i32 = arith.constant 0 : i32
    %c0_i32_0 = arith.constant 0 : i32
    %c0_i32_1 = arith.constant 0 : i32
    %c0_i32_2 = arith.constant 0 : i32
    %c0_i32_3 = arith.constant 0 : i32
    return %c0_i32, %c0_i32_0, %c0_i32_1, %c0_i32_2 : i32, i32, i32, i32
  }
  func.func @transform_3(%arg0: i32) -> (i32, i32, i32) {
    %c0_i32 = arith.constant 0 : i32
    %c0_i32_0 = arith.constant 0 : i32
    %c0_i32_1 = arith.constant 0 : i32
    %c0_i32_2 = arith.constant 0 : i32
    return %c0_i32, %c0_i32_0, %c0_i32_1 : i32, i32, i32
  }
  func.func @transform_4(%arg0: i32) -> (i32, i32) {
    %c0_i32 = arith.constant 0 : i32
    %c0_i32_0 = arith.constant 0 : i32
    %c0_i32_1 = arith.constant 0 : i32
    return %c0_i32, %c0_i32_0 : i32, i32
  }
  func.func @transform_5(%arg0: i32) -> (i32, i32) {
    %c0_i32 = arith.constant 0 : i32
    %c0_i32_0 = arith.constant 0 : i32
    %c0_i32_1 = arith.constant 0 : i32
    return %c0_i32, %c0_i32_0 : i32, i32
  }
  func.func @transform_6(%arg0: i32) -> (i32, i32) {
    %c0_i32 = arith.constant 0 : i32
    %c0_i32_0 = arith.constant 0 : i32
    %c0_i32_1 = arith.constant 0 : i32
    return %c0_i32, %c0_i32_0 : i32, i32
  }
  func.func @transform_7(%arg0: i32) -> (i32, i32) {
    %c0_i32 = arith.constant 0 : i32
    %c0_i32_0 = arith.constant 0 : i32
    %c0_i32_1 = arith.constant 0 : i32
    return %c0_i32, %c0_i32_0 : i32, i32
  }
}

</mosaic_0001>

<bundles_post_ra>
// kernel: t5_offline_teacher_forward.1
= control target key start
LH: loop header
LB: loop body
LE: loop exit
PB: predicated region body
PF: predicated region fallthrough
CT: control target
= control target key end

     0   :  { %vm60_vm0 = vcmask 261120   ;;  %s9421_s0 = inlined_call_operand.vmem [shape: f32[32,32], index: 0, kind: input, shape index: {}]   ;;  %s9422_s1 = inlined_call_operand.vmem [shape: f32[2,2,8,8], index: 1, kind: input, shape index: {}]   ;;  %s9423_s2 = inlined_call_operand.vmem [shape: f32[2,2,8,8], index: 2, kind: input, shape index: {}]   ;;  %s9424_s3 = inlined_call_operand.vmem [shape: f32[2,1,8], index: 3, kind: input, shape index: {}]   ;;  %s9425_s4 = inlined_call_operand.vmem [shape: f32[12,32], index: 4, kind: input, shape index: {}]   ;;  %s9426_s5 = inlined_call_operand.vmem [shape: f32[32,1280], index: 5, kind: input, shape index: {}]   ;;  %s9427_s6 = inlined_call_operand.vmem [shape: f32[64,128], index: 6, kind: input, shape index: {}]   ;;  %s9428_s7 = inlined_call_operand.hbm [shape: f32[16,256], index: 7, kind: output, shape index: {}]  }
   0x1   :  { %v8190_v0 = vld [vmem:[%s9421_s0] sm:$0xff]  ;;  %v8195_v1 = vld [vmem:[%s9421_s0 + $0x8] sm:$0xff] }
   0x2   :  { %12 = vsyncpa [#allocation3], 0  ;;  %v58_v2 = vmul.f32 %v8190_v0, %v8190_v0  ;;  %v59_v3 = vmul.f32 %v8195_v1, %v8195_v1  ;;  %v8206_v6 = vld [vmem:[%s9426_s5 + $0x10] sm:$0xff]  ;;  %v8211_v7 = vld [vmem:[%s9426_s5 + $0x60] sm:$0xff]  ;;  %v8136_v26 = vmov 0.0   ;;  %vm8137_vm1 = vmmov 0  }
   0x3   :  { %v8216_v8 = vld [vmem:[%s9426_s5 + $0xb0] sm:$0xff]  ;;  %v7762_v9 = vpack.i.bf16 %v8211_v7, %v8206_v6  ;;  %v7535_v10 = vpack.c.bf16 %v8211_v7, %v8206_v6  ;;  %v8225_v11 = vld [vmem:[%s9426_s5 + $0x100] sm:$0xff]  ;;  %7032 = vmatprep.subr.mxu1 %v8136_v26  ;;  %7034 = vmatprep.mubr.msk.f32.mxu1 %vm8137_vm1, %v8136_v26  ;;  %s8138_s15 = smov 96   ;;  %vm166_vm2 = vcmask 130048   ;;  %vm318_vm3 = vcmask 64512   ;;  %v8271_v35 = vld [vmem:[%s9422_s1 + $0x8] sm:$0xff] }
   0x4   :  { %v61_v4 = vsel %vm60_vm0, %v58_v2, 0.0  ;;  %v64_v5 = vsel %vm60_vm0, %v59_v3, 0.0  ;;  %v7539_v12 = vpack.c.bf16 %v8225_v11, %v8216_v8  ;;  %v6645_v20 = vld [vmem:[%s9425_s4] ss:$0 sm:$0xff]  ;;  %s8139_s20 = smov 80   ;;  %s8140_s21 = smov 64  }
   0x5   :  { %62 = vadd.xlane.f32.xlu0 %v61_v4  ;;  %7536 = vmatprep.subr.bf16.mxu0 %v7535_v10  ;;  %v8265_v31 = vld [vmem:[%s9422_s1] sm:$0xff]  ;;  %s8141_s22 = smov 112   ;;  %v8313_v3 = vld [vmem:[%s9422_s1 + $0x10] sm:$0xff]  ;;  %s8142_s27 = smov 48   ;;  %vm1038_vm4 = vcmask 523264  }
   0x6   :  { %7538 = vmatpush3.bf16.msra.mxu0 %v7535_v10  ;;  %s8144_s28 = smov 16  }
   0x7   :  { %7540 = vmatprep.subr.bf16.mxu0 %v7539_v12 }
   0x9   :  { %65 = vadd.xlane.f32.xlu0 %v64_v5 }
   0xa   :  { %7542 = vmatpush3.bf16.msra.mxu0 %v7539_v12 }
   0xb   :  { %7042 = vmatprep.subr.mxu0 %v8136_v26 }
  0x92   :  { %v63_v13 = vpop.xlane.xlu0 %62 }
  0x93   :  { %v68_v14 = vmul.f32 0.03125, %v63_v13 }
  0x95   :  { %v70_v15 = vadd.f32 1e-06, %v68_v14  ;;  %v8321_v14 = vld [vmem:[%s9422_s1 + $0x18] sm:$0xff]  ;;  %s8143_s1 = smov 32  }
  0x96   :  { %v66_v16 = vpop.xlane.xlu0 %65 }
  0x97   :  { %7962 = vrsqrt.f32 %v70_v15  ;;  %v69_v17 = vmul.f32 0.03125, %v66_v16 }
  0x99   :  { %v71_v18 = vadd.f32 1e-06, %v69_v17 }
  0x9b   :  { %7964 = vrsqrt.f32 %v71_v18 }
  0xa1   :  { %v7963_v19 = vpop.eup %7962 }
  0xa2   :  { %v74_v21 = vmul.f32 %v7963_v19, %v8190_v0 }
  0xa4   :  { %v80_v22 = vmul.f32 %v6645_v20, %v74_v21 }
  0xa5   :  { %v7965_v23 = vpop.eup %7964 }
  0xa6   :  { %v75_v24 = vmul.f32 %v7965_v23, %v8195_v1  ;;  %7029 = vmatprep.mubr.msk.f32.mxu0 %vm60_vm0, %v80_v22 }
  0xa8   :  { %v81_v25 = vmul.f32 %v6645_v20, %v75_v24 }
  0xaa   :  { %7030 = vmatmul.mubr.msk.f32.vlgmr.msra.gmra.mrb[0].mxu0 %vm60_vm0, %v81_v25 }
  0xab   :  { %7044 = vmatprep.mubr.msk.f32.mxu0 %vm8137_vm1, %v8136_v26 }
 0x17d   :  { %v8242_v27 = vpop.f32.mrb[0].mxu0 }
 0x17e   :  { %v8244_v28 = vpop.f32.mrb[1].mxu0 }
 0x17f   :  { %164 = vrot.lane.b32.xlu1 %v8244_v28, %s8138_s15 }
 0x183   :  { %242 = vrot.lane.b32.xlu1 %v8242_v27, %s8138_s15 }
 0x1f1   :  { %v165_v29 = vpop.permute.xlu1 %164 }
 0x1f2   :  { %7033 = vmatpush3.xpose.msk.msra.mxu1 %vm166_vm2, %v165_v29 }
 0x1f3   :  { %7037 = vmatprep.subr.mxu1 %v8136_v26 }
 0x1f5   :  { %7035 = vmatmul.mubr.msk.f32.vlgmr.msra.gmra.mrb[0].mxu1 %vm166_vm2, %v8244_v28  ;;  %v243_v30 = vpop.permute.xlu1 %242 }
 0x1f6   :  { %7038 = vmatpush3.xpose.msk.msra.mxu1 %vm166_vm2, %v243_v30  ;;  %7039 = vmatprep.mubr.msk.f32.mxu1 %vm8137_vm1, %v8136_v26 }
 0x1f7   :  { %7047 = vmatprep.subr.mxu1 %v8136_v26 }
 0x1f9   :  { %7040 = vmatmul.mubr.msk.f32.vlgmr.msra.gmra.mrb[2].mxu1 %vm166_vm2, %v8242_v27 }
 0x1fa   :  { %7049 = vmatprep.mubr.msk.f32.mxu1 %vm8137_vm1, %v8136_v26 }
 0x2c8   :  { %v237_v32 = vpop.f32.mrb[0].mxu1 }
 0x2c9   :  { %v238_v33 = vadd.f32 %v237_v32, %v8265_v31  ;;  %v7036_v34 = vpop.f32.mrb[1].mxu1 }
 0x2cb   :  { %v319_v36 = vsel %vm318_vm3, %v238_v33, -inf }
 0x2cc   :  { %v314_v37 = vpop.f32.mrb[2].mxu1  ;;  %320 = vmax.xlane.f32.xlu0 %v319_v36 }
 0x2cd   :  { %v315_v38 = vadd.f32 %v314_v37, %v8271_v35  ;;  %v7041_v39 = vpop.f32.mrb[3].mxu1 }
 0x2cf   :  { %v322_v40 = vsel %vm318_vm3, %v315_v38, -inf }
 0x2d0   :  { %323 = vmax.xlane.f32.xlu1 %v322_v40 }
 0x2e1   :  { %495 = vrot.lane.b32.xlu1 %v8244_v28, %s8139_s20 }
 0x2e2   :  { %341 = vrot.lane.b32.xlu0 %v8244_v28, %s8140_s21 }
 0x2e6   :  { %417 = vrot.lane.b32.xlu0 %v8242_v27, %s8140_s21 }
 0x2ea   :  { %573 = vrot.lane.b32.xlu0 %v8242_v27, %s8139_s20 }
 0x2ee   :  { %493 = vrot.lane.b32.xlu0 %v8244_v28, %s8141_s22 }
 0x359   :  { %v321_v41 = vpop.xlane.xlu0 %320 }
 0x35a   :  { %v325_v42 = vsub.f32 %v238_v33, %v321_v41 }
 0x35c   :  { %v327_v43 = vmul.f32 1.442695, %v325_v42 }
 0x35d   :  { %v324_v44 = vpop.xlane.xlu1 %323  ;;  %v342_v45 = vpop.permute.xlu0 %341 }
 0x35e   :  { %7966 = vpow2.f32 %v327_v43  ;;  %v326_v46 = vsub.f32 %v315_v38, %v324_v44  ;;  %7043 = vmatpush3.msra.mxu0 %v342_v45 }
 0x35f   :  { %7052 = vmatprep.subr.mxu0 %v8136_v26 }
 0x360   :  { %v329_v47 = vmul.f32 1.442695, %v326_v46 }
 0x361   :  { %v418_v48 = vpop.permute.xlu0 %417  ;;  %v496_v59 = vpop.permute.xlu1 %495 }
 0x362   :  { %7968 = vpow2.f32 %v329_v47  ;;  %7048 = vmatpush3.msra.mxu1 %v418_v48 }
 0x363   :  { %7057 = vmatprep.subr.mxu1 %v8136_v26 }
 0x365   :  { %v574_v53 = vpop.permute.xlu0 %573 }
 0x368   :  { %v7967_v49 = vpop.eup %7966 }
 0x369   :  { %v331_v50 = vsel %vm318_vm3, %v7967_v49, 0.0  ;;  %v494_v54 = vpop.permute.xlu0 %493 }
 0x36a   :  { %332 = vadd.xlane.f32.xlu0 %v331_v50 }
 0x36c   :  { %v7969_v51 = vpop.eup %7968 }
 0x36d   :  { %v334_v52 = vsel %vm318_vm3, %v7969_v51, 0.0 }
 0x36e   :  { %335 = vadd.xlane.f32.xlu0 %v334_v52 }
 0x384   :  { %571 = vrot.lane.b32.xlu0 %v8242_v27, %s8141_s22 }
 0x3f7   :  { %v333_v55 = vpop.xlane.xlu0 %332 }
 0x3f8   :  { %7970 = vrcp.f32 %v333_v55 }
 0x3fb   :  { %v336_v56 = vpop.xlane.xlu0 %335 }
 0x3fc   :  { %7972 = vrcp.f32 %v336_v56 }
 0x3ff   :  { %v572_v62 = vpop.permute.xlu0 %571 }
 0x402   :  { %v7971_v57 = vpop.eup %7970 }
 0x403   :  { %v338_v58 = vmul.f32 %v7971_v57, %v7967_v49 }
 0x405   :  { %7045 = vmatmul.mubr.msk.f32.vlgmr.msra.gmra.mrb[2].mxu0 %vm318_vm3, %v338_v58 }
 0x406   :  { %v7973_v60 = vpop.eup %7972  ;;  %7053 = vmatpush3.xpose.msk.msra.mxu0 %vm166_vm2, %v496_v59  ;;  %7054 = vmatprep.mubr.msk.f32.mxu0 %vm8137_vm1, %v8136_v26 }
 0x407   :  { %v340_v61 = vmul.f32 %v7973_v60, %v7969_v51  ;;  %7062 = vmatprep.subr.mxu0 %v8136_v26 }
 0x409   :  { %7050 = vmatmul.mubr.msk.f32.vlgmr.msra.gmra.mrb[4].mxu1 %vm318_vm3, %v340_v61  ;;  %7055 = vmatmul.mubr.msk.f32.vlgmr.msra.gmra.mrb[4].mxu0 %vm166_vm2, %v494_v54  ;;  %v47_v61 = vld [vmem:[%s9426_s5 + $0xb8] sm:$0xff] }
 0x40a   :  { %7058 = vmatpush3.xpose.msk.msra.mxu1 %vm166_vm2, %v574_v53  ;;  %7059 = vmatprep.mubr.msk.f32.mxu1 %vm8137_vm1, %v8136_v26 }
 0x40b   :  { %7067 = vmatprep.subr.mxu1 %v8136_v26  ;;  %7064 = vmatprep.mubr.msk.f32.mxu0 %vm8137_vm1, %v8136_v26 }
 0x40d   :  { %7060 = vmatmul.mubr.msk.f32.vlgmr.msra.gmra.mrb[6].mxu1 %vm166_vm2, %v572_v62 }
 0x40e   :  { %7069 = vmatprep.mubr.msk.f32.mxu1 %vm8137_vm1, %v8136_v26 }
 0x4d8   :  { %v8308_v63 = vpop.f32.mrb[2].mxu0 }
 0x4d9   :  { %v7046_v2 = vpop.f32.mrb[3].mxu0 }
 0x4dc   :  { %v8315_v4 = vpop.f32.mrb[4].mxu1  ;;  %v567_v5 = vpop.f32.mrb[4].mxu0 }
 0x4dd   :  { %v568_v10 = vadd.f32 %v8313_v3, %v567_v5  ;;  %v7051_v12 = vpop.f32.mrb[5].mxu1  ;;  %v7056_v13 = vpop.f32.mrb[5].mxu0  ;;  %v8384_v5 = vld [vmem:[%s9427_s6 + $0x8] sm:$0xff] }
 0x4de   :  { %v8396_v13 = vld [vmem:[%s9427_s6 + $0x18] sm:$0xff] }
 0x4df   :  { %v649_v15 = vsel %vm318_vm3, %v568_v10, -inf }
 0x4e0   :  { %650 = vmax.xlane.f32.xlu0 %v649_v15  ;;  %v645_v16 = vpop.f32.mrb[6].mxu1 }
 0x4e1   :  { %v646_v17 = vadd.f32 %v8321_v14, %v645_v16  ;;  %v7061_v18 = vpop.f32.mrb[7].mxu1  ;;  %v8403_v16 = vld [vmem:[%s9427_s6 + $0x20] sm:$0xff] }
 0x4e3   :  { %v652_v19 = vsel %vm318_vm3, %v646_v17, -inf }
 0x4e4   :  { %653 = vmax.xlane.f32.xlu1 %v652_v19 }
 0x4f5   :  { %747 = vrot.lane.b32.xlu1 %v8242_v27, %s8142_s27  ;;  %v7767_v27 = vpack.i.bf16 %v8225_v11, %v8216_v8 }
 0x4f9   :  { %7763 = vrot.lane.b32.xlu1 %v7762_v9, %s8143_s1 }
 0x4fd   :  { %7768 = vrot.lane.b32.xlu1 %v7767_v27, %s8143_s1 }
 0x56d   :  { %v651_v20 = vpop.xlane.xlu0 %650 }
 0x56e   :  { %v655_v21 = vsub.f32 %v568_v10, %v651_v20  ;;  %v8389_v10 = vld [vmem:[%s9427_s6 + $0x10] sm:$0xff] }
 0x56f   :  { %v7563_v15 = vpack.c.bf16 %v8396_v13, %v8389_v10 }
 0x570   :  { %v657_v22 = vmul.f32 1.442695, %v655_v21 }
 0x571   :  { %v654_v23 = vpop.xlane.xlu1 %653 }
 0x572   :  { %7974 = vpow2.f32 %v657_v22  ;;  %v656_v24 = vsub.f32 %v646_v17, %v654_v23  ;;  %v8408_v17 = vld [vmem:[%s9427_s6 + $0x28] sm:$0xff] }
 0x573   :  { %v7567_v18 = vpack.c.bf16 %v8408_v17, %v8403_v16 }
 0x574   :  { %v659_v25 = vmul.f32 1.442695, %v656_v24 }
 0x575   :  { %v748_v29 = vpop.permute.xlu1 %747 }
 0x576   :  { %7976 = vpow2.f32 %v659_v25  ;;  %7068 = vmatpush3.msra.mxu1 %v748_v29 }
 0x579   :  { %v7764_v6 = vpop.permute.xlu1 %7763 }
 0x57a   :  { %v7766_v7 = vunpack.i.h.bf16 %v7764_v6  ;;  %v7765_v9 = vunpack.i.l.bf16 %v7764_v6  ;;  %v8439_v6 = vld [vmem:[%s9426_s5 + $0x70] sm:$0xff] }
 0x57c   :  { %v7975_v30 = vpop.eup %7974  ;;  %v7543_v8 = vpack.c.bf16 %v7766_v7, %v7765_v9  ;;  %v8444_v7 = vld [vmem:[%s9426_s5 + $0xc0] sm:$0xff] }
 0x57d   :  { %v661_v32 = vsel %vm318_vm3, %v7975_v30, 0.0  ;;  %v7769_v11 = vpop.permute.xlu1 %7768 }
 0x57e   :  { %662 = vadd.xlane.f32.xlu0 %v661_v32  ;;  %v7771_v42 = vunpack.i.h.bf16 %v7769_v11  ;;  %v7770_v43 = vunpack.i.l.bf16 %v7769_v11  ;;  %v8453_v11 = vld [vmem:[%s9426_s5 + $0x110] sm:$0xff] }
 0x580   :  { %v7977_v33 = vpop.eup %7976  ;;  %v7547_v44 = vpack.c.bf16 %v7771_v42, %v7770_v43 }
 0x581   :  { %v664_v34 = vsel %vm318_vm3, %v7977_v33, 0.0 }
 0x582   :  { %665 = vadd.xlane.f32.xlu0 %v664_v34 }
 0x598   :  { %671 = vrot.lane.b32.xlu0 %v8244_v28, %s8142_s27 }
 0x60b   :  { %v663_v36 = vpop.xlane.xlu0 %662 }
 0x60c   :  { %7978 = vrcp.f32 %v663_v36  ;;  %v8422_v36 = vld [vmem:[%s9427_s6 + $0x30] sm:$0xff] }
 0x60f   :  { %v666_v37 = vpop.xlane.xlu0 %665 }
 0x610   :  { %7980 = vrcp.f32 %v666_v37  ;;  %v8427_v37 = vld [vmem:[%s9427_s6 + $0x38] sm:$0xff] }
 0x613   :  { %v672_v38 = vpop.permute.xlu0 %671 }
 0x614   :  { %7063 = vmatpush3.msra.mxu0 %v672_v38  ;;  %v7571_v38 = vpack.c.bf16 %v8427_v37, %v8422_v36 }
 0x615   :  { %7544 = vmatprep.subr.bf16.mxu0 %v7543_v8 }
 0x616   :  { %v7979_v39 = vpop.eup %7978 }
 0x617   :  { %v668_v40 = vmul.f32 %v7979_v39, %v7975_v30  ;;  %v6662_v30 = vld [vmem:[%s9425_s4 + $0x1] ss:$0 sm:$0xff] }
 0x619   :  { %7065 = vmatmul.mubr.msk.f32.vlgmr.msra.gmra.mrb[6].mxu0 %vm318_vm3, %v668_v40 }
 0x61a   :  { %v7981_v28 = vpop.eup %7980  ;;  %7546 = vmatpush3.bf16.msra.mxu0 %v7543_v8  ;;  %v7782_v8 = vpack.i.bf16 %v8444_v7, %v47_v61 }
 0x61b   :  { %v670_v41 = vmul.f32 %v7981_v28, %v7977_v33  ;;  %7548 = vmatprep.subr.bf16.mxu0 %v7547_v44 }
 0x61d   :  { %7070 = vmatmul.mubr.msk.f32.vlgmr.msra.gmra.mrb[8].mxu1 %vm318_vm3, %v670_v41 }
 0x61e   :  { %7550 = vmatpush3.bf16.msra.mxu0 %v7547_v44 }
 0x6ec   :  { %v743_v45 = vpop.f32.mrb[6].mxu0 }
 0x6ed   :  { %825 = vrot.lane.b32.xlu0 %v743_v45, %s8144_s28  ;;  %v7066_v46 = vpop.f32.mrb[7].mxu0 }
 0x6f0   :  { %v819_v47 = vpop.f32.mrb[8].mxu1 }
 0x6f1   :  { %827 = vrot.lane.b32.xlu1 %v819_v47, %s8144_s28  ;;  %v7071_v48 = vpop.f32.mrb[9].mxu1 }
 0x75f   :  { %v826_v49 = vpop.permute.xlu0 %825 }
 0x760   :  { %v831_v50 = vsel %vm166_vm2, %v8308_v63, %v826_v49  ;;  %v48_v63 = vld [vmem:[%s9426_s5 + $0x108] sm:$0xff] }
 0x761   :  { %7080 = vmatprep.mubr.msk.f32.mxu0 %vm60_vm0, %v831_v50  ;;  %v7555_v2 = vpack.c.bf16 %v48_v63, %v47_v61  ;;  %v7787_v42 = vpack.i.bf16 %v8453_v11, %v48_v63 }
 0x763   :  { %v828_v51 = vpop.permute.xlu1 %827 }
 0x764   :  { %v832_v52 = vsel %vm166_vm2, %v8315_v4, %v828_v51  ;;  %v8379_v4 = vld [vmem:[%s9427_s6] sm:$0xff] }
 0x765   :  { %7081 = vmatmul.mubr.msk.f32.vlgmr.msra.gmra.mrb[8].mxu0 %vm60_vm0, %v832_v52  ;;  %v7559_v12 = vpack.c.bf16 %v8384_v5, %v8379_v4  ;;  %v8474_v52 = vld [vmem:[%s9426_s5 + $0x20] sm:$0xff] }
 0x767   :  { %7560 = vmatprep.subr.bf16.mxu0 %v7559_v12 }
 0x768   :  { %7562 = vmatpush3.bf16.msra.mxu0 %v7559_v12 }
 0x769   :  { %7564 = vmatprep.subr.bf16.mxu0 %v7563_v15 }
 0x76c   :  { %7566 = vmatpush3.bf16.msra.mxu0 %v7563_v15 }
 0x76d   :  { %7568 = vmatprep.subr.bf16.mxu0 %v7567_v18 }
 0x770   :  { %7570 = vmatpush3.bf16.msra.mxu0 %v7567_v18 }
 0x771   :  { %7572 = vmatprep.subr.bf16.mxu0 %v7571_v38 }
 0x774   :  { %7574 = vmatpush3.bf16.msra.mxu0 %v7571_v38 }
 0x775   :  { %7134 = vmatprep.subr.mxu0 %v8136_v26 }
 0x838   :  { %v7082_v53 = vpop.f32.mrb[8].mxu0 }
 0x839   :  { %v8350_v54 = vadd.f32 %v7082_v53, %v8195_v1  ;;  %v921_v55 = vpop.f32.mrb[9].mxu0  ;;  %v8364_v1 = vld [vmem:[%s9426_s5 + $0x18] sm:$0xff] }
 0x83a   :  { %v8353_v56 = vadd.f32 %v921_v55, %v8190_v0  ;;  %v46_v0 = vld [vmem:[%s9426_s5 + $0x68] sm:$0xff] }
 0x83b   :  { %v934_v57 = vmul.f32 %v8350_v54, %v8350_v54  ;;  %v7551_v62 = vpack.c.bf16 %v46_v0, %v8364_v1  ;;  %v7777_v9 = vpack.i.bf16 %v8439_v6, %v46_v0 }
 0x83c   :  { %v933_v58 = vmul.f32 %v8353_v56, %v8353_v56 }
 0x83d   :  { %v938_v59 = vsel %vm60_vm0, %v934_v57, 0.0  ;;  %7552 = vmatprep.subr.bf16.mxu1 %v7551_v62 }
 0x83e   :  { %939 = vadd.xlane.f32.xlu1 %v938_v59  ;;  %v935_v60 = vsel %vm60_vm0, %v933_v58, 0.0  ;;  %7554 = vmatpush3.bf16.msra.mxu1 %v7551_v62 }
 0x83f   :  { %936 = vadd.xlane.f32.xlu0 %v935_v60  ;;  %7556 = vmatprep.subr.bf16.mxu1 %v7555_v2 }
 0x842   :  { %7558 = vmatpush3.bf16.msra.mxu1 %v7555_v2 }
 0x84f   :  { %7778 = vrot.lane.b32.xlu1 %v7777_v9, %s8140_s21 }
 0x853   :  { %7783 = vrot.lane.b32.xlu1 %v7782_v8, %s8140_s21 }
 0x857   :  { %7788 = vrot.lane.b32.xlu1 %v7787_v42, %s8140_s21 }
 0x8cb   :  { %v940_v19 = vpop.xlane.xlu1 %939 }
 0x8cc   :  { %v942_v20 = vmul.f32 0.03125, %v940_v19  ;;  %v937_v21 = vpop.xlane.xlu0 %936 }
 0x8cd   :  { %v941_v22 = vmul.f32 0.03125, %v937_v21 }
 0x8ce   :  { %v944_v23 = vadd.f32 1e-06, %v942_v20 }
 0x8cf   :  { %v943_v24 = vadd.f32 1e-06, %v941_v22  ;;  %v8469_v51 = vpop.permute.xlu1 %7778 }
 0x8d0   :  { %7982 = vrsqrt.f32 %v944_v23  ;;  %v7781_v61 = vunpack.i.h.bf16 %v8469_v51  ;;  %v7780_v62 = vunpack.i.l.bf16 %v8469_v51  ;;  %v7797_v51 = vpack.i.bf16 %v8453_v11, %v8444_v7 }
 0x8d1   :  { %7984 = vrsqrt.f32 %v943_v24 }
 0x8d2   :  { %v1186_v19 = vsel %vm1038_vm4, %v7780_v62, %v7781_v61 }
 0x8d3   :  { %v7784_v53 = vpop.permute.xlu1 %7783 }
 0x8d4   :  { %v7786_v55 = vunpack.i.h.bf16 %v7784_v53  ;;  %v7785_v2 = vunpack.i.l.bf16 %v7784_v53 }
 0x8d6   :  { %v1187_v20 = vsel %vm1038_vm4, %v7785_v2, %v7786_v55 }
 0x8da   :  { %v7983_v25 = vpop.eup %7982 }
 0x8db   :  { %v7985_v29 = vpop.eup %7984  ;;  %v948_v32 = vmul.f32 %v7983_v25, %v8350_v54 }
 0x8dc   :  { %v947_v33 = vmul.f32 %v7985_v29, %v8353_v56 }
 0x8dd   :  { %v954_v27 = vmul.f32 %v6662_v30, %v948_v32 }
 0x8de   :  { %v953_v34 = vmul.f32 %v6662_v30, %v947_v33 }
 0x8e0   :  { %7091 = vmatprep.mubr.msk.f32.mxu1 %vm60_vm0, %v953_v34  ;;  %v6667_v34 = vld [vmem:[%s9425_s4 + $0x2] ss:$0 sm:$0xff] }
 0x8e1   :  { %7092 = vmatmul.mubr.msk.f32.vlgmr.msra.gmra.mrb[10].mxu1 %vm60_vm0, %v954_v27 }
 0x9b4   :  { %v7093_v39 = vpop.f32.mrb[10].mxu1 }
 0x9b5   :  { %v1027_v40 = vpop.f32.mrb[11].mxu1  ;;  %v1037_v41 = vmax.f32 %v7093_v39, 0.0 }
 0x9b6   :  { %v1036_v28 = vmax.f32 %v1027_v40, 0.0 }
 0x9b8   :  { %7110 = vmatprep.mubr.msk.f32.mxu0 %vm1038_vm4, %v1036_v28 }
 0x9b9   :  { %7111 = vmatmul.mubr.msk.f32.vlgmr.msra.gmra.mrb[10].mxu0 %vm1038_vm4, %v1037_v41 }
 0x9ba   :  { %7136 = vmatprep.mubr.msk.f32.mxu0 %vm8137_vm1, %v8136_v26 }
 0xa8c   :  { %v7112_v43 = vpop.f32.mrb[10].mxu0 }
 0xa8d   :  { %v8458_v44 = vadd.f32 %v7112_v43, %v8350_v54  ;;  %v1111_v45 = vpop.f32.mrb[11].mxu0  ;;  %v7772_v54 = vpack.i.bf16 %v8474_v52, %v8364_v1 }
 0xa8e   :  { %v8461_v46 = vadd.f32 %v1111_v45, %v8353_v56  ;;  %v7789_v56 = vpop.permute.xlu1 %7788 }
 0xa8f   :  { %v1140_v47 = vmul.f32 %v8458_v44, %v8458_v44  ;;  %v7791_v57 = vunpack.i.h.bf16 %v7789_v56  ;;  %v7790_v15 = vunpack.i.l.bf16 %v7789_v56 }
 0xa90   :  { %v1139_v49 = vmul.f32 %v8461_v46, %v8461_v46 }
 0xa91   :  { %v1144_v48 = vsel %vm60_vm0, %v1140_v47, 0.0  ;;  %v8479_v58 = vpack.c.bf16 %v7791_v57, %v7786_v55  ;;  %v1188_v23 = vsel %vm1038_vm4, %v7790_v15, %v7791_v57 }
 0xa92   :  { %1145 = vadd.xlane.f32.xlu0 %v1144_v48  ;;  %v1141_v50 = vsel %vm60_vm0, %v1139_v49, 0.0  ;;  %v7579_v29 = vpack.c.bf16 %v1188_v23, %v1187_v20 }
 0xa96   :  { %1142 = vadd.xlane.f32.xlu0 %v1141_v50 }
 0xaac   :  { %7773 = vrot.lane.b32.xlu0 %v7772_v54, %s8140_s21 }
 0xb1f   :  { %v1146_v59 = vpop.xlane.xlu0 %1145 }
 0xb20   :  { %v1148_v60 = vmul.f32 0.03125, %v1146_v59 }
 0xb22   :  { %v1150_v0 = vadd.f32 1e-06, %v1148_v60 }
 0xb23   :  { %v1143_v63 = vpop.xlane.xlu0 %1142 }
 0xb24   :  { %v1147_v12 = vmul.f32 0.03125, %v1143_v63  ;;  %7986 = vrsqrt.f32 %v1150_v0 }
 0xb26   :  { %v1149_v1 = vadd.f32 1e-06, %v1147_v12 }
 0xb27   :  { %v8483_v18 = vpop.permute.xlu0 %7773 }
 0xb28   :  { %7988 = vrsqrt.f32 %v1149_v1  ;;  %v7776_v21 = vunpack.i.h.bf16 %v8483_v18  ;;  %v7775_v22 = vunpack.i.l.bf16 %v8483_v18  ;;  %v7792_v18 = vpack.i.bf16 %v8439_v6, %v8474_v52 }
 0xb2a   :  { %v1185_v24 = vsel %vm1038_vm4, %v7775_v22, %v7776_v21 }
 0xb2b   :  { %v7575_v25 = vpack.c.bf16 %v1186_v19, %v1185_v24 }
 0xb2d   :  { %7576 = vmatprep.subr.bf16.mxu1 %v7575_v25 }
 0xb2e   :  { %7578 = vmatpush3.bf16.msra.mxu1 %v7575_v25  ;;  %v7987_v30 = vpop.eup %7986 }
 0xb2f   :  { %7580 = vmatprep.subr.bf16.mxu1 %v7579_v29  ;;  %v1154_v33 = vmul.f32 %v7987_v30, %v8458_v44 }
 0xb31   :  { %v1160_v39 = vmul.f32 %v6667_v34, %v1154_v33 }
 0xb32   :  { %v7989_v32 = vpop.eup %7988  ;;  %7582 = vmatpush3.bf16.msra.mxu1 %v7579_v29 }
 0xb33   :  { %v1153_v27 = vmul.f32 %v7989_v32, %v8461_v46  ;;  %7124 = vmatprep.subr.mxu1 %v8136_v26 }
 0xb35   :  { %v1159_v38 = vmul.f32 %v6667_v34, %v1153_v27 }
 0xb37   :  { %7121 = vmatprep.mubr.msk.f32.mxu1 %vm60_vm0, %v1159_v38 }
 0xb38   :  { %7122 = vmatmul.mubr.msk.f32.vlgmr.msra.gmra.mrb[12].mxu1 %vm60_vm0, %v1160_v39 }
 0xb39   :  { %7126 = vmatprep.mubr.msk.f32.mxu1 %vm8137_vm1, %v8136_v26 }
 0xc0b   :  { %v8505_v40 = vpop.f32.mrb[12].mxu1 }
 0xc0c   :  { %1352 = vrot.lane.b32.xlu1 %v8505_v40, %s8138_s15  ;;  %v8509_v28 = vpop.f32.mrb[13].mxu1 }
 0xc0d   :  { %1275 = vrot.lane.b32.xlu0 %v8509_v28, %s8138_s15 }
 0xc7e   :  { %v1353_v9 = vpop.permute.xlu1 %1352 }
 0xc7f   :  { %v1276_v41 = vpop.permute.xlu0 %1275 }
 0xc80   :  { %7125 = vmatpush3.xpose.msk.msra.mxu1 %vm166_vm2, %v1276_v41 }
 0xc81   :  { %7129 = vmatprep.subr.mxu1 %v8136_v26 }
 0xc83   :  { %7127 = vmatmul.mubr.msk.f32.vlgmr.msra.gmra.mrb[14].mxu1 %vm166_vm2, %v8509_v28 }
 0xc84   :  { %7130 = vmatpush3.xpose.msk.msra.mxu1 %vm166_vm2, %v1353_v9  ;;  %7131 = vmatprep.mubr.msk.f32.mxu1 %vm8137_vm1, %v8136_v26 }
 0xc85   :  { %7139 = vmatprep.subr.mxu1 %v8136_v26 }
 0xc87   :  { %7132 = vmatmul.mubr.msk.f32.vlgmr.msra.gmra.mrb[16].mxu1 %vm166_vm2, %v8505_v40 }
 0xc88   :  { %7141 = vmatprep.mubr.msk.f32.mxu1 %vm8137_vm1, %v8136_v26 }
 0xd56   :  { %v1347_v8 = vpop.f32.mrb[14].mxu1 }
 0xd57   :  { %v1348_v42 = vadd.f32 %v1347_v8, %v8265_v31  ;;  %v7128_v43 = vpop.f32.mrb[15].mxu1 }
 0xd59   :  { %v1428_v45 = vsel %vm318_vm3, %v1348_v42, -inf }
 0xd5a   :  { %1429 = vmax.xlane.f32.xlu0 %v1428_v45  ;;  %v1424_v47 = vpop.f32.mrb[16].mxu1 }
 0xd5b   :  { %v1425_v48 = vadd.f32 %v1424_v47, %v8271_v35  ;;  %v7133_v49 = vpop.f32.mrb[17].mxu1 }
 0xd5d   :  { %v1431_v50 = vsel %vm318_vm3, %v1425_v48, -inf }
 0xd5e   :  { %1432 = vmax.xlane.f32.xlu1 %v1431_v50 }
 0xd6f   :  { %1526 = vrot.lane.b32.xlu1 %v8505_v40, %s8140_s21 }
 0xd70   :  { %1450 = vrot.lane.b32.xlu0 %v8509_v28, %s8140_s21 }
 0xd73   :  { %1604 = vrot.lane.b32.xlu1 %v8509_v28, %s8139_s20 }
 0xd77   :  { %1682 = vrot.lane.b32.xlu1 %v8505_v40, %s8139_s20 }
 0xd7b   :  { %1680 = vrot.lane.b32.xlu1 %v8505_v40, %s8141_s22 }
 0xde7   :  { %v1430_v31 = vpop.xlane.xlu0 %1429 }
 0xde8   :  { %v1434_v35 = vsub.f32 %v1348_v42, %v1430_v31 }
 0xdea   :  { %v1436_v53 = vmul.f32 1.442695, %v1434_v35 }
 0xdeb   :  { %v1451_v54 = vpop.permute.xlu0 %1450  ;;  %v1433_v55 = vpop.xlane.xlu1 %1432 }
 0xdec   :  { %7990 = vpow2.f32 %v1436_v53  ;;  %v1435_v56 = vsub.f32 %v1425_v48, %v1433_v55  ;;  %7135 = vmatpush3.msra.mxu0 %v1451_v54 }
 0xded   :  { %7144 = vmatprep.subr.mxu0 %v8136_v26 }
 0xdee   :  { %v1438_v57 = vmul.f32 1.442695, %v1435_v56 }
 0xdef   :  { %v1527_v59 = vpop.permute.xlu1 %1526 }
 0xdf0   :  { %7992 = vpow2.f32 %v1438_v57  ;;  %7140 = vmatpush3.msra.mxu1 %v1527_v59 }
 0xdf1   :  { %7149 = vmatprep.subr.mxu1 %v8136_v26 }
 0xdf3   :  { %v1605_v15 = vpop.permute.xlu1 %1604 }
 0xdf6   :  { %v7991_v60 = vpop.eup %7990 }
 0xdf7   :  { %v1440_v0 = vsel %vm318_vm3, %v7991_v60, 0.0  ;;  %v1683_v22 = vpop.permute.xlu1 %1682 }
 0xdf8   :  { %1441 = vadd.xlane.f32.xlu0 %v1440_v0 }
 0xdfa   :  { %v7993_v62 = vpop.eup %7992 }
 0xdfb   :  { %v1443_v63 = vsel %vm318_vm3, %v7993_v62, 0.0  ;;  %v1681_v25 = vpop.permute.xlu1 %1680 }
 0xdfc   :  { %1444 = vadd.xlane.f32.xlu0 %v1443_v63 }
 0xe12   :  { %1602 = vrot.lane.b32.xlu0 %v8509_v28, %s8141_s22 }
 0xe85   :  { %v1442_v2 = vpop.xlane.xlu0 %1441 }
 0xe86   :  { %7994 = vrcp.f32 %v1442_v2 }
 0xe89   :  { %v1445_v12 = vpop.xlane.xlu0 %1444 }
 0xe8a   :  { %7996 = vrcp.f32 %v1445_v12 }
 0xe8d   :  { %v1603_v24 = vpop.permute.xlu0 %1602 }
 0xe90   :  { %v7995_v1 = vpop.eup %7994 }
 0xe91   :  { %v1447_v19 = vmul.f32 %v7995_v1, %v7991_v60 }
 0xe93   :  { %7137 = vmatmul.mubr.msk.f32.vlgmr.msra.gmra.mrb[12].mxu0 %vm318_vm3, %v1447_v19 }
 0xe94   :  { %v7997_v20 = vpop.eup %7996  ;;  %7145 = vmatpush3.xpose.msk.msra.mxu0 %vm166_vm2, %v1605_v15  ;;  %7146 = vmatprep.mubr.msk.f32.mxu0 %vm8137_vm1, %v8136_v26 }
 0xe95   :  { %v1449_v23 = vmul.f32 %v7997_v20, %v7993_v62  ;;  %7154 = vmatprep.subr.mxu0 %v8136_v26 }
 0xe97   :  { %7142 = vmatmul.mubr.msk.f32.vlgmr.msra.gmra.mrb[18].mxu1 %vm318_vm3, %v1449_v23  ;;  %7147 = vmatmul.mubr.msk.f32.vlgmr.msra.gmra.mrb[14].mxu0 %vm166_vm2, %v1603_v24 }
 0xe98   :  { %7150 = vmatpush3.xpose.msk.msra.mxu1 %vm166_vm2, %v1683_v22  ;;  %7151 = vmatprep.mubr.msk.f32.mxu1 %vm8137_vm1, %v8136_v26 }
 0xe99   :  { %7159 = vmatprep.subr.mxu1 %v8136_v26  ;;  %7156 = vmatprep.mubr.msk.f32.mxu0 %vm8137_vm1, %v8136_v26 }
 0xe9b   :  { %7152 = vmatmul.mubr.msk.f32.vlgmr.msra.gmra.mrb[20].mxu1 %vm166_vm2, %v1681_v25  ;;  %v8603_v25 = vld [vmem:[%s9421_s0 + $0x10] sm:$0xff] }
 0xe9c   :  { %7161 = vmatprep.mubr.msk.f32.mxu1 %vm8137_vm1, %v8136_v26 }
 0xf66   :  { %v8561_v29 = vpop.f32.mrb[12].mxu0 }
 0xf67   :  { %v7138_v30 = vpop.f32.mrb[13].mxu0 }
 0xf6a   :  { %v8563_v32 = vpop.f32.mrb[18].mxu1  ;;  %v1676_v33 = vpop.f32.mrb[14].mxu0 }
 0xf6b   :  { %v1677_v34 = vadd.f32 %v8313_v3, %v1676_v33  ;;  %v7143_v27 = vpop.f32.mrb[19].mxu1  ;;  %v7148_v38 = vpop.f32.mrb[15].mxu0  ;;  %v2308_v33 = vmul.f32 %v8603_v25, %v8603_v25 }
 0xf6d   :  { %v1758_v39 = vsel %vm318_vm3, %v1677_v34, -inf  ;;  %v2310_v27 = vsel %vm60_vm0, %v2308_v33, 0.0 }
 0xf6e   :  { %1759 = vmax.xlane.f32.xlu0 %v1758_v39  ;;  %v1754_v41 = vpop.f32.mrb[20].mxu1 }
 0xf6f   :  { %v1755_v9 = vadd.f32 %v8321_v14, %v1754_v41  ;;  %v7153_v8 = vpop.f32.mrb[21].mxu1  ;;  %v7591_v14 = vpack.c.bf16 %v7781_v61, %v7776_v21  ;;  %v8628_v41 = vld [vmem:[%s9426_s5 + $0x28] sm:$0xff] }
 0xf71   :  { %v1761_v42 = vsel %vm318_vm3, %v1755_v9, -inf }
 0xf72   :  { %1762 = vmax.xlane.f32.xlu1 %v1761_v42 }
 0xf83   :  { %1856 = vrot.lane.b32.xlu1 %v8505_v40, %s8142_s27 }
 0xf87   :  { %7793 = vrot.lane.b32.xlu1 %v7792_v18, %s8138_s15 }
 0xf8b   :  { %7798 = vrot.lane.b32.xlu1 %v7797_v51, %s8138_s15  ;;  %v6684_v51 = vld [vmem:[%s9425_s4 + $0x3] ss:$0 sm:$0xff] }
 0xffb   :  { %v1760_v43 = vpop.xlane.xlu0 %1759 }
 0xffc   :  { %v1764_v45 = vsub.f32 %v1677_v34, %v1760_v43  ;;  %v8618_v34 = vld [vmem:[%s9421_s0 + $0x18] sm:$0xff] }
 0xffd   :  { %v2309_v38 = vmul.f32 %v8618_v34, %v8618_v34 }
 0xffe   :  { %v1766_v47 = vmul.f32 1.442695, %v1764_v45 }
 0xfff   :  { %v1763_v48 = vpop.xlane.xlu1 %1762  ;;  %v2313_v39 = vsel %vm60_vm0, %v2309_v38, 0.0  ;;  %v7807_v38 = vpack.i.bf16 %v8396_v13, %v8389_v10 }
0x1000   :  { %7998 = vpow2.f32 %v1766_v47  ;;  %v1765_v3 = vsub.f32 %v1755_v9, %v1763_v48  ;;  %v8633_v9 = vld [vmem:[%s9426_s5 + $0x78] sm:$0xff] }
0x1001   :  { %v7615_v8 = vpack.c.bf16 %v8633_v9, %v8628_v41 }
0x1002   :  { %v1768_v49 = vmul.f32 1.442695, %v1765_v3 }
0x1003   :  { %v1857_v50 = vpop.permute.xlu1 %1856 }
0x1004   :  { %8000 = vpow2.f32 %v1768_v49  ;;  %7160 = vmatpush3.msra.mxu1 %v1857_v50 }
0x1005   :  { %7592 = vmatprep.subr.bf16.mxu1 %v7591_v14 }
0x1007   :  { %v7794_v6 = vpop.permute.xlu1 %7793 }
0x1008   :  { %v7796_v7 = vunpack.i.h.bf16 %v7794_v6  ;;  %v7795_v11 = vunpack.i.l.bf16 %v7794_v6 }
0x100a   :  { %v7999_v31 = vpop.eup %7998  ;;  %v7583_v52 = vpack.c.bf16 %v7796_v7, %v7795_v11  ;;  %v6690_v7 = vld [vmem:[%s9425_s4 + $0x5] ss:$0 sm:$0xff] }
0x100b   :  { %v1770_v35 = vsel %vm318_vm3, %v7999_v31, 0.0  ;;  %v7799_v59 = vpop.permute.xlu1 %7798 }
0x100c   :  { %1771 = vadd.xlane.f32.xlu0 %v1770_v35  ;;  %v7801_v60 = vunpack.i.h.bf16 %v7799_v59  ;;  %v7800_v0 = vunpack.i.l.bf16 %v7799_v59 }
0x100e   :  { %v8001_v40 = vpop.eup %8000  ;;  %v7587_v62 = vpack.c.bf16 %v7801_v60, %v7800_v0 }
0x100f   :  { %v1773_v53 = vsel %vm318_vm3, %v8001_v40, 0.0 }
0x1010   :  { %1774 = vadd.xlane.f32.xlu0 %v1773_v53 }
0x1026   :  { %1780 = vrot.lane.b32.xlu0 %v8509_v28, %s8142_s27 }
0x1099   :  { %v1772_v61 = vpop.xlane.xlu0 %1771 }
0x109a   :  { %8002 = vrcp.f32 %v1772_v61 }
0x109d   :  { %v1775_v21 = vpop.xlane.xlu0 %1774 }
0x109e   :  { %8004 = vrcp.f32 %v1775_v21 }
0x10a1   :  { %v1781_v54 = vpop.permute.xlu0 %1780 }
0x10a2   :  { %7155 = vmatpush3.msra.mxu0 %v1781_v54  ;;  %v8645_v54 = vld [vmem:[%s9426_s5 + $0xc8] sm:$0xff] }
0x10a3   :  { %7584 = vmatprep.subr.bf16.mxu0 %v7583_v52 }
0x10a4   :  { %v8003_v55 = vpop.eup %8002 }
0x10a5   :  { %v1777_v56 = vmul.f32 %v8003_v55, %v7999_v31  ;;  %v8650_v55 = vld [vmem:[%s9426_s5 + $0x118] sm:$0xff] }
0x10a6   :  { %v7619_v6 = vpack.c.bf16 %v8650_v55, %v8645_v54 }
0x10a7   :  { %7157 = vmatmul.mubr.msk.f32.vlgmr.msra.gmra.mrb[16].mxu0 %vm318_vm3, %v1777_v56 }
0x10a8   :  { %v8005_v28 = vpop.eup %8004  ;;  %7586 = vmatpush3.bf16.msra.mxu0 %v7583_v52 }
0x10a9   :  { %v1779_v57 = vmul.f32 %v8005_v28, %v8001_v40  ;;  %7588 = vmatprep.subr.bf16.mxu0 %v7587_v62 }
0x10ab   :  { %7162 = vmatmul.mubr.msk.f32.vlgmr.msra.gmra.mrb[22].mxu1 %vm318_vm3, %v1779_v57 }
0x10ac   :  { %7594 = vmatpush3.bf16.msra.mxu1 %v7591_v14  ;;  %7590 = vmatpush3.bf16.msra.mxu0 %v7587_v62 }
0x10ad   :  { %7596 = vmatprep.subr.bf16.mxu1 %v8479_v58 }
0x10b0   :  { %7598 = vmatpush3.bf16.msra.mxu1 %v8479_v58 }
0x10b1   :  { %7616 = vmatprep.subr.bf16.mxu1 %v7615_v8 }
0x117a   :  { %v1852_v63 = vpop.f32.mrb[16].mxu0 }
0x117b   :  { %1934 = vrot.lane.b32.xlu0 %v1852_v63, %s8144_s28  ;;  %v7158_v2 = vpop.f32.mrb[17].mxu0 }
0x117e   :  { %v1928_v12 = vpop.f32.mrb[22].mxu1 }
0x117f   :  { %1936 = vrot.lane.b32.xlu1 %v1928_v12, %s8144_s28  ;;  %v7163_v58 = vpop.f32.mrb[23].mxu1 }
0x11ed   :  { %v1935_v15 = vpop.permute.xlu0 %1934 }
0x11ee   :  { %v1940_v1 = vsel %vm166_vm2, %v8561_v29, %v1935_v15 }
0x11ef   :  { %7172 = vmatprep.mubr.msk.f32.mxu0 %vm60_vm0, %v1940_v1 }
0x11f1   :  { %v1937_v19 = vpop.permute.xlu1 %1936 }
0x11f2   :  { %v1941_v20 = vsel %vm166_vm2, %v8563_v32, %v1937_v19  ;;  %v32_v19 = vld [vmem:[%s9423_s2] sm:$0xff] }
0x11f3   :  { %7173 = vmatmul.mubr.msk.f32.vlgmr.msra.gmra.mrb[18].mxu0 %vm60_vm0, %v1941_v20 }
0x12c6   :  { %v7174_v22 = vpop.f32.mrb[18].mxu0 }
0x12c7   :  { %v8598_v23 = vadd.f32 %v7174_v22, %v8458_v44  ;;  %v2026_v24 = vpop.f32.mrb[19].mxu0 }
0x12c8   :  { %v8606_v29 = vadd.f32 %v2026_v24, %v8461_v46 }
0x12c9   :  { %v2039_v30 = vmul.f32 %v8598_v23, %v8598_v23 }
0x12ca   :  { %v2038_v32 = vmul.f32 %v8606_v29, %v8606_v29 }
0x12cb   :  { %v2043_v44 = vsel %vm60_vm0, %v2039_v30, 0.0  ;;  %v33_v30 = vld [vmem:[%s9423_s2 + $0x8] sm:$0xff] }
0x12cc   :  { %2044 = vadd.xlane.f32.xlu1 %v2043_v44  ;;  %v2040_v46 = vsel %vm60_vm0, %v2038_v32, 0.0 }
0x12cd   :  { %2041 = vadd.xlane.f32.xlu0 %v2040_v46 }
0x12d1   :  { %2311 = vadd.xlane.f32.xlu0 %v2310_v27 }
0x12d5   :  { %2314 = vadd.xlane.f32.xlu0 %v2313_v39  ;;  %v7812_v39 = vpack.i.bf16 %v8408_v17, %v8403_v16 }
0x1359   :  { %v2045_v42 = vpop.xlane.xlu1 %2044 }
0x135a   :  { %v2047_v43 = vmul.f32 0.03125, %v2045_v42  ;;  %v2042_v45 = vpop.xlane.xlu0 %2041  ;;  %v7802_v42 = vpack.i.bf16 %v8384_v5, %v8379_v4 }
0x135b   :  { %v2046_v47 = vmul.f32 0.03125, %v2042_v45 }
0x135c   :  { %v2049_v48 = vadd.f32 1e-06, %v2047_v43 }
0x135d   :  { %v2048_v3 = vadd.f32 1e-06, %v2046_v47 }
0x135e   :  { %8006 = vrsqrt.f32 %v2049_v48  ;;  %v2312_v49 = vpop.xlane.xlu0 %2311 }
0x135f   :  { %8008 = vrsqrt.f32 %v2048_v3  ;;  %v2316_v50 = vmul.f32 0.03125, %v2312_v49 }
0x1361   :  { %v2318_v14 = vadd.f32 1e-06, %v2316_v50 }
0x1362   :  { %v2315_v31 = vpop.xlane.xlu0 %2314 }
0x1363   :  { %8010 = vrsqrt.f32 %v2318_v14  ;;  %v2317_v35 = vmul.f32 0.03125, %v2315_v31 }
0x1365   :  { %v2319_v40 = vadd.f32 1e-06, %v2317_v35 }
0x1367   :  { %8012 = vrsqrt.f32 %v2319_v40 }
0x1368   :  { %v8007_v53 = vpop.eup %8006 }
0x1369   :  { %v8009_v18 = vpop.eup %8008  ;;  %v2053_v61 = vmul.f32 %v8007_v53, %v8598_v23 }
0x136a   :  { %v2052_v21 = vmul.f32 %v8009_v18, %v8606_v29 }
0x136b   :  { %v2059_v57 = vmul.f32 %v6684_v51, %v2053_v61 }
0x136c   :  { %v2058_v56 = vmul.f32 %v6684_v51, %v2052_v21 }
0x136d   :  { %v8011_v28 = vpop.eup %8010 }
0x136e   :  { %7183 = vmatprep.mubr.msk.f32.mxu1 %vm60_vm0, %v2058_v56  ;;  %v2322_v11 = vmul.f32 %v8011_v28, %v8603_v25 }
0x136f   :  { %7184 = vmatmul.mubr.msk.f32.vlgmr.msra.gmra.mrb[24].mxu1 %vm60_vm0, %v2059_v57 }
0x1370   :  { %7618 = vmatpush3.bf16.msra.mxu1 %v7615_v8  ;;  %v2328_v52 = vmul.f32 %v6690_v7, %v2322_v11  ;;  %v7817_v8 = vpack.i.bf16 %v8427_v37, %v8422_v36 }
0x1371   :  { %v8013_v59 = vpop.eup %8012  ;;  %7620 = vmatprep.subr.bf16.mxu1 %v7619_v6 }
0x1372   :  { %v2323_v60 = vmul.f32 %v8013_v59, %v8618_v34  ;;  %7213 = vmatprep.mubr.msk.f32.mxu1 %vm60_vm0, %v2328_v52 }
0x1374   :  { %v2329_v0 = vmul.f32 %v6690_v7, %v2323_v60  ;;  %7622 = vmatpush3.bf16.msra.mxu1 %v7619_v6 }
0x1375   :  { %7216 = vmatprep.subr.mxu1 %v8136_v26 }
0x1377   :  { %7214 = vmatmul.mubr.msk.f32.vlgmr.msra.gmra.mrb[26].mxu1 %vm60_vm0, %v2329_v0 }
0x1378   :  { %7218 = vmatprep.mubr.msk.f32.mxu1 %vm8137_vm1, %v8136_v26 }
0x1442   :  { %v8666_v62 = vpop.f32.mrb[24].mxu1 }
0x1443   :  { %v2136_v63 = vpop.f32.mrb[25].mxu1  ;;  %v2146_v6 = vmax.f32 %v8666_v62, 0.0 }
0x1444   :  { %v2145_v2 = vmax.f32 %v2136_v63, 0.0 }
0x1446   :  { %7202 = vmatprep.mubr.msk.f32.mxu0 %vm1038_vm4, %v2145_v2 }
0x144a   :  { %v8669_v12 = vpop.f32.mrb[26].mxu1 }
0x144b   :  { %2489 = vrot.lane.b32.xlu1 %v8669_v12, %s8138_s15  ;;  %v8673_v58 = vpop.f32.mrb[27].mxu1 }
0x144c   :  { %2412 = vrot.lane.b32.xlu0 %v8673_v58, %s8138_s15 }
0x14bd   :  { %v2490_v1 = vpop.permute.xlu1 %2489 }
0x14be   :  { %v2413_v15 = vpop.permute.xlu0 %2412 }
0x14bf   :  { %7217 = vmatpush3.xpose.msk.msra.mxu1 %vm166_vm2, %v2413_v15 }
0x14c0   :  { %7221 = vmatprep.subr.mxu1 %v8136_v26 }
0x14c2   :  { %7219 = vmatmul.mubr.msk.f32.vlgmr.msra.gmra.mrb[28].mxu1 %vm166_vm2, %v8673_v58 }
0x14c3   :  { %7222 = vmatpush3.xpose.msk.msra.mxu1 %vm166_vm2, %v2490_v1  ;;  %7223 = vmatprep.mubr.msk.f32.mxu1 %vm8137_vm1, %v8136_v26 }
0x14c4   :  { %7231 = vmatprep.subr.mxu1 %v8136_v26 }
0x14c6   :  { %7224 = vmatmul.mubr.msk.f32.vlgmr.msra.gmra.mrb[30].mxu1 %vm166_vm2, %v8669_v12 }
0x14c7   :  { %7233 = vmatprep.mubr.msk.f32.mxu1 %vm8137_vm1, %v8136_v26 }
0x1595   :  { %v2484_v20 = vpop.f32.mrb[28].mxu1 }
0x1596   :  { %v2485_v22 = vadd.f32 %v2484_v20, %v32_v19  ;;  %v7220_v24 = vpop.f32.mrb[29].mxu1 }
0x1598   :  { %v2565_v32 = vsel %vm318_vm3, %v2485_v22, -inf }
0x1599   :  { %2566 = vmax.xlane.f32.xlu1 %v2565_v32  ;;  %v2561_v33 = vpop.f32.mrb[30].mxu1 }
0x159a   :  { %v2562_v44 = vadd.f32 %v2561_v33, %v33_v30  ;;  %v7225_v46 = vpop.f32.mrb[31].mxu1  ;;  %v6643_v30 = vld [vmem:[%s9423_s2 + $0x10] sm:$0xff] }
0x159c   :  { %v2568_v27 = vsel %vm318_vm3, %v2562_v44, -inf }
0x159d   :  { %2569 = vmax.xlane.f32.xlu0 %v2568_v27 }
0x15aa   :  { %7808 = vrot.lane.b32.xlu1 %v7807_v38, %s8138_s15  ;;  %v6644_v38 = vld [vmem:[%s9423_s2 + $0x18] sm:$0xff] }
0x15ae   :  { %7813 = vrot.lane.b32.xlu1 %v7812_v39, %s8138_s15 }
0x15b2   :  { %7818 = vrot.lane.b32.xlu1 %v7817_v8, %s8138_s15 }
0x15b3   :  { %7803 = vrot.lane.b32.xlu0 %v7802_v42, %s8138_s15 }
0x15b6   :  { %2663 = vrot.lane.b32.xlu1 %v8669_v12, %s8140_s21 }
0x15b7   :  { %2587 = vrot.lane.b32.xlu0 %v8673_v58, %s8140_s21 }
0x15ba   :  { %2819 = vrot.lane.b32.xlu1 %v8669_v12, %s8139_s20 }
0x15bb   :  { %2741 = vrot.lane.b32.xlu0 %v8673_v58, %s8139_s20 }
0x1626   :  { %v2567_v10 = vpop.xlane.xlu1 %2566 }
0x1627   :  { %v2571_v13 = vsub.f32 %v2485_v22, %v2567_v10 }
0x1629   :  { %v2573_v16 = vmul.f32 1.442695, %v2571_v13 }
0x162a   :  { %v7809_v4 = vpop.permute.xlu1 %7808  ;;  %v2570_v5 = vpop.xlane.xlu0 %2569 }
0x162b   :  { %8014 = vpow2.f32 %v2573_v16  ;;  %v2572_v17 = vsub.f32 %v2562_v44, %v2570_v5  ;;  %v7811_v37 = vunpack.i.h.bf16 %v7809_v4  ;;  %v7810_v43 = vunpack.i.l.bf16 %v7809_v4 }
0x162d   :  { %v2575_v36 = vmul.f32 1.442695, %v2572_v17  ;;  %v7603_v35 = vpack.c.bf16 %v7811_v37, %v7810_v43 }
0x162e   :  { %v7814_v45 = vpop.permute.xlu1 %7813  ;;  %v7804_v47 = vpop.permute.xlu0 %7803 }
0x162f   :  { %8016 = vpow2.f32 %v2575_v36  ;;  %v7806_v48 = vunpack.i.h.bf16 %v7804_v47  ;;  %v7805_v3 = vunpack.i.l.bf16 %v7804_v47  ;;  %v7816_v49 = vunpack.i.h.bf16 %v7814_v45 }
0x1630   :  { %v7815_v50 = vunpack.i.l.bf16 %v7814_v45 }
0x1631   :  { %v7599_v31 = vpack.c.bf16 %v7806_v48, %v7805_v3 }
0x1632   :  { %v7819_v14 = vpop.permute.xlu1 %7818  ;;  %v7607_v21 = vpack.c.bf16 %v7816_v49, %v7815_v50  ;;  %v2588_v7 = vpop.permute.xlu0 %2587  ;;  %v7827_v49 = vpack.i.bf16 %v8650_v55, %v8645_v54 }
0x1633   :  { %7600 = vmatprep.subr.bf16.mxu0 %v7599_v31  ;;  %v7821_v53 = vunpack.i.h.bf16 %v7819_v14  ;;  %v7820_v18 = vunpack.i.l.bf16 %v7819_v14 }
0x1634   :  { %7602 = vmatpush3.bf16.msra.mxu0 %v7599_v31 }
0x1635   :  { %v8015_v40 = vpop.eup %8014  ;;  %7604 = vmatprep.subr.bf16.mxu0 %v7603_v35  ;;  %v7611_v57 = vpack.c.bf16 %v7821_v53, %v7820_v18 }
0x1636   :  { %v2664_v51 = vpop.permute.xlu1 %2663  ;;  %v2577_v61 = vsel %vm318_vm3, %v8015_v40, 0.0  ;;  %v2742_v11 = vpop.permute.xlu0 %2741 }
0x1637   :  { %7232 = vmatpush3.msra.mxu1 %v2664_v51  ;;  %2578 = vadd.xlane.f32.xlu0 %v2577_v61 }
0x1638   :  { %7241 = vmatprep.subr.mxu1 %v8136_v26  ;;  %7606 = vmatpush3.bf16.msra.mxu0 %v7603_v35 }
0x1639   :  { %v8017_v56 = vpop.eup %8016  ;;  %7608 = vmatprep.subr.bf16.mxu0 %v7607_v21 }
0x163a   :  { %v2580_v28 = vsel %vm318_vm3, %v8017_v56, 0.0  ;;  %v2820_v52 = vpop.permute.xlu1 %2819 }
0x163b   :  { %2581 = vadd.xlane.f32.xlu1 %v2580_v28 }
0x163c   :  { %7610 = vmatpush3.bf16.msra.mxu0 %v7607_v21 }
0x163d   :  { %7612 = vmatprep.subr.bf16.mxu0 %v7611_v57 }
0x1640   :  { %7614 = vmatpush3.bf16.msra.mxu0 %v7611_v57 }
0x1641   :  { %7226 = vmatprep.subr.mxu0 %v8136_v26 }
0x1643   :  { %7203 = vmatmul.mubr.msk.f32.vlgmr.msra.gmra.mrb[20].mxu0 %vm1038_vm4, %v2146_v6 }
0x1644   :  { %7227 = vmatpush3.msra.mxu0 %v2588_v7  ;;  %7228 = vmatprep.mubr.msk.f32.mxu0 %vm8137_vm1, %v8136_v26 }
0x1645   :  { %7236 = vmatprep.subr.mxu0 %v8136_v26 }
0x164c   :  { %2817 = vrot.lane.b32.xlu1 %v8669_v12, %s8141_s22 }
0x164d   :  { %2739 = vrot.lane.b32.xlu0 %v8673_v58, %s8141_s22 }
0x16c4   :  { %v2579_v59 = vpop.xlane.xlu0 %2578 }
0x16c5   :  { %8018 = vrcp.f32 %v2579_v59 }
0x16c8   :  { %v2582_v60 = vpop.xlane.xlu1 %2581  ;;  %v2740_v15 = vpop.permute.xlu0 %2739 }
0x16c9   :  { %8020 = vrcp.f32 %v2582_v60 }
0x16cc   :  { %v2818_v1 = vpop.permute.xlu1 %2817 }
0x16cf   :  { %v8019_v0 = vpop.eup %8018 }
0x16d0   :  { %v2584_v62 = vmul.f32 %v8019_v0, %v8015_v40 }
0x16d2   :  { %7229 = vmatmul.mubr.msk.f32.vlgmr.msra.gmra.mrb[22].mxu0 %vm318_vm3, %v2584_v62 }
0x16d3   :  { %v8021_v63 = vpop.eup %8020  ;;  %7237 = vmatpush3.xpose.msk.msra.mxu0 %vm166_vm2, %v2742_v11  ;;  %7238 = vmatprep.mubr.msk.f32.mxu0 %vm8137_vm1, %v8136_v26 }
0x16d4   :  { %v2586_v2 = vmul.f32 %v8021_v63, %v8017_v56  ;;  %7246 = vmatprep.subr.mxu0 %v8136_v26 }
0x16d6   :  { %7234 = vmatmul.mubr.msk.f32.vlgmr.msra.gmra.mrb[32].mxu1 %vm318_vm3, %v2586_v2  ;;  %7239 = vmatmul.mubr.msk.f32.vlgmr.msra.gmra.mrb[24].mxu0 %vm166_vm2, %v2740_v15 }
0x16d7   :  { %7242 = vmatpush3.xpose.msk.msra.mxu1 %vm166_vm2, %v2820_v52  ;;  %7243 = vmatprep.mubr.msk.f32.mxu1 %vm8137_vm1, %v8136_v26 }
0x16d8   :  { %7251 = vmatprep.subr.mxu1 %v8136_v26  ;;  %7248 = vmatprep.mubr.msk.f32.mxu0 %vm8137_vm1, %v8136_v26 }
0x16da   :  { %7244 = vmatmul.mubr.msk.f32.vlgmr.msra.gmra.mrb[34].mxu1 %vm166_vm2, %v2818_v1 }
0x16db   :  { %7253 = vmatprep.mubr.msk.f32.mxu1 %vm8137_vm1, %v8136_v26 }
0x1716   :  { %v8746_v19 = vpop.f32.mrb[20].mxu0 }
0x1717   :  { %v8748_v20 = vpop.f32.mrb[21].mxu0  ;;  %v8783_v59 = vadd.f32 %v8746_v19, %v8598_v23 }
0x1718   :  { %v2260_v7 = vadd.f32 %v8748_v20, %v8606_v29  ;;  %v6689_v20 = vld [vmem:[%s9425_s4 + $0x4] ss:$0 sm:$0xff] }
0x1719   :  { %v2264_v60 = vmul.f32 %v8783_v59, %v8783_v59 }
0x171a   :  { %v2263_v11 = vmul.f32 %v2260_v7, %v2260_v7 }
0x171b   :  { %v2268_v0 = vsel %vm60_vm0, %v2264_v60, 0.0 }
0x171c   :  { %v2265_v52 = vsel %vm60_vm0, %v2263_v11, 0.0  ;;  %v8870_v11 = vld [vmem:[%s9424_s3] ss:$0 sm:$0xff] }
0x17a5   :  { %v8750_v22 = vpop.f32.mrb[22].mxu0 }
0x17a6   :  { %v7230_v24 = vpop.f32.mrb[23].mxu0 }
0x17a9   :  { %v8755_v32 = vpop.f32.mrb[32].mxu1  ;;  %v2813_v33 = vpop.f32.mrb[24].mxu0 }
0x17aa   :  { %v2814_v44 = vadd.f32 %v6643_v30, %v2813_v33  ;;  %v7235_v46 = vpop.f32.mrb[33].mxu1  ;;  %v7240_v27 = vpop.f32.mrb[25].mxu0 }
0x17ac   :  { %v2895_v39 = vsel %vm318_vm3, %v2814_v44, -inf }
0x17ad   :  { %v2891_v8 = vpop.f32.mrb[34].mxu1  ;;  %2896 = vmax.xlane.f32.xlu0 %v2895_v39 }
0x17ae   :  { %v2892_v42 = vadd.f32 %v6644_v38, %v2891_v8  ;;  %v7245_v10 = vpop.f32.mrb[35].mxu1 }
0x17b0   :  { %v2898_v13 = vsel %vm318_vm3, %v2892_v42, -inf }
0x17b1   :  { %2899 = vmax.xlane.f32.xlu1 %v2898_v13 }
0x17c2   :  { %2993 = vrot.lane.b32.xlu1 %v8669_v12, %s8142_s27  ;;  %v7822_v12 = vpack.i.bf16 %v8633_v9, %v8628_v41 }
0x17c6   :  { %7823 = vrot.lane.b32.xlu1 %v7822_v12, %s8143_s1 }
0x17ca   :  { %7828 = vrot.lane.b32.xlu1 %v7827_v49, %s8143_s1 }
0x183a   :  { %v2897_v16 = vpop.xlane.xlu0 %2896 }
0x183b   :  { %v2901_v4 = vsub.f32 %v2814_v44, %v2897_v16 }
0x183d   :  { %v2903_v5 = vmul.f32 1.442695, %v2901_v4 }
0x183e   :  { %v2900_v17 = vpop.xlane.xlu1 %2899 }
0x183f   :  { %8022 = vpow2.f32 %v2903_v5  ;;  %v2902_v36 = vsub.f32 %v2892_v42, %v2900_v17 }
0x1841   :  { %v2905_v37 = vmul.f32 1.442695, %v2902_v36 }
0x1842   :  { %v2994_v43 = vpop.permute.xlu1 %2993 }
0x1843   :  { %8024 = vpow2.f32 %v2905_v37  ;;  %7252 = vmatpush3.msra.mxu1 %v2994_v43 }
0x1846   :  { %v7824_v41 = vpop.permute.xlu1 %7823 }
0x1847   :  { %v7826_v9 = vunpack.i.h.bf16 %v7824_v41  ;;  %v7825_v18 = vunpack.i.l.bf16 %v7824_v41 }
0x1849   :  { %v8023_v45 = vpop.eup %8022  ;;  %v7623_v54 = vpack.c.bf16 %v7826_v9, %v7825_v18 }
0x184a   :  { %v2907_v47 = vsel %vm318_vm3, %v8023_v45, 0.0  ;;  %v7829_v55 = vpop.permute.xlu1 %7828 }
0x184b   :  { %2908 = vadd.xlane.f32.xlu0 %v2907_v47  ;;  %v7831_v51 = vunpack.i.h.bf16 %v7829_v55  ;;  %v7830_v61 = vunpack.i.l.bf16 %v7829_v55 }
0x184d   :  { %v8025_v48 = vpop.eup %8024  ;;  %v7627_v21 = vpack.c.bf16 %v7831_v51, %v7830_v61  ;;  %v6707_v51 = vld [vmem:[%s9425_s4 + $0x6] ss:$0 sm:$0xff] }
0x184e   :  { %v2910_v3 = vsel %vm318_vm3, %v8025_v48, 0.0 }
0x184f   :  { %2911 = vadd.xlane.f32.xlu0 %v2910_v3 }
0x1865   :  { %2917 = vrot.lane.b32.xlu0 %v8673_v58, %s8142_s27 }
0x18d8   :  { %v2909_v50 = vpop.xlane.xlu0 %2908 }
0x18d9   :  { %8026 = vrcp.f32 %v2909_v50 }
0x18dc   :  { %v2912_v14 = vpop.xlane.xlu0 %2911 }
0x18dd   :  { %8028 = vrcp.f32 %v2912_v14 }
0x18e0   :  { %v2918_v31 = vpop.permute.xlu0 %2917 }
0x18e1   :  { %7247 = vmatpush3.msra.mxu0 %v2918_v31 }
0x18e2   :  { %7624 = vmatprep.subr.bf16.mxu0 %v7623_v54 }
0x18e3   :  { %v8027_v35 = vpop.eup %8026 }
0x18e4   :  { %v2914_v40 = vmul.f32 %v8027_v35, %v8023_v45 }
0x18e6   :  { %7249 = vmatmul.mubr.msk.f32.vlgmr.msra.gmra.mrb[26].mxu0 %vm318_vm3, %v2914_v40 }
0x18e7   :  { %v8029_v58 = vpop.eup %8028  ;;  %7626 = vmatpush3.bf16.msra.mxu0 %v7623_v54 }
0x18e8   :  { %v2916_v53 = vmul.f32 %v8029_v58, %v8025_v48  ;;  %7628 = vmatprep.subr.bf16.mxu0 %v7627_v21 }
0x18ea   :  { %7254 = vmatmul.mubr.msk.f32.vlgmr.msra.gmra.mrb[36].mxu1 %vm318_vm3, %v2916_v53 }
0x18eb   :  { %7630 = vmatpush3.bf16.msra.mxu0 %v7627_v21 }
0x19b9   :  { %v2989_v56 = vpop.f32.mrb[26].mxu0 }
0x19ba   :  { %3071 = vrot.lane.b32.xlu0 %v2989_v56, %s8144_s28  ;;  %v7250_v28 = vpop.f32.mrb[27].mxu0 }
0x19bd   :  { %v3065_v57 = vpop.f32.mrb[36].mxu1 }
0x19be   :  { %3073 = vrot.lane.b32.xlu1 %v3065_v57, %s8144_s28  ;;  %v7255_v6 = vpop.f32.mrb[37].mxu1 }
0x19d9   :  { %2266 = vadd.xlane.f32.xlu0 %v2265_v52 }
0x19e2   :  { %2269 = vadd.xlane.f32.xlu1 %v2268_v0  ;;  %v8876_v0 = vld [vmem:[%s9424_s3 + $0x1] ss:$0 sm:$0xff] }
0x1a2c   :  { %v3072_v62 = vpop.permute.xlu0 %3071 }
0x1a2d   :  { %v3077_v63 = vsel %vm166_vm2, %v8750_v22, %v3072_v62  ;;  %v2293_v22 = vld [vmem:[%s9426_s5 + $0xd0] sm:$0xff] }
0x1a2e   :  { %7264 = vmatprep.mubr.msk.f32.mxu0 %vm60_vm0, %v3077_v63 }
0x1a30   :  { %v3074_v29 = vpop.permute.xlu1 %3073 }
0x1a31   :  { %v3078_v2 = vsel %vm166_vm2, %v8755_v32, %v3074_v29  ;;  %v2294_v32 = vld [vmem:[%s9426_s5 + $0x120] sm:$0xff] }
0x1a32   :  { %7265 = vmatmul.mubr.msk.f32.vlgmr.msra.gmra.mrb[28].mxu0 %vm60_vm0, %v3078_v2  ;;  %v8807_v33 = vpack.i.bf16 %v2294_v32, %v2293_v22  ;;  %v7635_v4 = vpack.c.bf16 %v2294_v32, %v2293_v22 }
0x1a34   :  { %7838 = vrot.lane.b32.xlu1 %v8807_v33, %s8138_s15 }
0x1a66   :  { %v2267_v23 = vpop.xlane.xlu0 %2266 }
0x1a67   :  { %v2271_v15 = vmul.f32 0.03125, %v2267_v23 }
0x1a69   :  { %v2273_v1 = vadd.f32 1e-06, %v2271_v15 }
0x1a6b   :  { %8030 = vrsqrt.f32 %v2273_v1 }
0x1a6f   :  { %v2270_v5 = vpop.xlane.xlu1 %2269 }
0x1a70   :  { %v2272_v17 = vmul.f32 0.03125, %v2270_v5 }
0x1a72   :  { %v2274_v36 = vadd.f32 1e-06, %v2272_v17 }
0x1a74   :  { %8032 = vrsqrt.f32 %v2274_v36 }
0x1a75   :  { %v8031_v19 = vpop.eup %8030 }
0x1a76   :  { %v2277_v24 = vmul.f32 %v8031_v19, %v2260_v7 }
0x1a78   :  { %v8797_v30 = vmul.f32 %v6689_v20, %v2277_v24 }
0x1a7a   :  { %7286 = vmatprep.mubr.msk.f32.mxu0 %vm60_vm0, %v8797_v30 }
0x1a7e   :  { %v8033_v53 = vpop.eup %8032 }
0x1a7f   :  { %v2278_v41 = vmul.f32 %v8033_v53, %v8783_v59 }
0x1a81   :  { %v8835_v54 = vmul.f32 %v6689_v20, %v2278_v41 }
0x1aa6   :  { %v7839_v48 = vpop.permute.xlu1 %7838 }
0x1aa7   :  { %v7841_v49 = vunpack.i.h.bf16 %v7839_v48  ;;  %v7840_v50 = vunpack.i.l.bf16 %v7839_v48 }
0x1aa9   :  { %v7643_v58 = vpack.c.bf16 %v7841_v49, %v7840_v50 }
0x1b05   :  { %v7266_v44 = vpop.f32.mrb[28].mxu0 }
0x1b06   :  { %v8812_v46 = vadd.f32 %v7266_v44, %v8618_v34  ;;  %v3167_v27 = vpop.f32.mrb[29].mxu0  ;;  %v2291_v34 = vld [vmem:[%s9426_s5 + $0x30] sm:$0xff] }
0x1b07   :  { %v8815_v38 = vadd.f32 %v3167_v27, %v8603_v25  ;;  %v2292_v25 = vld [vmem:[%s9426_s5 + $0x80] sm:$0xff] }
0x1b08   :  { %v3180_v39 = vmul.f32 %v8812_v46, %v8812_v46  ;;  %v8829_v13 = vpack.i.bf16 %v2292_v25, %v2291_v34  ;;  %v7631_v16 = vpack.c.bf16 %v2292_v25, %v2291_v34 }
0x1b09   :  { %v3179_v42 = vmul.f32 %v8815_v38, %v8815_v38 }
0x1b0a   :  { %v3184_v8 = vsel %vm60_vm0, %v3180_v39, 0.0  ;;  %7632 = vmatprep.subr.bf16.mxu1 %v7631_v16 }
0x1b0b   :  { %3185 = vadd.xlane.f32.xlu0 %v3184_v8  ;;  %v3181_v10 = vsel %vm60_vm0, %v3179_v42, 0.0  ;;  %7634 = vmatpush3.bf16.msra.mxu1 %v7631_v16 }
0x1b0c   :  { %7636 = vmatprep.subr.bf16.mxu1 %v7635_v4 }
0x1b0f   :  { %3182 = vadd.xlane.f32.xlu0 %v3181_v10  ;;  %7638 = vmatpush3.bf16.msra.mxu1 %v7635_v4 }
0x1b10   :  { %7289 = vmatprep.subr.mxu1 %v8136_v26 }
0x1b25   :  { %7833 = vrot.lane.b32.xlu0 %v8829_v13, %s8138_s15 }
0x1b98   :  { %v3186_v37 = vpop.xlane.xlu0 %3185 }
0x1b99   :  { %v3188_v43 = vmul.f32 0.03125, %v3186_v37 }
0x1b9b   :  { %v3190_v45 = vadd.f32 1e-06, %v3188_v43 }
0x1b9c   :  { %v3183_v47 = vpop.xlane.xlu0 %3182 }
0x1b9d   :  { %v3187_v3 = vmul.f32 0.03125, %v3183_v47  ;;  %8034 = vrsqrt.f32 %v3190_v45 }
0x1b9f   :  { %v3189_v12 = vadd.f32 1e-06, %v3187_v3 }
0x1ba0   :  { %v7834_v14 = vpop.permute.xlu0 %7833 }
0x1ba1   :  { %8036 = vrsqrt.f32 %v3189_v12  ;;  %v7836_v31 = vunpack.i.h.bf16 %v7834_v14  ;;  %v7835_v35 = vunpack.i.l.bf16 %v7834_v14 }
0x1ba3   :  { %v7639_v40 = vpack.c.bf16 %v7836_v31, %v7835_v35 }
0x1ba5   :  { %7640 = vmatprep.subr.bf16.mxu0 %v7639_v40 }
0x1ba6   :  { %7642 = vmatpush3.bf16.msra.mxu0 %v7639_v40 }
0x1ba7   :  { %7644 = vmatprep.subr.bf16.mxu0 %v7643_v58  ;;  %v8035_v9 = vpop.eup %8034 }
0x1ba8   :  { %v3194_v55 = vmul.f32 %v8035_v9, %v8812_v46 }
0x1baa   :  { %7646 = vmatpush3.bf16.msra.mxu0 %v7643_v58  ;;  %v3200_v56 = vmul.f32 %v6707_v51, %v3194_v55 }
0x1bab   :  { %v8037_v18 = vpop.eup %8036  ;;  %7299 = vmatprep.subr.mxu0 %v8136_v26 }
0x1bac   :  { %v3193_v61 = vmul.f32 %v8037_v18, %v8815_v38 }
0x1bad   :  { %7287 = vmatmul.mubr.msk.f32.vlgmr.msra.gmra.mrb[30].mxu0 %vm60_vm0, %v8835_v54 }
0x1bae   :  { %v3199_v21 = vmul.f32 %v6707_v51, %v3193_v61  ;;  %7301 = vmatprep.mubr.msk.f32.mxu0 %vm8137_vm1, %v8136_v26 }
0x1bb0   :  { %7275 = vmatprep.mubr.msk.f32.mxu1 %vm60_vm0, %v3199_v21 }
0x1bb1   :  { %7276 = vmatmul.mubr.msk.f32.vlgmr.msra.gmra.mrb[38].mxu1 %vm60_vm0, %v3200_v56 }
0x1bb2   :  { %7291 = vmatprep.mubr.msk.f32.mxu1 %vm8137_vm1, %v8136_v26 }
0x1c80   :  { %v8851_v28 = vpop.f32.mrb[30].mxu0 }
0x1c81   :  { %v8853_v57 = vpop.f32.mrb[31].mxu0 }
0x1c82   :  { %7290 = vmatpush3.xpose.msk.msra.mxu1 %vm166_vm2, %v8853_v57 }
0x1c83   :  { %7294 = vmatprep.subr.mxu1 %v8136_v26 }
0x1c84   :  { %v7277_v6 = vpop.f32.mrb[38].mxu1 }
0x1c85   :  { %v3273_v7 = vpop.f32.mrb[39].mxu1 }
0x1c86   :  { %7292 = vmatmul.mubr.msk.f32.vlgmr.msra.gmra.mrb[40].mxu1 %vm166_vm2, %v3273_v7 }
0x1c87   :  { %7295 = vmatpush3.xpose.msk.msra.mxu1 %vm166_vm2, %v8851_v28  ;;  %7296 = vmatprep.mubr.msk.f32.mxu1 %vm8137_vm1, %v8136_v26 }
0x1c88   :  { %7304 = vmatprep.subr.mxu1 %v8136_v26 }
0x1c8a   :  { %7297 = vmatmul.mubr.msk.f32.vlgmr.msra.gmra.mrb[42].mxu1 %vm166_vm2, %v7277_v6 }
0x1c8b   :  { %7306 = vmatprep.mubr.msk.f32.mxu1 %vm8137_vm1, %v8136_v26 }
0x1d59   :  { %v3463_v52 = vpop.f32.mrb[40].mxu1 }
0x1d5a   :  { %v3464_v59 = vadd.f32 %v8870_v11, %v3463_v52  ;;  %v7293_v60 = vpop.f32.mrb[41].mxu1 }
0x1d5c   :  { %v3543_v62 = vsel %vm318_vm3, %v3464_v59, -inf }
0x1d5d   :  { %3544 = vmax.xlane.f32.xlu1 %v3543_v62  ;;  %v3539_v63 = vpop.f32.mrb[42].mxu1 }
0x1d5e   :  { %v3540_v29 = vadd.f32 %v8876_v0, %v3539_v63  ;;  %v7298_v2 = vpop.f32.mrb[43].mxu1 }
0x1d60   :  { %v3546_v23 = vsel %vm318_vm3, %v3540_v29, -inf }
0x1d61   :  { %3547 = vmax.xlane.f32.xlu0 %v3546_v23 }
0x1d6e   :  { %3641 = vrot.lane.b32.xlu1 %v8851_v28, %s8138_s15 }
0x1d72   :  { %3719 = vrot.lane.b32.xlu1 %v8853_v57, %s8141_s22 }
0x1d76   :  { %3797 = vrot.lane.b32.xlu1 %v8851_v28, %s8141_s22 }
0x1d77   :  { %3565 = vrot.lane.b32.xlu0 %v8853_v57, %s8138_s15 }
0x1dea   :  { %v3545_v15 = vpop.xlane.xlu1 %3544 }
0x1deb   :  { %v3549_v1 = vsub.f32 %v3464_v59, %v3545_v15 }
0x1ded   :  { %v3551_v19 = vmul.f32 1.442695, %v3549_v1 }
0x1dee   :  { %v3642_v20 = vpop.permute.xlu1 %3641  ;;  %v3548_v24 = vpop.xlane.xlu0 %3547 }
0x1def   :  { %8038 = vpow2.f32 %v3551_v19  ;;  %v3550_v22 = vsub.f32 %v3540_v29, %v3548_v24  ;;  %7305 = vmatpush3.msra.mxu1 %v3642_v20 }
0x1df0   :  { %7314 = vmatprep.subr.mxu1 %v8136_v26 }
0x1df1   :  { %v3553_v32 = vmul.f32 1.442695, %v3550_v22 }
0x1df2   :  { %v3566_v44 = vpop.permute.xlu0 %3565  ;;  %v3720_v10 = vpop.permute.xlu1 %3719 }
0x1df3   :  { %8040 = vpow2.f32 %v3553_v32  ;;  %7300 = vmatpush3.msra.mxu0 %v3566_v44 }
0x1df4   :  { %7309 = vmatprep.subr.mxu0 %v8136_v26 }
0x1df6   :  { %v3798_v34 = vpop.permute.xlu1 %3797 }
0x1df9   :  { %v8039_v27 = vpop.eup %8038 }
0x1dfa   :  { %v3555_v39 = vsel %vm318_vm3, %v8039_v27, 0.0 }
0x1dfb   :  { %3556 = vadd.xlane.f32.xlu0 %v3555_v39 }
0x1dfd   :  { %v8041_v8 = vpop.eup %8040 }
0x1dfe   :  { %v3558_v42 = vsel %vm318_vm3, %v8041_v8, 0.0 }
0x1dff   :  { %3559 = vadd.xlane.f32.xlu1 %v3558_v42 }
0x1e10   :  { %3795 = vrot.lane.b32.xlu1 %v7277_v6, %s8141_s22 }
0x1e11   :  { %3717 = vrot.lane.b32.xlu0 %v3273_v7, %s8141_s22 }
0x1e88   :  { %v3557_v25 = vpop.xlane.xlu0 %3556 }
0x1e89   :  { %8042 = vrcp.f32 %v3557_v25 }
0x1e8c   :  { %v3560_v16 = vpop.xlane.xlu1 %3559  ;;  %v3718_v37 = vpop.permute.xlu0 %3717 }
0x1e8d   :  { %8044 = vrcp.f32 %v3560_v16 }
0x1e90   :  { %v3796_v43 = vpop.permute.xlu1 %3795 }
0x1e93   :  { %v8043_v4 = vpop.eup %8042 }
0x1e94   :  { %v3562_v5 = vmul.f32 %v8043_v4, %v8039_v27 }
0x1e96   :  { %7302 = vmatmul.mubr.msk.f32.vlgmr.msra.gmra.mrb[32].mxu0 %vm318_vm3, %v3562_v5  ;;  %v8964_v5 = vld [vmem:[%s9426_s5 + $0xd8] sm:$0xff] }
0x1e97   :  { %v8045_v17 = vpop.eup %8044  ;;  %7310 = vmatpush3.xpose.msk.msra.mxu0 %vm166_vm2, %v3720_v10  ;;  %7311 = vmatprep.mubr.msk.f32.mxu0 %vm8137_vm1, %v8136_v26 }
0x1e98   :  { %v3564_v36 = vmul.f32 %v8045_v17, %v8041_v8  ;;  %7319 = vmatprep.subr.mxu0 %v8136_v26 }
0x1e9a   :  { %7307 = vmatmul.mubr.msk.f32.vlgmr.msra.gmra.mrb[44].mxu1 %vm318_vm3, %v3564_v36  ;;  %7312 = vmatmul.mubr.msk.f32.vlgmr.msra.gmra.mrb[34].mxu0 %vm166_vm2, %v3718_v37  ;;  %v8971_v36 = vld [vmem:[%s9426_s5 + $0x128] sm:$0xff] }
0x1e9b   :  { %7315 = vmatpush3.xpose.msk.msra.mxu1 %vm166_vm2, %v3798_v34  ;;  %7316 = vmatprep.mubr.msk.f32.mxu1 %vm8137_vm1, %v8136_v26  ;;  %v7659_v37 = vpack.c.bf16 %v8971_v36, %v8964_v5 }
0x1e9c   :  { %7324 = vmatprep.subr.mxu1 %v8136_v26  ;;  %7321 = vmatprep.mubr.msk.f32.mxu0 %vm8137_vm1, %v8136_v26 }
0x1e9e   :  { %7317 = vmatmul.mubr.msk.f32.vlgmr.msra.gmra.mrb[46].mxu1 %vm166_vm2, %v3796_v43  ;;  %v2299_v43 = vld [vmem:[%s9427_s6] sm:$0xff] }
0x1e9f   :  { %7326 = vmatprep.mubr.msk.f32.mxu1 %vm8137_vm1, %v8136_v26 }
0x1f69   :  { %v8911_v45 = vpop.f32.mrb[32].mxu0 }
0x1f6a   :  { %v7303_v47 = vpop.f32.mrb[33].mxu0 }
0x1f6b   :  { %v2301_v47 = vld [vmem:[%s9427_s6 + $0x10] sm:$0xff] }
0x1f6d   :  { %v8913_v48 = vpop.f32.mrb[44].mxu1  ;;  %v3791_v3 = vpop.f32.mrb[34].mxu0 }
0x1f6e   :  { %v3792_v12 = vadd.f32 %v8870_v11, %v3791_v3  ;;  %v7308_v49 = vpop.f32.mrb[45].mxu1  ;;  %v7313_v50 = vpop.f32.mrb[35].mxu0  ;;  %v2302_v3 = vld [vmem:[%s9427_s6 + $0x18] sm:$0xff] }
0x1f6f   :  { %v2304_v49 = vld [vmem:[%s9427_s6 + $0x28] sm:$0xff]  ;;  %v8995_v50 = vpack.i.bf16 %v2302_v3, %v2301_v47 }
0x1f70   :  { %v3873_v14 = vsel %vm318_vm3, %v3792_v12, -inf }
0x1f71   :  { %3874 = vmax.xlane.f32.xlu0 %v3873_v14  ;;  %v3869_v31 = vpop.f32.mrb[46].mxu1  ;;  %v2305_v14 = vld [vmem:[%s9427_s6 + $0x30] sm:$0xff] }
0x1f72   :  { %v3870_v35 = vadd.f32 %v8876_v0, %v3869_v31  ;;  %v7318_v40 = vpop.f32.mrb[47].mxu1  ;;  %v2306_v31 = vld [vmem:[%s9427_s6 + $0x38] sm:$0xff] }
0x1f73   :  { %v9009_v40 = vpack.i.bf16 %v2306_v31, %v2305_v14 }
0x1f74   :  { %v3876_v58 = vsel %vm318_vm3, %v3870_v35, -inf }
0x1f75   :  { %3877 = vmax.xlane.f32.xlu1 %v3876_v58 }
0x1f86   :  { %3971 = vrot.lane.b32.xlu1 %v8851_v28, %s8139_s20 }
0x1f8a   :  { %7843 = vrot.lane.b32.xlu1 %v8829_v13, %s8143_s1 }
0x1f8e   :  { %7848 = vrot.lane.b32.xlu1 %v8807_v33, %s8143_s1 }
0x1ffe   :  { %v3875_v53 = vpop.xlane.xlu0 %3874 }
0x1fff   :  { %v3879_v41 = vsub.f32 %v3792_v12, %v3875_v53  ;;  %v2303_v12 = vld [vmem:[%s9427_s6 + $0x20] sm:$0xff] }
0x2001   :  { %v3881_v9 = vmul.f32 1.442695, %v3879_v41 }
0x2002   :  { %v3878_v18 = vpop.xlane.xlu1 %3877 }
0x2003   :  { %8046 = vpow2.f32 %v3881_v9  ;;  %v3880_v55 = vsub.f32 %v3870_v35, %v3878_v18  ;;  %v9005_v35 = vpack.i.bf16 %v2304_v49, %v2303_v12 }
0x2005   :  { %v3883_v51 = vmul.f32 1.442695, %v3880_v55 }
0x2006   :  { %v3972_v61 = vpop.permute.xlu1 %3971 }
0x2007   :  { %8048 = vpow2.f32 %v3883_v51  ;;  %7325 = vmatpush3.msra.mxu1 %v3972_v61 }
0x200d   :  { %v8047_v21 = vpop.eup %8046 }
0x200e   :  { %v3885_v56 = vsel %vm318_vm3, %v8047_v21, 0.0 }
0x200f   :  { %3886 = vadd.xlane.f32.xlu0 %v3885_v56 }
0x2011   :  { %v8049_v6 = vpop.eup %8048 }
0x2012   :  { %v3888_v7 = vsel %vm318_vm3, %v8049_v6, 0.0 }
0x2013   :  { %3889 = vadd.xlane.f32.xlu0 %v3888_v7 }
0x2029   :  { %3895 = vrot.lane.b32.xlu0 %v8853_v57, %s8139_s20  ;;  %v7844_v57 = vpop.permute.xlu1 %7843 }
0x202a   :  { %v7846_v63 = vunpack.i.h.bf16 %v7844_v57  ;;  %v7845_v13 = vunpack.i.l.bf16 %v7844_v57 }
0x202c   :  { %v7647_v29 = vpack.c.bf16 %v7846_v63, %v7845_v13 }
0x202d   :  { %v7849_v2 = vpop.permute.xlu1 %7848 }
0x202e   :  { %v7851_v33 = vunpack.i.h.bf16 %v7849_v2  ;;  %v7850_v23 = vunpack.i.l.bf16 %v7849_v2 }
0x2030   :  { %v7651_v15 = vpack.c.bf16 %v7851_v33, %v7850_v23 }
0x209c   :  { %v3887_v28 = vpop.xlane.xlu0 %3886 }
0x209d   :  { %8050 = vrcp.f32 %v3887_v28 }
0x20a0   :  { %v3890_v11 = vpop.xlane.xlu0 %3889 }
0x20a1   :  { %8052 = vrcp.f32 %v3890_v11 }
0x20a4   :  { %v3896_v52 = vpop.permute.xlu0 %3895 }
0x20a5   :  { %7320 = vmatpush3.msra.mxu0 %v3896_v52 }
0x20a6   :  { %7648 = vmatprep.subr.bf16.mxu0 %v7647_v29 }
0x20a7   :  { %v8051_v59 = vpop.eup %8050 }
0x20a8   :  { %v3892_v60 = vmul.f32 %v8051_v59, %v8047_v21 }
0x20aa   :  { %7322 = vmatmul.mubr.msk.f32.vlgmr.msra.gmra.mrb[36].mxu0 %vm318_vm3, %v3892_v60 }
0x20ab   :  { %v8053_v0 = vpop.eup %8052  ;;  %7650 = vmatpush3.bf16.msra.mxu0 %v7647_v29 }
0x20ac   :  { %v3894_v62 = vmul.f32 %v8053_v0, %v8049_v6  ;;  %7652 = vmatprep.subr.bf16.mxu0 %v7651_v15  ;;  %v6728_v0 = vld [vmem:[%s9425_s4 + $0x7] ss:$0 sm:$0xff] }
0x20ae   :  { %7327 = vmatmul.mubr.msk.f32.vlgmr.msra.gmra.mrb[48].mxu1 %vm318_vm3, %v3894_v62 }
0x20af   :  { %7654 = vmatpush3.bf16.msra.mxu0 %v7651_v15 }
0x217d   :  { %v3967_v1 = vpop.f32.mrb[36].mxu0 }
0x217e   :  { %4049 = vrot.lane.b32.xlu0 %v3967_v1, %s8144_s28  ;;  %v7323_v19 = vpop.f32.mrb[37].mxu0 }
0x2181   :  { %v4043_v20 = vpop.f32.mrb[48].mxu1 }
0x2182   :  { %4051 = vrot.lane.b32.xlu1 %v4043_v20, %s8144_s28  ;;  %v7328_v24 = vpop.f32.mrb[49].mxu1  ;;  %v9026_v20 = vld [vmem:[%s9426_s5 + $0x90] sm:$0xff] }
0x2183   :  { %v9031_v24 = vld [vmem:[%s9426_s5 + $0x40] sm:$0xff] }
0x21f0   :  { %v4050_v22 = vpop.permute.xlu0 %4049 }
0x21f1   :  { %v4055_v32 = vsel %vm166_vm2, %v8911_v45, %v4050_v22  ;;  %v2300_v45 = vld [vmem:[%s9427_s6 + $0x8] sm:$0xff] }
0x21f2   :  { %7337 = vmatprep.mubr.msk.f32.mxu0 %vm60_vm0, %v4055_v32 }
0x21f4   :  { %v4052_v44 = vpop.permute.xlu1 %4051 }
0x21f5   :  { %v4056_v27 = vsel %vm166_vm2, %v8913_v48, %v4052_v44  ;;  %v8984_v48 = vpack.i.bf16 %v2300_v45, %v2299_v43 }
0x21f6   :  { %7338 = vmatmul.mubr.msk.f32.vlgmr.msra.gmra.mrb[38].mxu0 %vm60_vm0, %v4056_v27 }
0x22c9   :  { %v7339_v39 = vpop.f32.mrb[38].mxu0 }
0x22ca   :  { %v8940_v8 = vadd.f32 %v7339_v39, %v8812_v46  ;;  %v4141_v42 = vpop.f32.mrb[39].mxu0  ;;  %v8954_v46 = vld [vmem:[%s9426_s5 + $0x38] sm:$0xff] }
0x22cb   :  { %v8943_v10 = vadd.f32 %v4141_v42, %v8815_v38  ;;  %v8959_v38 = vld [vmem:[%s9426_s5 + $0x88] sm:$0xff]  ;;  %v7872_v32 = vpack.i.bf16 %v9031_v24, %v8954_v46 }
0x22cc   :  { %v4154_v34 = vmul.f32 %v8940_v8, %v8940_v8  ;;  %v7655_v17 = vpack.c.bf16 %v8959_v38, %v8954_v46  ;;  %v7877_v22 = vpack.i.bf16 %v9026_v20, %v8959_v38 }
0x22cd   :  { %v4153_v25 = vmul.f32 %v8943_v10, %v8943_v10 }
0x22ce   :  { %v4158_v16 = vsel %vm60_vm0, %v4154_v34, 0.0  ;;  %7656 = vmatprep.subr.bf16.mxu1 %v7655_v17 }
0x22cf   :  { %4159 = vadd.xlane.f32.xlu1 %v4158_v16  ;;  %v4155_v4 = vsel %vm60_vm0, %v4153_v25, 0.0  ;;  %7658 = vmatpush3.bf16.msra.mxu1 %v7655_v17 }
0x22d0   :  { %4156 = vadd.xlane.f32.xlu0 %v4155_v4  ;;  %7660 = vmatprep.subr.bf16.mxu1 %v7659_v37 }
0x22d3   :  { %7662 = vmatpush3.bf16.msra.mxu1 %v7659_v37 }
0x22e0   :  { %7858 = vrot.lane.b32.xlu1 %v8995_v50, %s8140_s21 }
0x22e4   :  { %7868 = vrot.lane.b32.xlu1 %v9009_v40, %s8140_s21 }
0x22e6   :  { %7853 = vrot.lane.b32.xlu0 %v8984_v48, %s8140_s21 }
0x22e8   :  { %7878 = vrot.lane.b32.xlu1 %v7877_v22, %s8140_s21 }
0x22ea   :  { %7863 = vrot.lane.b32.xlu0 %v9005_v35, %s8140_s21 }
0x22ee   :  { %7873 = vrot.lane.b32.xlu0 %v7872_v32, %s8140_s21  ;;  %v8106_v32 = vld [vmem:[%s9423_s2] sm:$0xff] }
0x235c   :  { %v4160_v58 = vpop.xlane.xlu1 %4159 }
0x235d   :  { %v4162_v53 = vmul.f32 0.03125, %v4160_v58  ;;  %v4157_v41 = vpop.xlane.xlu0 %4156 }
0x235e   :  { %v4161_v9 = vmul.f32 0.03125, %v4157_v41  ;;  %v9069_v41 = vld [vmem:[%s9426_s5 + $0xe0] sm:$0xff] }
0x235f   :  { %v4164_v18 = vadd.f32 1e-06, %v4162_v53 }
0x2360   :  { %v4163_v55 = vadd.f32 1e-06, %v4161_v9  ;;  %v7859_v56 = vpop.permute.xlu1 %7858  ;;  %v7882_v9 = vpack.i.bf16 %v9069_v41, %v8964_v5 }
0x2361   :  { %8054 = vrsqrt.f32 %v4164_v18  ;;  %v7854_v51 = vpop.permute.xlu0 %7853  ;;  %v7861_v6 = vunpack.i.h.bf16 %v7859_v56  ;;  %v7860_v7 = vunpack.i.l.bf16 %v7859_v56 }
0x2362   :  { %8056 = vrsqrt.f32 %v4163_v55  ;;  %v7856_v61 = vunpack.i.h.bf16 %v7854_v51  ;;  %v7855_v21 = vunpack.i.l.bf16 %v7854_v51 }
0x2363   :  { %v7667_v52 = vpack.c.bf16 %v7861_v6, %v7860_v7 }
0x2364   :  { %v7663_v28 = vpack.c.bf16 %v7856_v61, %v7855_v21  ;;  %v7869_v13 = vpop.permute.xlu1 %7868 }
0x2365   :  { %v7864_v59 = vpop.permute.xlu0 %7863  ;;  %v7871_v33 = vunpack.i.h.bf16 %v7869_v13  ;;  %v7870_v23 = vunpack.i.l.bf16 %v7869_v13 }
0x2366   :  { %7664 = vmatprep.subr.bf16.mxu0 %v7663_v28  ;;  %v7866_v57 = vunpack.i.h.bf16 %v7864_v59  ;;  %v7865_v63 = vunpack.i.l.bf16 %v7864_v59 }
0x2367   :  { %7666 = vmatpush3.bf16.msra.mxu0 %v7663_v28  ;;  %v7675_v19 = vpack.c.bf16 %v7871_v33, %v7870_v23 }
0x2368   :  { %v7671_v2 = vpack.c.bf16 %v7866_v57, %v7865_v63  ;;  %7668 = vmatprep.subr.bf16.mxu0 %v7667_v52  ;;  %v7879_v34 = vpop.permute.xlu1 %7878  ;;  %v6733_v63 = vld [vmem:[%s9425_s4 + $0x8] ss:$0 sm:$0xff] }
0x2369   :  { %v7874_v25 = vpop.permute.xlu0 %7873  ;;  %v7881_v16 = vunpack.i.h.bf16 %v7879_v34  ;;  %v7880_v4 = vunpack.i.l.bf16 %v7879_v34  ;;  %v8107_v34 = vld [vmem:[%s9423_s2 + $0x8] sm:$0xff] }
0x236a   :  { %v7876_v46 = vunpack.i.h.bf16 %v7874_v25  ;;  %v7875_v38 = vunpack.i.l.bf16 %v7874_v25 }
0x236b   :  { %v8055_v11 = vpop.eup %8054  ;;  %7670 = vmatpush3.bf16.msra.mxu0 %v7667_v52  ;;  %v4445_v43 = vsel %vm1038_vm4, %v7880_v4, %v7881_v16 }
0x236c   :  { %v8057_v60 = vpop.eup %8056  ;;  %v4168_v62 = vmul.f32 %v8055_v11, %v8940_v8  ;;  %7672 = vmatprep.subr.bf16.mxu0 %v7671_v2  ;;  %v9043_v17 = vpack.c.bf16 %v7881_v16, %v7876_v46  ;;  %v4444_v37 = vsel %vm1038_vm4, %v7875_v38, %v7876_v46 }
0x236d   :  { %v4167_v29 = vmul.f32 %v8057_v60, %v8943_v10  ;;  %v7679_v45 = vpack.c.bf16 %v4445_v43, %v4444_v37 }
0x236e   :  { %v4174_v1 = vmul.f32 %v6728_v0, %v4168_v62 }
0x236f   :  { %v4173_v15 = vmul.f32 %v6728_v0, %v4167_v29  ;;  %7674 = vmatpush3.bf16.msra.mxu0 %v7671_v2  ;;  %7680 = vmatprep.subr.bf16.mxu1 %v7679_v45 }
0x2370   :  { %7676 = vmatprep.subr.bf16.mxu0 %v7675_v19 }
0x2371   :  { %7348 = vmatprep.mubr.msk.f32.mxu1 %vm60_vm0, %v4173_v15 }
0x2372   :  { %7349 = vmatmul.mubr.msk.f32.vlgmr.msra.gmra.mrb[50].mxu1 %vm60_vm0, %v4174_v1 }
0x2373   :  { %7678 = vmatpush3.bf16.msra.mxu0 %v7675_v19  ;;  %7682 = vmatpush3.bf16.msra.mxu1 %v7679_v45 }
0x2374   :  { %7391 = vmatprep.subr.mxu0 %v8136_v26 }
0x2445   :  { %v7350_v44 = vpop.f32.mrb[50].mxu1 }
0x2446   :  { %v4247_v27 = vpop.f32.mrb[51].mxu1  ;;  %v4257_v42 = vmax.f32 %v7350_v44, 0.0 }
0x2447   :  { %v4256_v39 = vmax.f32 %v4247_v27, 0.0 }
0x2449   :  { %7367 = vmatprep.mubr.msk.f32.mxu0 %vm1038_vm4, %v4256_v39 }
0x244a   :  { %7368 = vmatmul.mubr.msk.f32.vlgmr.msra.gmra.mrb[40].mxu0 %vm1038_vm4, %v4257_v42 }
0x244b   :  { %7393 = vmatprep.mubr.msk.f32.mxu0 %vm8137_vm1, %v8136_v26 }
0x251d   :  { %v7369_v47 = vpop.f32.mrb[40].mxu0 }
0x251e   :  { %v9048_v3 = vadd.f32 %v7369_v47, %v8940_v8  ;;  %v4362_v12 = vpop.f32.mrb[41].mxu0  ;;  %v9062_v8 = vld [vmem:[%s9426_s5 + $0x130] sm:$0xff] }
0x251f   :  { %v9051_v49 = vadd.f32 %v4362_v12, %v8943_v10  ;;  %v7887_v10 = vpack.i.bf16 %v9062_v8, %v8971_v36 }
0x2520   :  { %v4399_v14 = vmul.f32 %v9048_v3, %v9048_v3 }
0x2521   :  { %v4398_v31 = vmul.f32 %v9051_v49, %v9051_v49 }
0x2522   :  { %v4403_v58 = vsel %vm60_vm0, %v4399_v14, 0.0 }
0x2523   :  { %4404 = vadd.xlane.f32.xlu1 %v4403_v58  ;;  %v4400_v53 = vsel %vm60_vm0, %v4398_v31, 0.0 }
0x2524   :  { %4401 = vadd.xlane.f32.xlu0 %v4400_v53 }
0x2534   :  { %7888 = vrot.lane.b32.xlu1 %v7887_v10, %s8140_s21 }
0x253a   :  { %7883 = vrot.lane.b32.xlu0 %v7882_v9, %s8140_s21 }
0x25b0   :  { %v4405_v18 = vpop.xlane.xlu1 %4404 }
0x25b1   :  { %v4407_v55 = vmul.f32 0.03125, %v4405_v18  ;;  %v4402_v51 = vpop.xlane.xlu0 %4401 }
0x25b2   :  { %v4406_v61 = vmul.f32 0.03125, %v4402_v51 }
0x25b3   :  { %v4409_v21 = vadd.f32 1e-06, %v4407_v55 }
0x25b4   :  { %v4408_v56 = vadd.f32 1e-06, %v4406_v61  ;;  %v7889_v6 = vpop.permute.xlu1 %7888 }
0x25b5   :  { %8058 = vrsqrt.f32 %v4409_v21  ;;  %v7891_v36 = vunpack.i.h.bf16 %v7889_v6  ;;  %v7890_v7 = vunpack.i.l.bf16 %v7889_v6  ;;  %v7884_v28 = vpop.permute.xlu0 %7883 }
0x25b6   :  { %8060 = vrsqrt.f32 %v4408_v56  ;;  %v7886_v11 = vunpack.i.h.bf16 %v7884_v28  ;;  %v7885_v52 = vunpack.i.l.bf16 %v7884_v28 }
0x25b7   :  { %v4447_v59 = vsel %vm1038_vm4, %v7890_v7, %v7891_v36 }
0x25b8   :  { %v9076_v60 = vpack.c.bf16 %v7891_v36, %v7886_v11  ;;  %v4446_v5 = vsel %vm1038_vm4, %v7885_v52, %v7886_v11 }
0x25b9   :  { %v7683_v0 = vpack.c.bf16 %v4447_v59, %v4446_v5  ;;  %v8108_v5 = vld [vmem:[%s9423_s2 + $0x10] sm:$0xff] }
0x25bb   :  { %7684 = vmatprep.subr.bf16.mxu1 %v7683_v0 }
0x25bc   :  { %7686 = vmatpush3.bf16.msra.mxu1 %v7683_v0 }
0x25bd   :  { %7381 = vmatprep.subr.mxu1 %v8136_v26 }
0x25bf   :  { %v8059_v62 = vpop.eup %8058 }
0x25c0   :  { %v8061_v57 = vpop.eup %8060  ;;  %v4413_v13 = vmul.f32 %v8059_v62, %v9048_v3 }
0x25c1   :  { %v4412_v29 = vmul.f32 %v8061_v57, %v9051_v49 }
0x25c2   :  { %v4419_v33 = vmul.f32 %v6733_v63, %v4413_v13 }
0x25c3   :  { %v4418_v2 = vmul.f32 %v6733_v63, %v4412_v29  ;;  %v8109_v29 = vld [vmem:[%s9423_s2 + $0x18] sm:$0xff] }
0x25c5   :  { %7378 = vmatprep.mubr.msk.f32.mxu1 %vm60_vm0, %v4418_v2 }
0x25c6   :  { %7379 = vmatmul.mubr.msk.f32.vlgmr.msra.gmra.mrb[52].mxu1 %vm60_vm0, %v4419_v33 }
0x25c7   :  { %7383 = vmatprep.mubr.msk.f32.mxu1 %vm8137_vm1, %v8136_v26 }
0x2699   :  { %v9089_v23 = vpop.f32.mrb[52].mxu1 }
0x269a   :  { %4611 = vrot.lane.b32.xlu1 %v9089_v23, %s8138_s15  ;;  %v9093_v15 = vpop.f32.mrb[53].mxu1 }
0x269b   :  { %4534 = vrot.lane.b32.xlu0 %v9093_v15, %s8138_s15 }
0x270c   :  { %v4612_v19 = vpop.permute.xlu1 %4611 }
0x270d   :  { %v4535_v1 = vpop.permute.xlu0 %4534 }
0x270e   :  { %7382 = vmatpush3.xpose.msk.msra.mxu1 %vm166_vm2, %v4535_v1 }
0x270f   :  { %7386 = vmatprep.subr.mxu1 %v8136_v26 }
0x2711   :  { %7384 = vmatmul.mubr.msk.f32.vlgmr.msra.gmra.mrb[54].mxu1 %vm166_vm2, %v9093_v15 }
0x2712   :  { %7387 = vmatpush3.xpose.msk.msra.mxu1 %vm166_vm2, %v4612_v19  ;;  %7388 = vmatprep.mubr.msk.f32.mxu1 %vm8137_vm1, %v8136_v26 }
0x2713   :  { %7396 = vmatprep.subr.mxu1 %v8136_v26 }
0x2715   :  { %7389 = vmatmul.mubr.msk.f32.vlgmr.msra.gmra.mrb[56].mxu1 %vm166_vm2, %v9089_v23 }
0x2716   :  { %7398 = vmatprep.mubr.msk.f32.mxu1 %vm8137_vm1, %v8136_v26 }
0x27e4   :  { %v4606_v22 = vpop.f32.mrb[54].mxu1 }
0x27e5   :  { %v4607_v44 = vadd.f32 %v8106_v32, %v4606_v22  ;;  %v7385_v27 = vpop.f32.mrb[55].mxu1 }
0x27e7   :  { %v4687_v39 = vsel %vm318_vm3, %v4607_v44, -inf }
0x27e8   :  { %4688 = vmax.xlane.f32.xlu0 %v4687_v39  ;;  %v4683_v42 = vpop.f32.mrb[56].mxu1 }
0x27e9   :  { %v4684_v25 = vadd.f32 %v8107_v34, %v4683_v42  ;;  %v7390_v16 = vpop.f32.mrb[57].mxu1 }
0x27eb   :  { %v4690_v4 = vsel %vm318_vm3, %v4684_v25, -inf }
0x27ec   :  { %4691 = vmax.xlane.f32.xlu1 %v4690_v4 }
0x27fd   :  { %4785 = vrot.lane.b32.xlu1 %v9089_v23, %s8140_s21 }
0x27fe   :  { %4709 = vrot.lane.b32.xlu0 %v9093_v15, %s8140_s21 }
0x2801   :  { %4863 = vrot.lane.b32.xlu1 %v9093_v15, %s8139_s20 }
0x2805   :  { %4941 = vrot.lane.b32.xlu1 %v9089_v23, %s8139_s20 }
0x2809   :  { %4939 = vrot.lane.b32.xlu1 %v9089_v23, %s8141_s22 }
0x2875   :  { %v4689_v46 = vpop.xlane.xlu0 %4688 }
0x2876   :  { %v4693_v38 = vsub.f32 %v4607_v44, %v4689_v46  ;;  %v7897_v46 = vpack.i.bf16 %v9062_v8, %v9069_v41 }
0x2878   :  { %v4695_v37 = vmul.f32 1.442695, %v4693_v38 }
0x2879   :  { %v4710_v43 = vpop.permute.xlu0 %4709  ;;  %v4692_v45 = vpop.xlane.xlu1 %4691 }
0x287a   :  { %8062 = vpow2.f32 %v4695_v37  ;;  %v4694_v47 = vsub.f32 %v4684_v25, %v4692_v45  ;;  %7392 = vmatpush3.msra.mxu0 %v4710_v43 }
0x287b   :  { %7401 = vmatprep.subr.mxu0 %v8136_v26 }
0x287c   :  { %v4697_v12 = vmul.f32 1.442695, %v4694_v47 }
0x287d   :  { %v4786_v14 = vpop.permute.xlu1 %4785 }
0x287e   :  { %8064 = vpow2.f32 %v4697_v12  ;;  %7397 = vmatpush3.msra.mxu1 %v4786_v14 }
0x287f   :  { %7406 = vmatprep.subr.mxu1 %v8136_v26 }
0x2881   :  { %v4864_v55 = vpop.permute.xlu1 %4863 }
0x2884   :  { %v8063_v31 = vpop.eup %8062 }
0x2885   :  { %v4699_v58 = vsel %vm318_vm3, %v8063_v31, 0.0  ;;  %v4942_v56 = vpop.permute.xlu1 %4941 }
0x2886   :  { %4700 = vadd.xlane.f32.xlu0 %v4699_v58 }
0x2888   :  { %v8065_v53 = vpop.eup %8064 }
0x2889   :  { %v4702_v10 = vsel %vm318_vm3, %v8065_v53, 0.0  ;;  %v4940_v7 = vpop.permute.xlu1 %4939 }
0x288a   :  { %4703 = vadd.xlane.f32.xlu0 %v4702_v10 }
0x28a0   :  { %4861 = vrot.lane.b32.xlu0 %v9093_v15, %s8141_s22 }
0x2913   :  { %v4701_v9 = vpop.xlane.xlu0 %4700 }
0x2914   :  { %8066 = vrcp.f32 %v4701_v9 }
0x2917   :  { %v4704_v18 = vpop.xlane.xlu0 %4703 }
0x2918   :  { %8068 = vrcp.f32 %v4704_v18 }
0x291b   :  { %v4862_v36 = vpop.permute.xlu0 %4861 }
0x291e   :  { %v8067_v51 = vpop.eup %8066 }
0x291f   :  { %v4706_v61 = vmul.f32 %v8067_v51, %v8063_v31 }
0x2921   :  { %7394 = vmatmul.mubr.msk.f32.vlgmr.msra.gmra.mrb[42].mxu0 %vm318_vm3, %v4706_v61 }
0x2922   :  { %v8069_v21 = vpop.eup %8068  ;;  %7402 = vmatpush3.xpose.msk.msra.mxu0 %vm166_vm2, %v4864_v55  ;;  %7403 = vmatprep.mubr.msk.f32.mxu0 %vm8137_vm1, %v8136_v26 }
0x2923   :  { %v4708_v6 = vmul.f32 %v8069_v21, %v8065_v53  ;;  %7411 = vmatprep.subr.mxu0 %v8136_v26  ;;  %v9191_v21 = vld [vmem:[%s9426_s5 + $0x98] sm:$0xff] }
0x2925   :  { %7399 = vmatmul.mubr.msk.f32.vlgmr.msra.gmra.mrb[58].mxu1 %vm318_vm3, %v4708_v6  ;;  %7404 = vmatmul.mubr.msk.f32.vlgmr.msra.gmra.mrb[44].mxu0 %vm166_vm2, %v4862_v36  ;;  %v7907_v36 = vpack.i.bf16 %v9191_v21, %v9026_v20 }
0x2926   :  { %7407 = vmatpush3.xpose.msk.msra.mxu1 %vm166_vm2, %v4942_v56  ;;  %7408 = vmatprep.mubr.msk.f32.mxu1 %vm8137_vm1, %v8136_v26 }
0x2927   :  { %7416 = vmatprep.subr.mxu1 %v8136_v26  ;;  %7413 = vmatprep.mubr.msk.f32.mxu0 %vm8137_vm1, %v8136_v26 }
0x2929   :  { %7409 = vmatmul.mubr.msk.f32.vlgmr.msra.gmra.mrb[60].mxu1 %vm166_vm2, %v4940_v7 }
0x292a   :  { %7418 = vmatprep.mubr.msk.f32.mxu1 %vm8137_vm1, %v8136_v26 }
0x29f4   :  { %v9149_v28 = vpop.f32.mrb[42].mxu0 }
0x29f5   :  { %v7395_v11 = vpop.f32.mrb[43].mxu0 }
0x29f8   :  { %v9151_v52 = vpop.f32.mrb[58].mxu1  ;;  %v4935_v59 = vpop.f32.mrb[44].mxu0 }
0x29f9   :  { %v4936_v0 = vadd.f32 %v8108_v5, %v4935_v59  ;;  %v7400_v62 = vpop.f32.mrb[59].mxu1  ;;  %v7405_v57 = vpop.f32.mrb[45].mxu0 }
0x29fb   :  { %v5017_v63 = vsel %vm318_vm3, %v4936_v0, -inf }
0x29fc   :  { %5018 = vmax.xlane.f32.xlu0 %v5017_v63  ;;  %v5013_v13 = vpop.f32.mrb[60].mxu1 }
0x29fd   :  { %v5014_v2 = vadd.f32 %v8109_v29, %v5013_v13  ;;  %v7410_v33 = vpop.f32.mrb[61].mxu1 }
0x29ff   :  { %v5020_v1 = vsel %vm318_vm3, %v5014_v2, -inf }
0x2a00   :  { %5021 = vmax.xlane.f32.xlu1 %v5020_v1 }
0x2a11   :  { %5115 = vrot.lane.b32.xlu1 %v9089_v23, %s8142_s27  ;;  %v7892_v23 = vpack.i.bf16 %v9026_v20, %v9031_v24 }
0x2a15   :  { %7893 = vrot.lane.b32.xlu1 %v7892_v23, %s8138_s15 }
0x2a19   :  { %7898 = vrot.lane.b32.xlu1 %v7897_v46, %s8138_s15 }
0x2a89   :  { %v5019_v19 = vpop.xlane.xlu0 %5018 }
0x2a8a   :  { %v5023_v22 = vsub.f32 %v4936_v0, %v5019_v19 }
0x2a8c   :  { %v5025_v32 = vmul.f32 1.442695, %v5023_v22 }
0x2a8d   :  { %v5022_v44 = vpop.xlane.xlu1 %5021 }
0x2a8e   :  { %8070 = vpow2.f32 %v5025_v32  ;;  %v5024_v27 = vsub.f32 %v5014_v2, %v5022_v44  ;;  %v9230_v44 = vld [vmem:[%s9426_s5 + $0xe8] sm:$0xff] }
0x2a90   :  { %v5027_v39 = vmul.f32 1.442695, %v5024_v27  ;;  %v7912_v27 = vpack.i.bf16 %v9230_v44, %v9069_v41 }
0x2a91   :  { %v5116_v42 = vpop.permute.xlu1 %5115 }
0x2a92   :  { %8072 = vpow2.f32 %v5027_v39  ;;  %7417 = vmatpush3.msra.mxu1 %v5116_v42 }
0x2a93   :  { %7696 = vmatprep.subr.bf16.mxu1 %v9043_v17 }
0x2a95   :  { %v7894_v14 = vpop.permute.xlu1 %7893 }
0x2a96   :  { %v7896_v31 = vunpack.i.h.bf16 %v7894_v14  ;;  %v7895_v58 = vunpack.i.l.bf16 %v7894_v14  ;;  %v6750_v14 = vld [vmem:[%s9425_s4 + $0x9] ss:$0 sm:$0xff] }
0x2a98   :  { %v8071_v34 = vpop.eup %8070  ;;  %v7687_v53 = vpack.c.bf16 %v7896_v31, %v7895_v58 }
0x2a99   :  { %v5029_v25 = vsel %vm318_vm3, %v8071_v34, 0.0  ;;  %v7899_v10 = vpop.permute.xlu1 %7898 }
0x2a9a   :  { %5030 = vadd.xlane.f32.xlu0 %v5029_v25  ;;  %v7901_v9 = vunpack.i.h.bf16 %v7899_v10  ;;  %v7900_v18 = vunpack.i.l.bf16 %v7899_v10 }
0x2a9c   :  { %v8073_v16 = vpop.eup %8072  ;;  %v7691_v55 = vpack.c.bf16 %v7901_v9, %v7900_v18 }
0x2a9d   :  { %v5032_v4 = vsel %vm318_vm3, %v8073_v16, 0.0 }
0x2a9e   :  { %5033 = vadd.xlane.f32.xlu0 %v5032_v4 }
0x2ab4   :  { %5039 = vrot.lane.b32.xlu0 %v9093_v15, %s8142_s27 }
0x2b27   :  { %v5031_v38 = vpop.xlane.xlu0 %5030 }
0x2b28   :  { %8074 = vrcp.f32 %v5031_v38 }
0x2b2b   :  { %v5034_v37 = vpop.xlane.xlu0 %5033 }
0x2b2c   :  { %8076 = vrcp.f32 %v5034_v37 }
0x2b2f   :  { %v5040_v43 = vpop.permute.xlu0 %5039 }
0x2b30   :  { %7412 = vmatpush3.msra.mxu0 %v5040_v43 }
0x2b31   :  { %7688 = vmatprep.subr.bf16.mxu0 %v7687_v53 }
0x2b32   :  { %v8075_v45 = vpop.eup %8074 }
0x2b33   :  { %v5036_v47 = vmul.f32 %v8075_v45, %v8071_v34 }
0x2b35   :  { %7414 = vmatmul.mubr.msk.f32.vlgmr.msra.gmra.mrb[46].mxu0 %vm318_vm3, %v5036_v47 }
0x2b36   :  { %v8077_v15 = vpop.eup %8076  ;;  %7690 = vmatpush3.bf16.msra.mxu0 %v7687_v53 }
0x2b37   :  { %v5038_v12 = vmul.f32 %v8077_v15, %v8073_v16  ;;  %7692 = vmatprep.subr.bf16.mxu0 %v7691_v55 }
0x2b39   :  { %7419 = vmatmul.mubr.msk.f32.vlgmr.msra.gmra.mrb[62].mxu1 %vm318_vm3, %v5038_v12 }
0x2b3a   :  { %7698 = vmatpush3.bf16.msra.mxu1 %v9043_v17  ;;  %7694 = vmatpush3.bf16.msra.mxu0 %v7691_v55  ;;  %v9183_v17 = vld [vmem:[%s9426_s5 + $0x48] sm:$0xff] }
0x2b3b   :  { %7700 = vmatprep.subr.bf16.mxu1 %v9076_v60  ;;  %v7902_v61 = vpack.i.bf16 %v9183_v17, %v9031_v24 }
0x2b3e   :  { %7702 = vmatpush3.bf16.msra.mxu1 %v9076_v60 }
0x2b3f   :  { %7454 = vmatprep.subr.mxu1 %v8136_v26 }
0x2c08   :  { %v5111_v60 = vpop.f32.mrb[46].mxu0 }
0x2c09   :  { %5193 = vrot.lane.b32.xlu0 %v5111_v60, %s8144_s28  ;;  %v7415_v51 = vpop.f32.mrb[47].mxu0 }
0x2c0a   :  { %v9271_v51 = vld [vmem:[%s9424_s3] ss:$0 sm:$0xff] }
0x2c0c   :  { %v5187_v56 = vpop.f32.mrb[62].mxu1 }
0x2c0d   :  { %5195 = vrot.lane.b32.xlu1 %v5187_v56, %s8144_s28  ;;  %v7420_v6 = vpop.f32.mrb[63].mxu1  ;;  %7903 = vrot.lane.b32.xlu0 %v7902_v61, %s8143_s1 }
0x2c11   :  { %7908 = vrot.lane.b32.xlu1 %v7907_v36, %s8143_s1 }
0x2c7b   :  { %v5194_v7 = vpop.permute.xlu0 %5193 }
0x2c7c   :  { %v5199_v24 = vsel %vm166_vm2, %v9149_v28, %v5194_v7  ;;  %v9278_v7 = vld [vmem:[%s9424_s3 + $0x1] ss:$0 sm:$0xff] }
0x2c7d   :  { %7429 = vmatprep.mubr.msk.f32.mxu0 %vm60_vm0, %v5199_v24 }
0x2c7f   :  { %v5196_v11 = vpop.permute.xlu1 %5195  ;;  %v7904_v20 = vpop.permute.xlu0 %7903 }
0x2c80   :  { %v5200_v59 = vsel %vm166_vm2, %v9151_v52, %v5196_v11  ;;  %v7906_v0 = vunpack.i.h.bf16 %v7904_v20  ;;  %v7905_v62 = vunpack.i.l.bf16 %v7904_v20 }
0x2c81   :  { %7430 = vmatmul.mubr.msk.f32.vlgmr.msra.gmra.mrb[48].mxu0 %vm60_vm0, %v5200_v59 }
0x2c82   :  { %7451 = vmatprep.mubr.msk.f32.mxu0 %vm60_vm0, %v8797_v30  ;;  %v5428_v13 = vsel %vm60_vm0, %v7905_v62, %v7906_v0 }
0x2c83   :  { %v7909_v5 = vpop.permute.xlu1 %7908 }
0x2c84   :  { %v7911_v57 = vunpack.i.h.bf16 %v7909_v5  ;;  %v7910_v63 = vunpack.i.l.bf16 %v7909_v5 }
0x2c86   :  { %v5429_v28 = vsel %vm60_vm0, %v7910_v63, %v7911_v57 }
0x2c87   :  { %v7703_v29 = vpack.c.bf16 %v5429_v28, %v5428_v13 }
0x2c89   :  { %7704 = vmatprep.subr.bf16.mxu0 %v7703_v29 }
0x2c8a   :  { %7706 = vmatpush3.bf16.msra.mxu0 %v7703_v29 }
0x2d54   :  { %v7431_v2 = vpop.f32.mrb[48].mxu0 }
0x2d55   :  { %v9209_v52 = vadd.f32 %v7431_v2, %v9048_v3  ;;  %v5285_v33 = vpop.f32.mrb[49].mxu0  ;;  %v9223_v3 = vld [vmem:[%s9426_s5 + $0x138] sm:$0xff] }
0x2d56   :  { %v9212_v30 = vadd.f32 %v5285_v33, %v9051_v49  ;;  %v7917_v49 = vpack.i.bf16 %v9223_v3, %v9062_v8 }
0x2d57   :  { %v5298_v1 = vmul.f32 %v9209_v52, %v9209_v52 }
0x2d58   :  { %v5297_v19 = vmul.f32 %v9212_v30, %v9212_v30 }
0x2d59   :  { %v5302_v22 = vsel %vm60_vm0, %v5298_v1, 0.0 }
0x2d5a   :  { %5303 = vadd.xlane.f32.xlu1 %v5302_v22  ;;  %v5299_v32 = vsel %vm60_vm0, %v5297_v19, 0.0 }
0x2d5b   :  { %5300 = vadd.xlane.f32.xlu0 %v5299_v32 }
0x2d6b   :  { %7918 = vrot.lane.b32.xlu1 %v7917_v49, %s8143_s1 }
0x2d71   :  { %7913 = vrot.lane.b32.xlu0 %v7912_v27, %s8143_s1 }
0x2de7   :  { %v5304_v39 = vpop.xlane.xlu1 %5303 }
0x2de8   :  { %v5306_v42 = vmul.f32 0.03125, %v5304_v39  ;;  %v5301_v34 = vpop.xlane.xlu0 %5300 }
0x2de9   :  { %v5305_v25 = vmul.f32 0.03125, %v5301_v34 }
0x2dea   :  { %v5308_v16 = vadd.f32 1e-06, %v5306_v42 }
0x2deb   :  { %v5307_v4 = vadd.f32 1e-06, %v5305_v25  ;;  %v7919_v23 = vpop.permute.xlu1 %7918 }
0x2dec   :  { %8078 = vrsqrt.f32 %v5308_v16  ;;  %v7914_v8 = vpop.permute.xlu0 %7913  ;;  %v7921_v46 = vunpack.i.h.bf16 %v7919_v23  ;;  %v7920_v38 = vunpack.i.l.bf16 %v7919_v23 }
0x2ded   :  { %8080 = vrsqrt.f32 %v5307_v4  ;;  %v7916_v37 = vunpack.i.h.bf16 %v7914_v8  ;;  %v7915_v43 = vunpack.i.l.bf16 %v7914_v8 }
0x2dee   :  { %v5431_v45 = vsel %vm60_vm0, %v7920_v38, %v7921_v46 }
0x2def   :  { %v5430_v41 = vsel %vm60_vm0, %v7915_v43, %v7916_v37 }
0x2df0   :  { %v7707_v47 = vpack.c.bf16 %v5431_v45, %v5430_v41 }
0x2df2   :  { %7708 = vmatprep.subr.bf16.mxu0 %v7707_v47 }
0x2df3   :  { %7710 = vmatpush3.bf16.msra.mxu0 %v7707_v47 }
0x2df4   :  { %7464 = vmatprep.subr.mxu0 %v8136_v26 }
0x2df6   :  { %v8079_v15 = vpop.eup %8078  ;;  %7452 = vmatmul.mubr.msk.f32.vlgmr.msra.gmra.mrb[50].mxu0 %vm60_vm0, %v8835_v54 }
0x2df7   :  { %v8081_v12 = vpop.eup %8080  ;;  %v5312_v31 = vmul.f32 %v8079_v15, %v9209_v52  ;;  %7466 = vmatprep.mubr.msk.f32.mxu0 %vm8137_vm1, %v8136_v26 }
0x2df8   :  { %v5311_v58 = vmul.f32 %v8081_v12, %v9212_v30 }
0x2df9   :  { %v5318_v10 = vmul.f32 %v6750_v14, %v5312_v31 }
0x2dfa   :  { %v5317_v53 = vmul.f32 %v6750_v14, %v5311_v58 }
0x2dfc   :  { %7440 = vmatprep.mubr.msk.f32.mxu1 %vm60_vm0, %v5317_v53 }
0x2dfd   :  { %7441 = vmatmul.mubr.msk.f32.vlgmr.msra.gmra.mrb[64].mxu1 %vm60_vm0, %v5318_v10 }
0x2dfe   :  { %7456 = vmatprep.mubr.msk.f32.mxu1 %vm8137_vm1, %v8136_v26 }
0x2ec9   :  { %v9252_v54 = vpop.f32.mrb[50].mxu0 }
0x2eca   :  { %v9254_v9 = vpop.f32.mrb[51].mxu0 }
0x2ecb   :  { %7455 = vmatpush3.xpose.msk.msra.mxu1 %vm166_vm2, %v9254_v9 }
0x2ecc   :  { %7459 = vmatprep.subr.mxu1 %v8136_v26 }
0x2ed0   :  { %v7442_v18 = vpop.f32.mrb[64].mxu1 }
0x2ed1   :  { %v5395_v55 = vpop.f32.mrb[65].mxu1 }
0x2ed2   :  { %7457 = vmatmul.mubr.msk.f32.vlgmr.msra.gmra.mrb[66].mxu1 %vm166_vm2, %v5395_v55 }
0x2ed3   :  { %7460 = vmatpush3.xpose.msk.msra.mxu1 %vm166_vm2, %v9252_v54  ;;  %7461 = vmatprep.mubr.msk.f32.mxu1 %vm8137_vm1, %v8136_v26 }
0x2ed4   :  { %7469 = vmatprep.subr.mxu1 %v8136_v26 }
0x2ed6   :  { %7462 = vmatmul.mubr.msk.f32.vlgmr.msra.gmra.mrb[68].mxu1 %vm166_vm2, %v7442_v18 }
0x2ed7   :  { %7471 = vmatprep.mubr.msk.f32.mxu1 %vm8137_vm1, %v8136_v26 }
0x2fa5   :  { %v5583_v60 = vpop.f32.mrb[66].mxu1 }
0x2fa6   :  { %v5584_v61 = vadd.f32 %v9271_v51, %v5583_v60  ;;  %v7458_v56 = vpop.f32.mrb[67].mxu1 }
0x2fa8   :  { %v5663_v6 = vsel %vm318_vm3, %v5584_v61, -inf }
0x2fa9   :  { %5664 = vmax.xlane.f32.xlu0 %v5663_v6  ;;  %v5659_v36 = vpop.f32.mrb[68].mxu1  ;;  %v7927_v6 = vpack.i.bf16 %v9223_v3, %v9230_v44 }
0x2faa   :  { %v5660_v24 = vadd.f32 %v9278_v7, %v5659_v36  ;;  %v7463_v11 = vpop.f32.mrb[69].mxu1 }
0x2fac   :  { %v5666_v59 = vsel %vm318_vm3, %v5660_v24, -inf }
0x2fad   :  { %5667 = vmax.xlane.f32.xlu1 %v5666_v59 }
0x2fbe   :  { %5761 = vrot.lane.b32.xlu1 %v9252_v54, %s8138_s15 }
0x2fbf   :  { %5685 = vrot.lane.b32.xlu0 %v9254_v9, %s8138_s15 }
0x2fc2   :  { %5839 = vrot.lane.b32.xlu1 %v9254_v9, %s8141_s22 }
0x2fc6   :  { %5917 = vrot.lane.b32.xlu1 %v9252_v54, %s8141_s22 }
0x2fca   :  { %5915 = vrot.lane.b32.xlu1 %v7442_v18, %s8141_s22 }
0x3036   :  { %v5665_v20 = vpop.xlane.xlu0 %5664 }
0x3037   :  { %v5669_v5 = vsub.f32 %v5584_v61, %v5665_v20 }
0x3039   :  { %v5671_v0 = vmul.f32 1.442695, %v5669_v5 }
0x303a   :  { %v5686_v62 = vpop.permute.xlu0 %5685  ;;  %v5668_v57 = vpop.xlane.xlu1 %5667 }
0x303b   :  { %8082 = vpow2.f32 %v5671_v0  ;;  %v5670_v63 = vsub.f32 %v5660_v24, %v5668_v57  ;;  %7465 = vmatpush3.msra.mxu0 %v5686_v62 }
0x303c   :  { %7474 = vmatprep.subr.mxu0 %v8136_v26 }
0x303d   :  { %v5673_v13 = vmul.f32 1.442695, %v5670_v63 }
0x303e   :  { %v5762_v28 = vpop.permute.xlu1 %5761 }
0x303f   :  { %8084 = vpow2.f32 %v5673_v13  ;;  %7470 = vmatpush3.msra.mxu1 %v5762_v28 }
0x3040   :  { %7479 = vmatprep.subr.mxu1 %v8136_v26 }
0x3042   :  { %v5840_v32 = vpop.permute.xlu1 %5839 }
0x3045   :  { %v8083_v29 = vpop.eup %8082 }
0x3046   :  { %v5675_v2 = vsel %vm318_vm3, %v8083_v29, 0.0  ;;  %v5918_v42 = vpop.permute.xlu1 %5917 }
0x3047   :  { %5676 = vadd.xlane.f32.xlu0 %v5675_v2 }
0x3049   :  { %v8085_v33 = vpop.eup %8084 }
0x304a   :  { %v5678_v1 = vsel %vm318_vm3, %v8085_v33, 0.0  ;;  %v5916_v16 = vpop.permute.xlu1 %5915 }
0x304b   :  { %5679 = vadd.xlane.f32.xlu0 %v5678_v1 }
0x3061   :  { %5837 = vrot.lane.b32.xlu0 %v5395_v55, %s8141_s22 }
0x30d4   :  { %v5677_v19 = vpop.xlane.xlu0 %5676 }
0x30d5   :  { %8086 = vrcp.f32 %v5677_v19 }
0x30d8   :  { %v5680_v22 = vpop.xlane.xlu0 %5679 }
0x30d9   :  { %8088 = vrcp.f32 %v5680_v22 }
0x30dc   :  { %v5838_v25 = vpop.permute.xlu0 %5837 }
0x30df   :  { %v8087_v49 = vpop.eup %8086 }
0x30e0   :  { %v5682_v27 = vmul.f32 %v8087_v49, %v8083_v29 }
0x30e2   :  { %7467 = vmatmul.mubr.msk.f32.vlgmr.msra.gmra.mrb[52].mxu0 %vm318_vm3, %v5682_v27 }
0x30e3   :  { %v8089_v39 = vpop.eup %8088  ;;  %7475 = vmatpush3.xpose.msk.msra.mxu0 %vm166_vm2, %v5840_v32  ;;  %7476 = vmatprep.mubr.msk.f32.mxu0 %vm8137_vm1, %v8136_v26 }
0x30e4   :  { %v5684_v34 = vmul.f32 %v8089_v39, %v8085_v33  ;;  %7484 = vmatprep.subr.mxu0 %v8136_v26 }
0x30e6   :  { %7472 = vmatmul.mubr.msk.f32.vlgmr.msra.gmra.mrb[70].mxu1 %vm318_vm3, %v5684_v34  ;;  %7477 = vmatmul.mubr.msk.f32.vlgmr.msra.gmra.mrb[54].mxu0 %vm166_vm2, %v5838_v25 }
0x30e7   :  { %7480 = vmatpush3.xpose.msk.msra.mxu1 %vm166_vm2, %v5918_v42  ;;  %7481 = vmatprep.mubr.msk.f32.mxu1 %vm8137_vm1, %v8136_v26 }
0x30e8   :  { %7489 = vmatprep.subr.mxu1 %v8136_v26  ;;  %7486 = vmatprep.mubr.msk.f32.mxu0 %vm8137_vm1, %v8136_v26 }
0x30ea   :  { %7482 = vmatmul.mubr.msk.f32.vlgmr.msra.gmra.mrb[72].mxu1 %vm166_vm2, %v5916_v16 }
0x30eb   :  { %7491 = vmatprep.mubr.msk.f32.mxu1 %vm8137_vm1, %v8136_v26 }
0x31b5   :  { %v9312_v4 = vpop.f32.mrb[52].mxu0 }
0x31b6   :  { %v7468_v23 = vpop.f32.mrb[53].mxu0 }
0x31b9   :  { %v9314_v8 = vpop.f32.mrb[70].mxu1  ;;  %v5911_v46 = vpop.f32.mrb[54].mxu0 }
0x31ba   :  { %v5912_v38 = vadd.f32 %v9271_v51, %v5911_v46  ;;  %v7473_v37 = vpop.f32.mrb[71].mxu1  ;;  %v7478_v43 = vpop.f32.mrb[55].mxu0 }
0x31bc   :  { %v5993_v45 = vsel %vm318_vm3, %v5912_v38, -inf }
0x31bd   :  { %5994 = vmax.xlane.f32.xlu0 %v5993_v45  ;;  %v5989_v41 = vpop.f32.mrb[72].mxu1 }
0x31be   :  { %v5990_v47 = vadd.f32 %v9278_v7, %v5989_v41  ;;  %v7483_v15 = vpop.f32.mrb[73].mxu1 }
0x31c0   :  { %v5996_v12 = vsel %vm318_vm3, %v5990_v47, -inf }
0x31c1   :  { %5997 = vmax.xlane.f32.xlu1 %v5996_v12 }
0x31d2   :  { %6091 = vrot.lane.b32.xlu1 %v9252_v54, %s8139_s20  ;;  %v7922_v54 = vpack.i.bf16 %v9191_v21, %v9183_v17 }
0x31d6   :  { %7923 = vrot.lane.b32.xlu1 %v7922_v54, %s8138_s15 }
0x31da   :  { %7928 = vrot.lane.b32.xlu1 %v7927_v6, %s8138_s15 }
0x324a   :  { %v5995_v14 = vpop.xlane.xlu0 %5994 }
0x324b   :  { %v5999_v31 = vsub.f32 %v5912_v38, %v5995_v14 }
0x324d   :  { %v6001_v58 = vmul.f32 1.442695, %v5999_v31 }
0x324e   :  { %v5998_v53 = vpop.xlane.xlu1 %5997 }
0x324f   :  { %8090 = vpow2.f32 %v6001_v58  ;;  %v6000_v10 = vsub.f32 %v5990_v47, %v5998_v53 }
0x3251   :  { %v6003_v18 = vmul.f32 1.442695, %v6000_v10 }
0x3252   :  { %v6092_v55 = vpop.permute.xlu1 %6091 }
0x3253   :  { %8092 = vpow2.f32 %v6003_v18  ;;  %7490 = vmatpush3.msra.mxu1 %v6092_v55 }
0x3256   :  { %v7924_v17 = vpop.permute.xlu1 %7923 }
0x3257   :  { %v7926_v21 = vunpack.i.h.bf16 %v7924_v17  ;;  %v7925_v5 = vunpack.i.l.bf16 %v7924_v17 }
0x3259   :  { %v8091_v60 = vpop.eup %8090  ;;  %v7711_v3 = vpack.c.bf16 %v7926_v21, %v7925_v5 }
0x325a   :  { %v6005_v51 = vsel %vm318_vm3, %v8091_v60, 0.0  ;;  %v7929_v44 = vpop.permute.xlu1 %7928 }
0x325b   :  { %6006 = vadd.xlane.f32.xlu0 %v6005_v51  ;;  %v7931_v0 = vunpack.i.h.bf16 %v7929_v44  ;;  %v7930_v62 = vunpack.i.l.bf16 %v7929_v44 }
0x325d   :  { %v8093_v61 = vpop.eup %8092  ;;  %v7715_v57 = vpack.c.bf16 %v7931_v0, %v7930_v62 }
0x325e   :  { %v6008_v56 = vsel %vm318_vm3, %v8093_v61, 0.0 }
0x325f   :  { %6009 = vadd.xlane.f32.xlu0 %v6008_v56 }
0x3275   :  { %6015 = vrot.lane.b32.xlu0 %v9254_v9, %s8139_s20 }
0x32e8   :  { %v6007_v36 = vpop.xlane.xlu0 %6006 }
0x32e9   :  { %8094 = vrcp.f32 %v6007_v36 }
0x32ec   :  { %v6010_v7 = vpop.xlane.xlu0 %6009 }
0x32ed   :  { %8096 = vrcp.f32 %v6010_v7 }
0x32f0   :  { %v6016_v24 = vpop.permute.xlu0 %6015 }
0x32f1   :  { %7485 = vmatpush3.msra.mxu0 %v6016_v24 }
0x32f2   :  { %7712 = vmatprep.subr.bf16.mxu0 %v7711_v3 }
0x32f3   :  { %v8095_v11 = vpop.eup %8094 }
0x32f4   :  { %v6012_v59 = vmul.f32 %v8095_v11, %v8091_v60 }
0x32f6   :  { %7487 = vmatmul.mubr.msk.f32.vlgmr.msra.gmra.mrb[56].mxu0 %vm318_vm3, %v6012_v59 }
0x32f7   :  { %v8097_v9 = vpop.eup %8096  ;;  %7714 = vmatpush3.bf16.msra.mxu0 %v7711_v3 }
0x32f8   :  { %v6014_v20 = vmul.f32 %v8097_v9, %v8093_v61  ;;  %7716 = vmatprep.subr.bf16.mxu0 %v7715_v57  ;;  %v6769_v61 = vld [vmem:[%s9425_s4 + $0xa] ss:$0 sm:$0xff] }
0x32fa   :  { %7492 = vmatmul.mubr.msk.f32.vlgmr.msra.gmra.mrb[74].mxu1 %vm318_vm3, %v6014_v20 }
0x32fb   :  { %7718 = vmatpush3.bf16.msra.mxu0 %v7715_v57 }
0x33c9   :  { %v6087_v63 = vpop.f32.mrb[56].mxu0 }
0x33ca   :  { %6169 = vrot.lane.b32.xlu0 %v6087_v63, %s8144_s28  ;;  %v7488_v13 = vpop.f32.mrb[57].mxu0 }
0x33cd   :  { %v6163_v28 = vpop.f32.mrb[74].mxu1 }
0x33ce   :  { %6171 = vrot.lane.b32.xlu1 %v6163_v28, %s8144_s28  ;;  %v7493_v29 = vpop.f32.mrb[75].mxu1  ;;  %v6531_v28 = vld [vmem:[%s9426_s5 + $0x8] sm:$0xff] }
0x33cf   :  { %v6533_v29 = vld [vmem:[%s9426_s5 + $0x58] sm:$0xff] }
0x343c   :  { %v6170_v2 = vpop.permute.xlu0 %6169 }
0x343d   :  { %v6175_v33 = vsel %vm166_vm2, %v9312_v4, %v6170_v2  ;;  %v7743_v2 = vpack.c.bf16 %v6533_v29, %v6531_v28 }
0x343e   :  { %7502 = vmatprep.mubr.msk.f32.mxu0 %vm60_vm0, %v6175_v33  ;;  %v6530_v33 = vld [vmem:[%s9426_s5] sm:$0xff] }
0x3440   :  { %v6172_v1 = vpop.permute.xlu1 %6171 }
0x3441   :  { %v6176_v19 = vsel %vm166_vm2, %v9314_v8, %v6172_v1  ;;  %v6532_v1 = vld [vmem:[%s9426_s5 + $0x50] sm:$0xff] }
0x3442   :  { %7503 = vmatmul.mubr.msk.f32.vlgmr.msra.gmra.mrb[58].mxu0 %vm60_vm0, %v6176_v19  ;;  %v7745_v19 = vpack.c.bf16 %v6532_v1, %v6530_v33 }
0x3515   :  { %v7504_v22 = vpop.f32.mrb[58].mxu0 }
0x3516   :  { %v9343_v32 = vadd.f32 %v7504_v22, %v9209_v52  ;;  %v6261_v49 = vpop.f32.mrb[59].mxu0  ;;  %v6535_v22 = vld [vmem:[%s9426_s5 + $0xa8] sm:$0xff] }
0x3517   :  { %v9346_v27 = vadd.f32 %v6261_v49, %v9212_v30  ;;  %v6534_v49 = vld [vmem:[%s9426_s5 + $0xa0] sm:$0xff] }
0x3518   :  { %v6274_v39 = vmul.f32 %v9343_v32, %v9343_v32 }
0x3519   :  { %v6273_v42 = vmul.f32 %v9346_v27, %v9346_v27 }
0x351a   :  { %v6278_v34 = vsel %vm60_vm0, %v6274_v39, 0.0  ;;  %v6536_v39 = vld [vmem:[%s9426_s5 + $0xf0] sm:$0xff] }
0x351b   :  { %6279 = vadd.xlane.f32.xlu1 %v6278_v34  ;;  %v6275_v25 = vsel %vm60_vm0, %v6273_v42, 0.0  ;;  %v7749_v42 = vpack.c.bf16 %v6536_v39, %v6534_v49 }
0x351c   :  { %6276 = vadd.xlane.f32.xlu0 %v6275_v25 }
0x352c   :  { %7938 = vrot.lane.b32.xlu1 %v7927_v6, %s8140_s21 }
0x3530   :  { %7948 = vrot.lane.b32.xlu1 %v8995_v50, %s8143_s1 }
0x3532   :  { %7933 = vrot.lane.b32.xlu0 %v7922_v54, %s8140_s21 }
0x3534   :  { %7958 = vrot.lane.b32.xlu1 %v9009_v40, %s8143_s1 }
0x3536   :  { %7943 = vrot.lane.b32.xlu0 %v8984_v48, %s8143_s1 }
0x353a   :  { %7953 = vrot.lane.b32.xlu0 %v9005_v35, %s8143_s1 }
0x35a8   :  { %v6280_v52 = vpop.xlane.xlu1 %6279 }
0x35a9   :  { %v6282_v30 = vmul.f32 0.03125, %v6280_v52  ;;  %v6277_v16 = vpop.xlane.xlu0 %6276 }
0x35aa   :  { %v6281_v4 = vmul.f32 0.03125, %v6277_v16 }
0x35ab   :  { %v6284_v23 = vadd.f32 1e-06, %v6282_v30 }
0x35ac   :  { %v6283_v8 = vadd.f32 1e-06, %v6281_v4  ;;  %v7939_v46 = vpop.permute.xlu1 %7938 }
0x35ad   :  { %8098 = vrsqrt.f32 %v6284_v23  ;;  %v7934_v50 = vpop.permute.xlu0 %7933  ;;  %v7941_v38 = vunpack.i.h.bf16 %v7939_v46  ;;  %v7940_v37 = vunpack.i.l.bf16 %v7939_v46  ;;  %v6774_v46 = vld [vmem:[%s9425_s4 + $0xb] ss:$0 sm:$0xff] }
0x35ae   :  { %8100 = vrsqrt.f32 %v6283_v8  ;;  %v7936_v43 = vunpack.i.h.bf16 %v7934_v50  ;;  %v7935_v40 = vunpack.i.l.bf16 %v7934_v50 }
0x35af   :  { %v7723_v41 = vpack.c.bf16 %v7941_v38, %v7940_v37 }
0x35b0   :  { %v7719_v45 = vpack.c.bf16 %v7936_v43, %v7935_v40  ;;  %v7949_v48 = vpop.permute.xlu1 %7948 }
0x35b1   :  { %v7944_v47 = vpop.permute.xlu0 %7943  ;;  %v7951_v15 = vunpack.i.h.bf16 %v7949_v48  ;;  %v7950_v35 = vunpack.i.l.bf16 %v7949_v48 }
0x35b2   :  { %7720 = vmatprep.subr.bf16.mxu1 %v7719_v45  ;;  %v7946_v12 = vunpack.i.h.bf16 %v7944_v47  ;;  %v7945_v14 = vunpack.i.l.bf16 %v7944_v47 }
0x35b3   :  { %7722 = vmatpush3.bf16.msra.mxu1 %v7719_v45  ;;  %v7731_v58 = vpack.c.bf16 %v7951_v15, %v7950_v35 }
0x35b4   :  { %7724 = vmatprep.subr.bf16.mxu1 %v7723_v41  ;;  %v7727_v31 = vpack.c.bf16 %v7946_v12, %v7945_v14  ;;  %v7959_v10 = vpop.permute.xlu1 %7958 }
0x35b5   :  { %v7954_v53 = vpop.permute.xlu0 %7953  ;;  %v7961_v6 = vunpack.i.h.bf16 %v7959_v10  ;;  %v7960_v36 = vunpack.i.l.bf16 %v7959_v10 }
0x35b6   :  { %7728 = vmatprep.subr.bf16.mxu0 %v7727_v31  ;;  %v7956_v18 = vunpack.i.h.bf16 %v7954_v53  ;;  %v7955_v55 = vunpack.i.l.bf16 %v7954_v53 }
0x35b7   :  { %v8099_v60 = vpop.eup %8098  ;;  %7726 = vmatpush3.bf16.msra.mxu1 %v7723_v41  ;;  %7730 = vmatpush3.bf16.msra.mxu0 %v7727_v31  ;;  %v7739_v59 = vpack.c.bf16 %v7961_v6, %v7960_v36 }
0x35b8   :  { %v8101_v51 = vpop.eup %8100  ;;  %v6288_v56 = vmul.f32 %v8099_v60, %v9343_v32  ;;  %v7735_v54 = vpack.c.bf16 %v7956_v18, %v7955_v55  ;;  %7732 = vmatprep.subr.bf16.mxu0 %v7731_v58  ;;  %7744 = vmatprep.subr.bf16.mxu1 %v7743_v2 }
0x35b9   :  { %v6287_v7 = vmul.f32 %v8101_v51, %v9346_v27 }
0x35ba   :  { %v6294_v11 = vmul.f32 %v6769_v61, %v6288_v56 }
0x35bb   :  { %v6293_v24 = vmul.f32 %v6769_v61, %v6287_v7  ;;  %7734 = vmatpush3.bf16.msra.mxu0 %v7731_v58 }
0x35bc   :  { %7736 = vmatprep.subr.bf16.mxu0 %v7735_v54 }
0x35bd   :  { %7513 = vmatprep.mubr.msk.f32.mxu1 %vm60_vm0, %v6293_v24 }
0x35be   :  { %7514 = vmatmul.mubr.msk.f32.vlgmr.msra.gmra.mrb[76].mxu1 %vm60_vm0, %v6294_v11 }
0x35bf   :  { %7738 = vmatpush3.bf16.msra.mxu0 %v7735_v54  ;;  %6608 = vmatprep.mubr.f32.mxu1 %v8136_v26 }
0x35c0   :  { %7740 = vmatprep.subr.bf16.mxu0 %v7739_v59  ;;  %7746 = vmatpush1.bf16.msra.mxu1 %v7745_v19 }
0x35c3   :  { %7742 = vmatpush3.bf16.msra.mxu0 %v7739_v59 }
0x3691   :  { %v7515_v9 = vpop.f32.mrb[76].mxu1 }
0x3692   :  { %v6379_v20 = vpop.f32.mrb[77].mxu1  ;;  %v6389_v21 = vmax.f32 %v7515_v9, 0.0 }
0x3693   :  { %v6388_v17 = vmax.f32 %v6379_v20, 0.0 }
0x3695   :  { %7532 = vmatprep.mubr.msk.f32.mxu0 %vm1038_vm4, %v6388_v17 }
0x3696   :  { %7533 = vmatmul.mubr.msk.f32.vlgmr.msra.gmra.mrb[60].mxu0 %vm1038_vm4, %v6389_v21 }
0x3769   :  { %v7534_v5 = vpop.f32.mrb[60].mxu0 }
0x376a   :  { %v6504_v3 = vadd.f32 %v7534_v5, %v9343_v32  ;;  %v6494_v44 = vpop.f32.mrb[61].mxu0  ;;  %v6537_v32 = vld [vmem:[%s9426_s5 + $0xf8] sm:$0xff]  ;;  %s8145_s5 = smov [#allocation2]  }
0x376b   :  { %v6503_v0 = vadd.f32 %v6494_v44, %v9346_v27  ;;  %v7747_v27 = vpack.c.bf16 %v6537_v32, %v6535_v22  ;;  %s6630_s26 = sshll.u32 %s8145_s5, 4  ;;  %s6631_s26 = int_to_ptr.vmem [resolvable:$true] %s6630_s26 }
0x376c   :  { %v6507_v62 = vmul.f32 %v6504_v3, %v6504_v3  ;;  %s8112_s4 = scalar_lea.vmem %s6631_s26, 512  ;;  %p8117_p1 = scmp.lt.s32.totalorder %s6631_s26, %s6631_s26 }
0x376d   :  { %v6506_v57 = vmul.f32 %v6503_v0, %v6503_v0  ;;  %7748 = vmatprep.subr.bf16.mxu1 %v7747_v27  ;;  %p8113_p0 = scmp.ne.s32.totalorder %s6631_s26, %s8112_s4  ;;  %p8118_p2 = scmp.lt.s32.totalorder %s8112_s4, %s8112_s4 }
0x376e   :  { %v6511_v63 = vsel %vm60_vm0, %v6507_v62, 0.0  ;;  %7750 = vmatpush1.bf16.msra.mxu1 %v7749_v42 }
0x376f   :  { %6512 = vadd.xlane.f32.xlu1 %v6511_v63  ;;  %v6508_v13 = vsel %vm60_vm0, %v6506_v57, 0.0  ;;  %p8119_p3 = por %p8118_p2, %p8117_p1 }
0x3770   :  { %6509 = vadd.xlane.f32.xlu0 %v6508_v13 }
0x3771   :  { %p8120_p4 = pnand %p8119_p3, %p8113_p0 }
0x37fc   :  { %v6513_v34 = vpop.xlane.xlu1 %6512 }
0x37fd   :  { %v6515_v25 = vmul.f32 0.03125, %v6513_v34  ;;  %v6510_v52 = vpop.xlane.xlu0 %6509 }
0x37fe   :  { %v6514_v30 = vmul.f32 0.03125, %v6510_v52 }
0x37ff   :  { %v6517_v16 = vadd.f32 1e-06, %v6515_v25 }
0x3800   :  { %v6516_v4 = vadd.f32 1e-06, %v6514_v30 }
0x3801   :  { %8102 = vrsqrt.f32 %v6517_v16 }
0x3802   :  { %8104 = vrsqrt.f32 %v6516_v4 }
0x380b   :  { %v8103_v23 = vpop.eup %8102 }
0x380c   :  { %v8105_v8 = vpop.eup %8104  ;;  %v6521_v38 = vmul.f32 %v8103_v23, %v6504_v3 }
0x380d   :  { %v6520_v50 = vmul.f32 %v8105_v8, %v6503_v0 }
0x380e   :  { %v6527_v40 = vmul.f32 %v6774_v46, %v6521_v38 }
0x380f   :  { %v6526_v37 = vmul.f32 %v6774_v46, %v6520_v50 }
0x3810   :  { %v6529_v45 = vmul.f32 0.17677669, %v6527_v40 }
0x3811   :  { %v6528_v43 = vmul.f32 0.17677669, %v6526_v37 }
0x3813   :  { %6775 = vmatmul.mubr.msk.f32.vlgmr.msra.gmra.mrb[78].mxu1 %vm60_vm0, %v6528_v43 }
0x3814   :  { %6614 = vmatprep.mubr.f32.mxu1 %v8136_v26 }
0x3817   :  { %6776 = vmatmul.mubr.msk.f32.gmra.mrb[80].mxu1 %vm60_vm0, %v6529_v45 }
0x38e6   :  { %v6610_v41 = vpop.f32.mrb[78].mxu1 }
0x38e7   :  { %6621 = vst [vmem:[#allocation2] sm:$0xff] %v6610_v41  ;;  %v6612_v48 = vpop.f32.mrb[79].mxu1 }
0x38e8   :  { %6622 = vst [vmem:[#allocation2 + $0x8] sm:$0xff] %v6612_v48 }
0x38ea   :  { %v6616_v47 = vpop.f32.mrb[80].mxu1 }
0x38eb   :  { %6623 = vst [vmem:[#allocation2 + $0x10] sm:$0xff] %v6616_v47  ;;  %v6618_v15 = vpop.f32.mrb[81].mxu1 }
0x38ec   :  { %6624 = vst [vmem:[#allocation2 + $0x18] sm:$0xff] %v6618_v15 }
0x38ed   :  { %8123 = shalt.err (!%p8120_p4)
}
0x38ee   :  { %s8124_s8 = scalar_lea.hbm %s9428_s7, 512 }
0x38ef   :  { %p8125_p5 = scmp.ne.s32.totalorder %s9428_s7, %s8124_s8  ;;  %p8128_p6 = scmp.lt.u32.totalorder %s8124_s8, %s9428_s7 }
0x38f1   :  { %p8130_p7 = pnand %p8128_p6, %p8125_p5 }
0x38f3   :  { %8133 = shalt.err (!%p8130_p7)
}
0x38f4   :  { %s8146_s15 = smov 256  }
0x38f5   :  { %6636 = dma.vmem_to_hbm [thread:$0]  %s6631_s26, 512, %s9428_s7, [#allocation3], %s8146_s15, %s8146_s15, %s8144_s28  }
0x38f6   :  { %8134 = dma.done.wait [#allocation3], 512  }
0x38f7   :  { %8135 = vsyncadd [#allocation3], 4294966784 }
0x38f8   :  { %6640 = vsyncpa [#allocation3], 1 }

</bundles_post_ra>
